<compile_context>
chip_gen: v7x
topology: tpu7x:2x2x1
jax: 0.10.0
libtpu: 0.0.40
codegen_flags: <defaults>
</compile_context>

<pallas_src>
import functools

import jax
import jax.numpy as jnp
from jax import lax
from jax.experimental import pallas as pl
from jax.experimental.pallas import tpu as pltpu


_SUB = 256  # rows per in-kernel sub-block (bounds f32 intermediate live range)


def _round_up(n, m):
    return ((n + m - 1) // m) * m


@functools.lru_cache(maxsize=None)
def _num_tensorcores():
    """Best-effort TC-per-chip count: 2 on v7x, 1 on v5e/v6e (safe default)."""
    try:
        kind = jax.devices()[0].device_kind.lower()
    except Exception:
        return 1
    return 2 if ("v7" in kind or "7x" in kind) else 1


def _choose_batch_tile(batch, batch_tile):
    """Sublane-aligned batch tile.

    v5e/v6e (1 TC): one big tile (grid is a serial loop, extra steps only add
    ~0.35us each). v7x (2 TCs): split into an even number of steps so both
    cores get work. Large batches are capped at `batch_tile` rows per step.
    """
    batch_tile = max(_SUB, _round_up(batch_tile, _SUB))
    n_cores = _num_tensorcores()
    b8 = _round_up(batch, 8)
    if b8 <= _SUB * n_cores:
        # Small batch: one step per core (single step on single-TC chips).
        return _round_up(pl.cdiv(b8, n_cores), 8)
    # Large batch: tiles are multiples of _SUB so the in-kernel sub-block loop
    # divides evenly; >= n_cores steps.
    per_core = _round_up(pl.cdiv(b8, n_cores), _SUB)
    return min(per_core, batch_tile)


def _qnet_kernel(x_ref, w1_ref, b1_ref, w2_ref, b2_ref, w3_ref, b3_ref, o_ref,
                 *, sub_rows, out_cols):
    """Fused 3-layer MLP on one batch tile, processed in `sub_rows` chunks."""
    # f32 weights -> full-precision MXU passes (parity with torch f32);
    # bf16 weights -> native bf16 MXU path with f32 accumulation.
    prec = lax.Precision.HIGHEST if w1_ref.dtype == jnp.float32 else None

    def mlp_block(x):
        h = jnp.dot(x.astype(w1_ref.dtype), w1_ref[...],
                    preferred_element_type=jnp.float32, precision=prec)
        h = jnp.maximum(h + b1_ref[...], 0.0)
        h = jnp.dot(h.astype(w2_ref.dtype), w2_ref[...],
                    preferred_element_type=jnp.float32, precision=prec)
        h = jnp.maximum(h + b2_ref[...], 0.0)
        q = jnp.dot(h.astype(w3_ref.dtype), w3_ref[...],
                    preferred_element_type=jnp.float32, precision=prec)
        q = q + b3_ref[...]
        # Only the real action columns are written back to HBM (the last-layer
        # weights are lane-padded once at init; the output array is not).
        return q[:, :out_cols]

    n_sub = x_ref.shape[0] // sub_rows
    if n_sub == 1:
        o_ref[...] = mlp_block(x_ref[...]).astype(o_ref.dtype)
    else:
        def body(s, carry):
            r = pl.multiple_of(s * sub_rows, sub_rows)
            o_ref[pl.ds(r, sub_rows), :] = mlp_block(
                x_ref[pl.ds(r, sub_rows), :]).astype(o_ref.dtype)
            return carry

        lax.fori_loop(0, n_sub, body, 0)


@functools.partial(jax.jit, static_argnames=("action_dim", "batch_tile"))
def q_network_forward(x, params, action_dim, batch_tile=512):
    """Forward pass of Q_Network.

    x: (B, state_dim) float32. B need not be tile-aligned (padded here).
    params: dict from init_q_network_params (weights pre-transposed to
            (in, out); last layer already lane-padded; optionally bf16).
    Returns (B, action_dim) float32 Q-values.
    """
    w1, b1 = params["w1"], params["b1"]
    w2, b2 = params["w2"], params["b2"]
    w3, b3 = params["w3"], params["b3"]

    B, S = x.shape
    H = w1.shape[1]
    A_pad = w3.shape[1]          # lane-padded at init
    A = action_dim

    tile = _choose_batch_tile(B, batch_tile)
    B_pad = _round_up(B, tile)
    if B_pad != B:
        x = jnp.pad(x, ((0, B_pad - B), (0, 0)))

    sub = min(tile, _SUB)        # tile is either <= _SUB or a multiple of _SUB
    grid = (B_pad // tile,)

    kernel = functools.partial(_qnet_kernel, sub_rows=sub, out_cols=A)

    full = lambda i: (0, 0)      # weights/biases fully resident every step
    out = pl.pallas_call(
        kernel,
        out_shape=jax.ShapeDtypeStruct((B_pad, A), jnp.float32),
        grid=grid,
        in_specs=[
            pl.BlockSpec((tile, S), lambda i: (i, 0)),   # x tile
            pl.BlockSpec((S, H), full),                  # w1
            pl.BlockSpec((1, H), full),                  # b1
            pl.BlockSpec((H, H), full),                  # w2
            pl.BlockSpec((1, H), full),                  # b2
            pl.BlockSpec((H, A_pad), full),              # w3 (lane-padded)
            pl.BlockSpec((1, A_pad), full),              # b3 (lane-padded)
        ],
        out_specs=pl.BlockSpec((tile, A), lambda i: (i, 0)),
        compiler_params=pltpu.CompilerParams(
            dimension_semantics=("parallel",),
        ),
    )(x, w1, b1, w2, b2, w3, b3)

    # Avoid the trailing slice entirely when the batch was already aligned.
    return out if B_pad == B else out[:B]


def init_q_network_params(key, state_dim, action_dim, hidden_dim=128,
                          use_bf16=False):
    """torch.nn.Linear-style U(-1/sqrt(fan_in), +) init, pre-laid-out for the
    kernel: weights transposed to (in, out); the last layer zero-padded to a
    lane multiple ONCE here (not per call); optional one-time bf16 cast of the
    weights (biases stay f32)."""
    ks = jax.random.split(key, 6)

    def linear(kw, kb, fan_in, fan_out):
        bound = 1.0 / jnp.sqrt(jnp.float32(fan_in))
        w = jax.random.uniform(kw, (fan_in, fan_out), jnp.float32, -bound, bound)
        b = jax.random.uniform(kb, (1, fan_out), jnp.float32, -bound, bound)
        return w, b

    w1, b1 = linear(ks[0], ks[1], state_dim, hidden_dim)
    w2, b2 = linear(ks[2], ks[3], hidden_dim, hidden_dim)
    w3, b3 = linear(ks[4], ks[5], hidden_dim, action_dim)

    # One-time lane padding so the MXU RHS of the last layer is lane-dense;
    # the kernel stores only the first `action_dim` columns.
    a_pad = _round_up(max(action_dim, 128), 128)
    if a_pad != action_dim:
        w3 = jnp.pad(w3, ((0, 0), (0, a_pad - action_dim)))
        b3 = jnp.pad(b3, ((0, 0), (0, a_pad - action_dim)))

    if use_bf16:
        w1 = w1.astype(jnp.bfloat16)
        w2 = w2.astype(jnp.bfloat16)
        w3 = w3.astype(jnp.bfloat16)

    return {"w1": w1, "b1": b1, "w2": w2, "b2": b2, "w3": w3, "b3": b3}


def q_network_reference(x, params, action_dim):
    """Pure-JAX f32 reference (undoes the init-time padding / dtype cast)."""
    w1 = params["w1"].astype(jnp.float32)
    w2 = params["w2"].astype(jnp.float32)
    w3 = params["w3"].astype(jnp.float32)[:, :action_dim]
    b1, b2 = params["b1"], params["b2"]
    b3 = params["b3"][:, :action_dim]
    hp = jax.lax.Precision.HIGHEST
    h1 = jnp.maximum(jnp.dot(x, w1, precision=hp) + b1, 0.0)
    h2 = jnp.maximum(jnp.dot(h1, w2, precision=hp) + b2, 0.0)
    return jnp.dot(h2, w3, precision=hp) + b3


if __name__ == "__main__":
    key = jax.random.PRNGKey(0)
    k_param, k_x = jax.random.split(key)

    state_dim, action_dim, hidden_dim = 4, 2, 128
    batch = 256

    params = init_q_network_params(k_param, state_dim, action_dim, hidden_dim)
    x = jax.random.normal(k_x, (batch, state_dim), dtype=jnp.float32)
    ref = q_network_reference(x, params, action_dim)

    # f32 path, tile-aligned batch (single pallas_call, no wrapper pad/slice).
    out = jax.block_until_ready(q_network_forward(x, params, action_dim=action_dim))
    assert out.shape == (batch, action_dim)
    assert jnp.allclose(out, ref, atol=1e-5, rtol=1e-5), "f32 mismatch vs reference"

    # Non-tile-aligned batch exercises the wrapper-side row padding.
    out_odd = jax.block_until_ready(
        q_network_forward(x[:173], params, action_dim=action_dim))
    assert out_odd.shape == (173, action_dim)
    assert jnp.allclose(out_odd, ref[:173], atol=1e-5, rtol=1e-5), "padded-batch mismatch"

    # Larger batch exercises multiple grid steps + the in-kernel sub-block loop.
    x_big = jax.random.normal(k_x, (1024, state_dim), dtype=jnp.float32)
    ref_big = q_network_reference(x_big, params, action_dim)
    out_big = jax.block_until_ready(
        q_network_forward(x_big, params, action_dim=action_dim))
    assert out_big.shape == (1024, action_dim)
    assert jnp.allclose(out_big, ref_big, atol=1e-5, rtol=1e-5), "multi-tile mismatch"

    # Optional bf16-weights path (cast once at init; f32 accumulation/output).
    params_bf16 = init_q_network_params(k_param, state_dim, action_dim,
                                        hidden_dim, use_bf16=True)
    out_bf16 = jax.block_until_ready(
        q_network_forward(x, params_bf16, action_dim=action_dim))
    assert out_bf16.shape == (batch, action_dim)
    assert jnp.allclose(out_bf16, ref, atol=5e-2, rtol=5e-2), "bf16 mismatch vs reference"

    print("KERNEL_OK")
</pallas_src>

<mosaic_0001>
module attributes {stable_mosaic.version = 11 : i64} {
  func.func @_qnet_kernel(%arg0: i32, %arg1: memref<256x4xf32, #tpu.memory_space<vmem>>, %arg2: memref<4x128xf32, #tpu.memory_space<vmem>>, %arg3: memref<1x128xf32, #tpu.memory_space<vmem>>, %arg4: memref<128x128xf32, #tpu.memory_space<vmem>>, %arg5: memref<1x128xf32, #tpu.memory_space<vmem>>, %arg6: memref<128x128xf32, #tpu.memory_space<vmem>>, %arg7: memref<1x128xf32, #tpu.memory_space<vmem>>, %arg8: memref<256x2xf32, #tpu.memory_space<vmem>>) attributes {dimension_semantics = [#tpu.dimension_semantics<parallel>], iteration_bounds = array<i64: 1>, scalar_prefetch = 0 : i64, scratch_operands = 0 : i64, tpu.core_type = #tpu.core_type<tc>, window_params = [{transform_indices = @transform_0, window_bounds = array<i64: 256, 4>}, {pipeline_mode = #tpu.pipeline_mode<synchronous>, transform_indices = @transform_1, window_bounds = array<i64: 4, 128>}, {pipeline_mode = #tpu.pipeline_mode<synchronous>, transform_indices = @transform_2, window_bounds = array<i64: 1, 128>}, {pipeline_mode = #tpu.pipeline_mode<synchronous>, transform_indices = @transform_3, window_bounds = array<i64: 128, 128>}, {pipeline_mode = #tpu.pipeline_mode<synchronous>, transform_indices = @transform_4, window_bounds = array<i64: 1, 128>}, {pipeline_mode = #tpu.pipeline_mode<synchronous>, transform_indices = @transform_5, window_bounds = array<i64: 128, 128>}, {pipeline_mode = #tpu.pipeline_mode<synchronous>, transform_indices = @transform_6, window_bounds = array<i64: 1, 128>}, {transform_indices = @transform_7, window_bounds = array<i64: 256, 2>}]} {
    %c0 = arith.constant 0 : index
    %c0_0 = arith.constant 0 : index
    %0 = vector.load %arg1[%c0, %c0_0] : memref<256x4xf32, #tpu.memory_space<vmem>>, vector<256x4xf32>
    %c0_1 = arith.constant 0 : index
    %c0_2 = arith.constant 0 : index
    %1 = vector.load %arg2[%c0_1, %c0_2] : memref<4x128xf32, #tpu.memory_space<vmem>>, vector<4x128xf32>
    %cst = arith.constant dense<0.000000e+00> : vector<256x128xf32>
    %2 = tpu.matmul %0, %1, %cst {dimension_numbers = #tpu.dot_dimension_numbers<[1], [0], [0], [1], [0, 0, 1, 1], [], []>, precision = #tpu.contract_precision<fp32>} : vector<256x4xf32>, vector<4x128xf32>, vector<256x128xf32> -> vector<256x128xf32>
    %c0_3 = arith.constant 0 : index
    %c0_4 = arith.constant 0 : index
    %3 = vector.load %arg3[%c0_3, %c0_4] : memref<1x128xf32, #tpu.memory_space<vmem>>, vector<1x128xf32>
    %4 = vector.broadcast %3 : vector<1x128xf32> to vector<256x128xf32>
    %5 = arith.addf %2, %4 : vector<256x128xf32>
    %cst_5 = arith.constant 0.000000e+00 : f32
    %6 = vector.broadcast %cst_5 : f32 to vector<256x128xf32>
    %7 = arith.maximumf %5, %6 : vector<256x128xf32>
    %c0_6 = arith.constant 0 : index
    %c0_7 = arith.constant 0 : index
    %8 = vector.load %arg4[%c0_6, %c0_7] : memref<128x128xf32, #tpu.memory_space<vmem>>, vector<128x128xf32>
    %cst_8 = arith.constant dense<0.000000e+00> : vector<256x128xf32>
    %9 = tpu.matmul %7, %8, %cst_8 {dimension_numbers = #tpu.dot_dimension_numbers<[1], [0], [0], [1], [0, 0, 1, 1], [], []>, precision = #tpu.contract_precision<fp32>} : vector<256x128xf32>, vector<128x128xf32>, vector<256x128xf32> -> vector<256x128xf32>
    %c0_9 = arith.constant 0 : index
    %c0_10 = arith.constant 0 : index
    %10 = vector.load %arg5[%c0_9, %c0_10] : memref<1x128xf32, #tpu.memory_space<vmem>>, vector<1x128xf32>
    %11 = vector.broadcast %10 : vector<1x128xf32> to vector<256x128xf32>
    %12 = arith.addf %9, %11 : vector<256x128xf32>
    %cst_11 = arith.constant 0.000000e+00 : f32
    %13 = vector.broadcast %cst_11 : f32 to vector<256x128xf32>
    %14 = arith.maximumf %12, %13 : vector<256x128xf32>
    %c0_12 = arith.constant 0 : index
    %c0_13 = arith.constant 0 : index
    %15 = vector.load %arg6[%c0_12, %c0_13] : memref<128x128xf32, #tpu.memory_space<vmem>>, vector<128x128xf32>
    %cst_14 = arith.constant dense<0.000000e+00> : vector<256x128xf32>
    %16 = tpu.matmul %14, %15, %cst_14 {dimension_numbers = #tpu.dot_dimension_numbers<[1], [0], [0], [1], [0, 0, 1, 1], [], []>, precision = #tpu.contract_precision<fp32>} : vector<256x128xf32>, vector<128x128xf32>, vector<256x128xf32> -> vector<256x128xf32>
    %c0_15 = arith.constant 0 : index
    %c0_16 = arith.constant 0 : index
    %17 = vector.load %arg7[%c0_15, %c0_16] : memref<1x128xf32, #tpu.memory_space<vmem>>, vector<1x128xf32>
    %18 = vector.broadcast %17 : vector<1x128xf32> to vector<256x128xf32>
    %19 = arith.addf %16, %18 : vector<256x128xf32>
    %20 = vector.extract_strided_slice %19 {offsets = [0, 0], sizes = [256, 2], strides = [1, 1]} : vector<256x128xf32> to vector<256x2xf32>
    %c0_17 = arith.constant 0 : index
    %c0_18 = arith.constant 0 : index
    %21 = vector.load %arg8[%c0_17, %c0_18] : memref<256x2xf32, #tpu.memory_space<vmem>>, vector<256x2xf32>
    tpu.vector_store %arg8[%c0_17, %c0_18], %20 {strides = array<i32>} : memref<256x2xf32, #tpu.memory_space<vmem>>, vector<256x2xf32>,
    return
  }
  func.func @transform_0(%arg0: i32) -> (i32, i32) {
    %c0_i32 = arith.constant 0 : i32
    %c0_i32_0 = arith.constant 0 : i32
    return %arg0, %c0_i32 : i32, i32
  }
  func.func @transform_1(%arg0: i32) -> (i32, i32) {
    %c0_i32 = arith.constant 0 : i32
    %c0_i32_0 = arith.constant 0 : i32
    %c0_i32_1 = arith.constant 0 : i32
    return %c0_i32, %c0_i32_0 : i32, i32
  }
  func.func @transform_2(%arg0: i32) -> (i32, i32) {
    %c0_i32 = arith.constant 0 : i32
    %c0_i32_0 = arith.constant 0 : i32
    %c0_i32_1 = arith.constant 0 : i32
    return %c0_i32, %c0_i32_0 : i32, i32
  }
  func.func @transform_3(%arg0: i32) -> (i32, i32) {
    %c0_i32 = arith.constant 0 : i32
    %c0_i32_0 = arith.constant 0 : i32
    %c0_i32_1 = arith.constant 0 : i32
    return %c0_i32, %c0_i32_0 : i32, i32
  }
  func.func @transform_4(%arg0: i32) -> (i32, i32) {
    %c0_i32 = arith.constant 0 : i32
    %c0_i32_0 = arith.constant 0 : i32
    %c0_i32_1 = arith.constant 0 : i32
    return %c0_i32, %c0_i32_0 : i32, i32
  }
  func.func @transform_5(%arg0: i32) -> (i32, i32) {
    %c0_i32 = arith.constant 0 : i32
    %c0_i32_0 = arith.constant 0 : i32
    %c0_i32_1 = arith.constant 0 : i32
    return %c0_i32, %c0_i32_0 : i32, i32
  }
  func.func @transform_6(%arg0: i32) -> (i32, i32) {
    %c0_i32 = arith.constant 0 : i32
    %c0_i32_0 = arith.constant 0 : i32
    %c0_i32_1 = arith.constant 0 : i32
    return %c0_i32, %c0_i32_0 : i32, i32
  }
  func.func @transform_7(%arg0: i32) -> (i32, i32) {
    %c0_i32 = arith.constant 0 : i32
    %c0_i32_0 = arith.constant 0 : i32
    return %arg0, %c0_i32 : i32, i32
  }
}

</mosaic_0001>

<bundles_post_ra>
// kernel: q_network_forward.1
= control target key start
LH: loop header
LB: loop body
LE: loop exit
PB: predicated region body
PF: predicated region fallthrough
CT: control target
= control target key end

     0   :  { %vm163_vm0 = vcmask 1043456   ;;  %vm66_vm1 = vcmask 31744   ;;  %vm6004_vm2 = vcmask 15360   ;;  %s11601_s1 = inlined_call_operand.vmem [shape: f32[4,128], index: 1, kind: input, shape index: {}]   ;;  %s11602_s0 = inlined_call_operand.vmem [shape: f32[256,4], index: 0, kind: input, shape index: {}]   ;;  %s11603_s3 = inlined_call_operand.vmem [shape: f32[128,128], index: 3, kind: input, shape index: {}]   ;;  %s11604_s2 = inlined_call_operand.vmem [shape: f32[1,128], index: 2, kind: input, shape index: {}]   ;;  %s11605_s5 = inlined_call_operand.vmem [shape: f32[128,128], index: 5, kind: input, shape index: {}]   ;;  %s11606_s4 = inlined_call_operand.vmem [shape: f32[1,128], index: 4, kind: input, shape index: {}]   ;;  %s11607_s6 = inlined_call_operand.vmem [shape: f32[1,128], index: 6, kind: input, shape index: {}]   ;;  %s11608_s7 = inlined_call_operand.vmem [shape: f32[256,2], index: 7, kind: output, shape index: {}]  }
   0x1   :  { %v58_v0 = vld [vmem:[%s11601_s1] sm:$0xf]  ;;  %v27_v2 = vld [vmem:[%s11602_s0 + $0x8] sm:$0xff]  ;;  %v28_v6 = vld [vmem:[%s11602_s0 + $0x10] sm:$0xff] }
   0x2   :  { %v26_v1 = vld [vmem:[%s11602_s0] sm:$0xff]  ;;  %v165_v3 = vsel %vm163_vm0, %v58_v0, 0  ;;  %v71_v5 = vsel %vm66_vm1, %v27_v2, 0  ;;  %v29_v7 = vld [vmem:[%s11602_s0 + $0x18] sm:$0xff]  ;;  %v74_v12 = vsel %vm66_vm1, %v28_v6, 0  ;;  %v31_v13 = vld [vmem:[%s11602_s0 + $0x28] sm:$0xff] }
   0x3   :  { %v68_v4 = vsel %vm66_vm1, %v26_v1, 0  ;;  %v30_v8 = vld [vmem:[%s11602_s0 + $0x20] sm:$0xff]  ;;  %v9098_v9 = vand.u32 4294901760, %v165_v3  ;;  %v9102_v11 = vand.u32 4294901760, %v71_v5  ;;  %v32_v14 = vld [vmem:[%s11602_s0 + $0x30] sm:$0xff]  ;;  %v9111_v15 = vand.u32 4294901760, %v74_v12 }
   0x4   :  { %v9100_v10 = vand.u32 4294901760, %v68_v4  ;;  %v77_v16 = vsel %vm66_vm1, %v29_v7, 0  ;;  %v80_v17 = vsel %vm66_vm1, %v30_v8, 0  ;;  %v83_v18 = vsel %vm66_vm1, %v31_v13, 0  ;;  %v33_v43 = vld [vmem:[%s11602_s0 + $0x38] sm:$0xff]  ;;  %v34_v44 = vld [vmem:[%s11602_s0 + $0x40] sm:$0xff] }
   0x5   :  { %6968 = vmatprep.subr.mxu0 %v9098_v9  ;;  %v9121_v20 = vsub.f32 %v71_v5, %v9102_v11  ;;  %6818 = vmatprep.subr.mxu1 %v9098_v9  ;;  %v9125_v21 = vsub.f32 %v165_v3, %v9098_v9  ;;  %v9127_v22 = vand.u32 4294901760, %v77_v16  ;;  %v9132_v23 = vsub.f32 %v74_v12, %v9111_v15  ;;  %v35_v45 = vld [vmem:[%s11602_s0 + $0x48] sm:$0xff]  ;;  %v36_v54 = vld [vmem:[%s11602_s0 + $0x50] sm:$0xff]  ;;  %v37_v55 = vld [vmem:[%s11602_s0 + $0x58] sm:$0xff] }
   0x6   :  { %v9118_v19 = vsub.f32 %v68_v4, %v9100_v10  ;;  %6969 = vmatpush3.msra.mxu0 %v9098_v9  ;;  %6819 = vmatpush3.msra.mxu1 %v9098_v9  ;;  %v9134_v24 = vand.u32 4294901760, %v80_v17  ;;  %v9136_v25 = vand.u32 4294901760, %v83_v18  ;;  %v86_v26 = vsel %vm66_vm1, %v32_v14, 0  ;;  %v38_v0 = vld [vmem:[%s11602_s0 + $0x60] sm:$0xff]  ;;  %v39_v1 = vld [vmem:[%s11602_s0 + $0x68] sm:$0xff]  ;;  %v40_v13 = vld [vmem:[%s11602_s0 + $0x70] sm:$0xff] }
   0x7   :  { %v245_v28 = vand.u32 4294901760, %v9121_v20  ;;  %v556_v29 = vand.u32 4294901760, %v9125_v21  ;;  %v9143_v30 = vsub.f32 %v77_v16, %v9127_v22  ;;  %v255_v31 = vand.u32 4294901760, %v9132_v23 }
   0x8   :  { %v235_v27 = vand.u32 4294901760, %v9118_v19  ;;  %v9147_v32 = vsub.f32 %v80_v17, %v9134_v24  ;;  %v9150_v33 = vsub.f32 %v83_v18, %v9136_v25  ;;  %v9152_v34 = vand.u32 4294901760, %v86_v26 }
   0x9   :  { %v557_v36 = vsub.f32 %v9125_v21, %v556_v29  ;;  %v246_v37 = vsub.f32 %v9121_v20, %v245_v28  ;;  %v265_v38 = vand.u32 4294901760, %v9143_v30  ;;  %7018 = vmatprep.subr.mxu0 %v556_v29  ;;  %v256_v39 = vsub.f32 %v9132_v23, %v255_v31 }
   0xa   :  { %6970 = vmatprep.mubr.f32.mxu0 %v235_v27  ;;  %v236_v35 = vsub.f32 %v9118_v19, %v235_v27  ;;  %v275_v40 = vand.u32 4294901760, %v9147_v32  ;;  %v285_v41 = vand.u32 4294901760, %v9150_v33  ;;  %v9162_v42 = vsub.f32 %v86_v26, %v9152_v34 }
   0xb   :  { %6971 = vmatmul.mubr.f32.vlgmr.msra.gmra.mrb[0].mxu0 %v245_v28  ;;  %v558_v47 = vand.u32 4294901760, %v557_v36  ;;  %v247_v48 = vand.u32 4294901760, %v246_v37  ;;  %v266_v49 = vsub.f32 %v9143_v30, %v265_v38  ;;  %v257_v50 = vand.u32 4294901760, %v256_v39 }
   0xc   :  { %v237_v46 = vand.u32 4294901760, %v236_v35  ;;  %6973 = vmatprep.mubr.f32.mxu0 %v255_v31  ;;  %7019 = vmatpush3.msra.mxu0 %v556_v29  ;;  %v276_v51 = vsub.f32 %v9147_v32, %v275_v40  ;;  %v295_v52 = vand.u32 4294901760, %v9162_v42  ;;  %v286_v53 = vsub.f32 %v9150_v33, %v285_v41 }
   0xd   :  { %7068 = vmatprep.subr.mxu0 %v9098_v9  ;;  %6868 = vmatprep.subr.mxu1 %v558_v47  ;;  %v267_v56 = vand.u32 4294901760, %v266_v49  ;;  %v89_v57 = vsel %vm66_vm1, %v33_v43, 0  ;;  %v92_v58 = vsel %vm66_vm1, %v34_v44, 0  ;;  %v95_v59 = vsel %vm66_vm1, %v35_v45, 0  ;;  %v42_v49 = vld [vmem:[%s11602_s0 + $0x80] sm:$0xff] }
   0xe   :  { %6820 = vmatprep.mubr.f32.mxu1 %v237_v46  ;;  %v277_v60 = vand.u32 4294901760, %v276_v51  ;;  %v287_v61 = vand.u32 4294901760, %v286_v53  ;;  %v9187_v62 = vand.u32 4294901760, %v89_v57  ;;  %v296_v63 = vsub.f32 %v9162_v42, %v295_v52  ;;  %v41_v46 = vld [vmem:[%s11602_s0 + $0x78] sm:$0xff] }
   0xf   :  { %6821 = vmatmul.mubr.f32.vlgmr.msra.gmra.mrb[0].mxu1 %v247_v48  ;;  %6974 = vmatmul.mubr.f32.gmra.mrb[2].mxu0 %v265_v38  ;;  %v9196_v2 = vand.u32 4294901760, %v92_v58  ;;  %v9198_v3 = vand.u32 4294901760, %v95_v59  ;;  %v98_v4 = vsel %vm66_vm1, %v36_v54, 0  ;;  %v101_v5 = vsel %vm66_vm1, %v37_v55, 0  ;;  %v43_v54 = vld [vmem:[%s11602_s0 + $0x88] sm:$0xff]  ;;  %v44_v55 = vld [vmem:[%s11602_s0 + $0x90] sm:$0xff] }
  0x10   :  { %6869 = vmatpush3.msra.mxu1 %v558_v47  ;;  %6823 = vmatprep.mubr.f32.mxu1 %v257_v50  ;;  %v9203_v6 = vsub.f32 %v89_v57, %v9187_v62  ;;  %v297_v7 = vand.u32 4294901760, %v296_v63  ;;  %v9205_v8 = vand.u32 4294901760, %v98_v4  ;;  %v9207_v12 = vand.u32 4294901760, %v101_v5  ;;  %v45_v63 = vld [vmem:[%s11602_s0 + $0x98] sm:$0xff] }
  0x11   :  { %6976 = vmatprep.mubr.f32.mxu0 %v275_v40  ;;  %6918 = vmatprep.subr.mxu1 %v9125_v21  ;;  %v9214_v14 = vsub.f32 %v92_v58, %v9196_v2  ;;  %v9217_v16 = vsub.f32 %v95_v59, %v9198_v3  ;;  %v104_v17 = vsel %vm66_vm1, %v38_v0, 0  ;;  %v107_v18 = vsel %vm66_vm1, %v39_v1, 0  ;;  %v46_v0 = vld [vmem:[%s11602_s0 + $0xa0] sm:$0xff] }
  0x12   :  { %11957 = vst [vmem:[#allocation2_spill] sm:$0xff] %v9203_v6  ;;  %v305_v26 = vand.u32 4294901760, %v9203_v6  ;;  %v9223_v27 = vsub.f32 %v98_v4, %v9205_v8  ;;  %v9226_v28 = vsub.f32 %v101_v5, %v9207_v12  ;;  %v9228_v29 = vand.u32 4294901760, %v104_v17 }
  0x13   :  { %11958 = vst [vmem:[#allocation3_spill] sm:$0xff] %v9214_v14  ;;  %11959 = vst [vmem:[#allocation4_spill] sm:$0xff] %v9217_v16  ;;  %6824 = vmatmul.mubr.f32.gmra.mrb[2].mxu1 %v267_v56  ;;  %6977 = vmatmul.mubr.f32.gmra.mrb[4].mxu0 %v285_v41  ;;  %v315_v31 = vand.u32 4294901760, %v9214_v14  ;;  %v325_v35 = vand.u32 4294901760, %v9217_v16  ;;  %v9232_v36 = vand.u32 4294901760, %v107_v18  ;;  %v110_v37 = vsel %vm66_vm1, %v40_v13, 0 }
  0x14   :  { %11960 = vst [vmem:[#allocation5_spill] sm:$0xff] %v9223_v27  ;;  %11961 = vst [vmem:[#allocation6_spill] sm:$0xff] %v9226_v28  ;;  %6826 = vmatprep.mubr.f32.mxu1 %v277_v60  ;;  %6979 = vmatprep.mubr.f32.mxu0 %v295_v52  ;;  %v306_v38 = vsub.f32 %v9203_v6, %v305_v26  ;;  %v335_v39 = vand.u32 4294901760, %v9223_v27  ;;  %v345_v40 = vand.u32 4294901760, %v9226_v28  ;;  %v9245_v45 = vand.u32 4294901760, %v110_v37 }
  0x15   :  { %v9239_v41 = vsub.f32 %v104_v17, %v9228_v29  ;;  %v316_v43 = vsub.f32 %v9214_v14, %v315_v31  ;;  %v9243_v44 = vsub.f32 %v107_v18, %v9232_v36  ;;  %v326_v48 = vsub.f32 %v9217_v16, %v325_v35 }
  0x16   :  { %v307_v47 = vand.u32 4294901760, %v306_v38  ;;  %v336_v51 = vsub.f32 %v9223_v27, %v335_v39  ;;  %v9257_v53 = vsub.f32 %v110_v37, %v9245_v45  ;;  %v346_v56 = vsub.f32 %v9226_v28, %v345_v40 }
  0x17   :  { %11962 = vst [vmem:[#allocation7_spill] sm:$0xff] %v9239_v41  ;;  %11963 = vst [vmem:[#allocation8_spill] sm:$0xff] %v9243_v44  ;;  %6827 = vmatmul.mubr.f32.gmra.mrb[4].mxu1 %v287_v61  ;;  %6980 = vmatmul.mubr.f32.gmra.mrb[6].mxu0 %v305_v26  ;;  %v317_v50 = vand.u32 4294901760, %v316_v43  ;;  %v355_v52 = vand.u32 4294901760, %v9239_v41  ;;  %v113_v57 = vsel %vm66_vm1, %v41_v46, 0  ;;  %v365_v58 = vand.u32 4294901760, %v9243_v44 }
  0x18   :  { %6829 = vmatprep.mubr.f32.mxu1 %v297_v7  ;;  %6982 = vmatprep.mubr.f32.mxu0 %v315_v31  ;;  %11964 = vst [vmem:[#allocation9_spill] sm:$0xff] %v9257_v53  ;;  %v375_v59 = vand.u32 4294901760, %v9257_v53  ;;  %v9269_v60 = vand.u32 4294901760, %v113_v57  ;;  %v116_v61 = vsel %vm66_vm1, %v42_v49, 0  ;;  %v327_v1 = vand.u32 4294901760, %v326_v48  ;;  %v47_v31 = vld [vmem:[%s11602_s0 + $0xa8] sm:$0xff] }
  0x19   :  { %v9278_v4 = vand.u32 4294901760, %v116_v61  ;;  %v119_v5 = vsel %vm66_vm1, %v43_v54, 0  ;;  %v122_v7 = vsel %vm66_vm1, %v44_v55, 0  ;;  %v337_v13 = vand.u32 4294901760, %v336_v51  ;;  %v48_v48 = vld [vmem:[%s11602_s0 + $0xb0] sm:$0xff] }
  0x1a   :  { %v356_v17 = vsub.f32 %v9239_v41, %v355_v52  ;;  %v9284_v18 = vsub.f32 %v113_v57, %v9269_v60  ;;  %v9286_v26 = vand.u32 4294901760, %v119_v5  ;;  %v9294_v37 = vand.u32 4294901760, %v122_v7 }
  0x1b   :  { %6830 = vmatmul.mubr.f32.gmra.mrb[6].mxu1 %v307_v47  ;;  %6983 = vmatmul.mubr.f32.gmra.mrb[8].mxu0 %v325_v35  ;;  %v9292_v35 = vsub.f32 %v116_v61, %v9278_v4  ;;  %v125_v38 = vsel %vm66_vm1, %v45_v63, 0  ;;  %v347_v43 = vand.u32 4294901760, %v346_v56  ;;  %v366_v46 = vsub.f32 %v9243_v44, %v365_v58  ;;  %v49_v63 = vld [vmem:[%s11602_s0 + $0xb8] sm:$0xff] }
  0x1c   :  { %6832 = vmatprep.mubr.f32.mxu1 %v317_v50  ;;  %6985 = vmatprep.mubr.f32.mxu0 %v335_v39  ;;  %11965 = vst [vmem:[#allocation10_spill] sm:$0xff] %v9284_v18  ;;  %v128_v39 = vsel %vm66_vm1, %v46_v0, 0  ;;  %v376_v47 = vsub.f32 %v9257_v53, %v375_v59  ;;  %v385_v49 = vand.u32 4294901760, %v9284_v18  ;;  %v9305_v50 = vsub.f32 %v119_v5, %v9286_v26 }
  0x1d   :  { %11966 = vst [vmem:[#allocation11_spill] sm:$0xff] %v9292_v35  ;;  %v9307_v51 = vand.u32 4294901760, %v125_v38  ;;  %v131_v54 = vsel %vm66_vm1, %v47_v31, 0  ;;  %v357_v55 = vand.u32 4294901760, %v356_v17  ;;  %v395_v56 = vand.u32 4294901760, %v9292_v35  ;;  %v50_v31 = vld [vmem:[%s11602_s0 + $0xc0] sm:$0xff] }
  0x1e   :  { %11967 = vst [vmem:[#allocation12_spill] sm:$0xff] %v9305_v50  ;;  %v9312_v57 = vsub.f32 %v122_v7, %v9294_v37  ;;  %v9314_v61 = vand.u32 4294901760, %v128_v39  ;;  %v367_v0 = vand.u32 4294901760, %v366_v46  ;;  %v9320_v5 = vand.u32 4294901760, %v131_v54 }
  0x1f   :  { %6833 = vmatmul.mubr.f32.gmra.mrb[8].mxu1 %v327_v1  ;;  %6986 = vmatmul.mubr.f32.gmra.mrb[10].mxu0 %v345_v40  ;;  %v134_v40 = vsel %vm66_vm1, %v48_v48, 0  ;;  %v377_v1 = vand.u32 4294901760, %v376_v47  ;;  %v9325_v7 = vsub.f32 %v125_v38, %v9307_v51  ;;  %v396_v46 = vsub.f32 %v9292_v35, %v395_v56  ;;  %v51_v38 = vld [vmem:[%s11602_s0 + $0xc8] sm:$0xff] }
  0x20   :  { %6835 = vmatprep.mubr.f32.mxu1 %v337_v13  ;;  %6988 = vmatprep.mubr.f32.mxu0 %v355_v52  ;;  %11968 = vst [vmem:[#allocation13_spill] sm:$0xff] %v9312_v57  ;;  %v386_v52 = vsub.f32 %v9284_v18, %v385_v49  ;;  %v405_v13 = vand.u32 4294901760, %v9305_v50  ;;  %v9327_v17 = vand.u32 4294901760, %v134_v40  ;;  %v137_v47 = vsel %vm66_vm1, %v49_v63, 0 }
  0x21   :  { %11969 = vst [vmem:[#allocation14_spill] sm:$0xff] %v9325_v7  ;;  %v9342_v48 = vsub.f32 %v131_v54, %v9320_v5  ;;  %v425_v53 = vand.u32 4294901760, %v9325_v7  ;;  %v143_v41 = vsel %vm66_vm1, %v51_v38, 0 }
  0x22   :  { %v9345_v18 = vsub.f32 %v134_v40, %v9327_v17  ;;  %v387_v63 = vand.u32 4294901760, %v386_v52  ;;  %v406_v35 = vsub.f32 %v9305_v50, %v405_v13  ;;  %v397_v40 = vand.u32 4294901760, %v396_v46 }
  0x23   :  { %6836 = vmatmul.mubr.f32.gmra.mrb[10].mxu1 %v347_v43  ;;  %6989 = vmatmul.mubr.f32.gmra.mrb[12].mxu0 %v365_v58  ;;  %v415_v43 = vand.u32 4294901760, %v9312_v57  ;;  %v9335_v58 = vsub.f32 %v128_v39, %v9314_v61  ;;  %11971 = vst [vmem:[#allocation16_spill] sm:$0xff] %v9342_v48  ;;  %v52_v39 = vld [vmem:[%s11602_s0 + $0xd0] sm:$0xff]  ;;  %v426_v38 = vsub.f32 %v9325_v7, %v425_v53 }
  0x24   :  { %6838 = vmatprep.mubr.f32.mxu1 %v357_v55  ;;  %6991 = vmatprep.mubr.f32.mxu0 %v375_v59  ;;  %11972 = vst [vmem:[#allocation17_spill] sm:$0xff] %v9345_v18  ;;  %v9347_v59 = vand.u32 4294901760, %v137_v47  ;;  %v140_v55 = vsel %vm66_vm1, %v50_v31, 0  ;;  %v146_v28 = vsel %vm66_vm1, %v52_v39, 0  ;;  %v455_v52 = vand.u32 4294901760, %v9345_v18 }
  0x25   :  { %11970 = vst [vmem:[#allocation15_spill] sm:$0xff] %v9335_v58  ;;  %v9355_v54 = vand.u32 4294901760, %v140_v55  ;;  %v416_v44 = vsub.f32 %v9312_v57, %v415_v43  ;;  %v435_v31 = vand.u32 4294901760, %v9335_v58  ;;  %v407_v46 = vand.u32 4294901760, %v406_v35  ;;  %v55_v35 = vld [vmem:[%s11602_s0 + $0xe8] sm:$0xff] }
  0x26   :  { %v9376_v57 = vand.u32 4294901760, %v143_v41  ;;  %v9379_v27 = vand.u32 4294901760, %v146_v28  ;;  %v155_v14 = vsel %vm66_vm1, %v55_v35, 0 }
  0x27   :  { %6839 = vmatmul.mubr.f32.gmra.mrb[12].mxu1 %v367_v0  ;;  %6992 = vmatmul.mubr.f32.gmra.mrb[14].mxu0 %v385_v49  ;;  %v53_v49 = vld [vmem:[%s11602_s0 + $0xd8] sm:$0xff]  ;;  %v445_v0 = vand.u32 4294901760, %v9342_v48  ;;  %v9374_v39 = vsub.f32 %v140_v55, %v9355_v54  ;;  %v417_v50 = vand.u32 4294901760, %v416_v44  ;;  %v56_v44 = vld [vmem:[%s11602_s0 + $0xf0] sm:$0xff] }
  0x28   :  { %6841 = vmatprep.mubr.f32.mxu1 %v377_v1  ;;  %6994 = vmatprep.mubr.f32.mxu0 %v395_v56  ;;  %v9367_v1 = vsub.f32 %v137_v47, %v9347_v59  ;;  %v54_v56 = vld [vmem:[%s11602_s0 + $0xe0] sm:$0xff]  ;;  %v436_v47 = vsub.f32 %v9335_v58, %v435_v31  ;;  %v149_v16 = vsel %vm66_vm1, %v53_v49, 0  ;;  %v9399_v7 = vsub.f32 %v146_v28, %v9379_v27 }
  0x29   :  { %11974 = vst [vmem:[#allocation19_spill] sm:$0xff] %v9374_v39  ;;  %v475_v49 = vand.u32 4294901760, %v9374_v39  ;;  %v9396_v58 = vand.u32 4294901760, %v149_v16 }
  0x2a   :  { %11973 = vst [vmem:[#allocation18_spill] sm:$0xff] %v9367_v1  ;;  %v465_v55 = vand.u32 4294901760, %v9367_v1  ;;  %v495_v35 = vand.u32 4294901760, %v9399_v7 }
  0x2b   :  { %6842 = vmatmul.mubr.f32.gmra.mrb[14].mxu1 %v387_v63  ;;  %6995 = vmatmul.mubr.f32.gmra.mrb[16].mxu0 %v405_v13  ;;  %v152_v63 = vsel %vm66_vm1, %v54_v56, 0  ;;  %v446_v13 = vsub.f32 %v9342_v48, %v445_v0  ;;  %v9394_v56 = vsub.f32 %v143_v41, %v9376_v57  ;;  %v437_v48 = vand.u32 4294901760, %v436_v47 }
  0x2c   :  { %6844 = vmatprep.mubr.f32.mxu1 %v397_v40  ;;  %6997 = vmatprep.mubr.f32.mxu0 %v415_v43  ;;  %v456_v40 = vsub.f32 %v9345_v18, %v455_v52  ;;  %v427_v43 = vand.u32 4294901760, %v426_v38  ;;  %v9401_v18 = vand.u32 4294901760, %v152_v63  ;;  %v466_v6 = vsub.f32 %v9367_v1, %v465_v55 }
  0x2d   :  { %v447_v41 = vand.u32 4294901760, %v446_v13  ;;  %v476_v28 = vsub.f32 %v9374_v39, %v475_v49  ;;  %v9414_v47 = vand.u32 4294901760, %v155_v14 }
  0x2e   :  { %v457_v38 = vand.u32 4294901760, %v456_v40  ;;  %v9418_v13 = vsub.f32 %v152_v63, %v9401_v18  ;;  %v496_v63 = vsub.f32 %v9399_v7, %v495_v35 }
  0x2f   :  { %6845 = vmatmul.mubr.f32.gmra.mrb[16].mxu1 %v407_v46  ;;  %6998 = vmatmul.mubr.f32.gmra.mrb[18].mxu0 %v425_v53  ;;  %v158_v53 = vsel %vm66_vm1, %v56_v44, 0  ;;  %v57_v46 = vld [vmem:[%s11602_s0 + $0xf8] sm:$0xff]  ;;  %v467_v44 = vand.u32 4294901760, %v466_v6  ;;  %v9426_v39 = vsub.f32 %v155_v14, %v9414_v47 }
  0x30   :  { %6847 = vmatprep.mubr.f32.mxu1 %v417_v50  ;;  %7000 = vmatprep.mubr.f32.mxu0 %v435_v31  ;;  %v485_v50 = vand.u32 4294901760, %v9394_v56  ;;  %v9412_v31 = vsub.f32 %v149_v16, %v9396_v58  ;;  %v9420_v40 = vand.u32 4294901760, %v158_v53  ;;  %v515_v1 = vand.u32 4294901760, %v9418_v13 }
  0x31   :  { %v525_v14 = vand.u32 4294901760, %v9426_v39 }
  0x32   :  { %v505_v16 = vand.u32 4294901760, %v9412_v31  ;;  %v9433_v6 = vsub.f32 %v158_v53, %v9420_v40 }
  0x33   :  { %6848 = vmatmul.mubr.f32.gmra.mrb[18].mxu1 %v427_v43  ;;  %7001 = vmatmul.mubr.f32.gmra.mrb[20].mxu0 %v445_v0  ;;  %v161_v0 = vsel %vm66_vm1, %v57_v46, 0  ;;  %v486_v43 = vsub.f32 %v9394_v56, %v485_v50 }
  0x34   :  { %6850 = vmatprep.mubr.f32.mxu1 %v437_v48  ;;  %7003 = vmatprep.mubr.f32.mxu0 %v455_v52  ;;  %v9428_v48 = vand.u32 4294901760, %v161_v0  ;;  %v477_v52 = vand.u32 4294901760, %v476_v28  ;;  %v506_v46 = vsub.f32 %v9412_v31, %v505_v16  ;;  %v535_v28 = vand.u32 4294901760, %v9433_v6 }
  0x36   :  { %v507_v53 = vand.u32 4294901760, %v506_v46 }
  0x37   :  { %6851 = vmatmul.mubr.f32.gmra.mrb[20].mxu1 %v447_v41  ;;  %7004 = vmatmul.mubr.f32.gmra.mrb[22].mxu0 %v465_v55  ;;  %v487_v55 = vand.u32 4294901760, %v486_v43  ;;  %v9438_v41 = vsub.f32 %v161_v0, %v9428_v48  ;;  %v536_v0 = vsub.f32 %v9433_v6, %v535_v28 }
  0x38   :  { %6853 = vmatprep.mubr.f32.mxu1 %v457_v38  ;;  %7006 = vmatprep.mubr.f32.mxu0 %v475_v49  ;;  %v497_v49 = vand.u32 4294901760, %v496_v63  ;;  %v516_v38 = vsub.f32 %v9418_v13, %v515_v1 }
  0x39   :  { %v537_v63 = vand.u32 4294901760, %v536_v0 }
  0x3a   :  { %v517_v43 = vand.u32 4294901760, %v516_v38 }
  0x3b   :  { %6854 = vmatmul.mubr.f32.gmra.mrb[22].mxu1 %v467_v44  ;;  %7007 = vmatmul.mubr.f32.gmra.mrb[24].mxu0 %v485_v50  ;;  %v526_v50 = vsub.f32 %v9426_v39, %v525_v14  ;;  %v545_v44 = vand.u32 4294901760, %v9438_v41 }
  0x3c   :  { %6856 = vmatprep.mubr.f32.mxu1 %v477_v52  ;;  %7009 = vmatprep.mubr.f32.mxu0 %v495_v35 }
  0x3d   :  { %v527_v35 = vand.u32 4294901760, %v526_v50  ;;  %v546_v52 = vsub.f32 %v9438_v41, %v545_v44  ;;  %v9553_v50 = vld [vmem:[%s11603_s3 + $0x28] sm:$0xff] }
  0x3f   :  { %6857 = vmatmul.mubr.f32.gmra.mrb[24].mxu1 %v487_v55  ;;  %7010 = vmatmul.mubr.f32.gmra.mrb[26].mxu0 %v505_v16  ;;  %v547_v16 = vand.u32 4294901760, %v546_v52  ;;  %v9458_v55 = vld [vmem:[%s11603_s3 + $0x8] sm:$0xff]  ;;  %v11979_v52 = vld [vmem:[#allocation2_spill] sm:$0xff] }
  0x40   :  { %6859 = vmatprep.mubr.f32.mxu1 %v497_v49  ;;  %7012 = vmatprep.mubr.f32.mxu0 %v515_v1  ;;  %v9453_v1 = vld [vmem:[%s11603_s3] sm:$0xff] }
  0x41   :  { %v2002_v46 = vand.u32 4294901760, %v9453_v1 }
  0x43   :  { %6860 = vmatmul.mubr.f32.gmra.mrb[26].mxu1 %v507_v53  ;;  %7013 = vmatmul.mubr.f32.gmra.mrb[28].mxu0 %v525_v14  ;;  %v2005_v14 = vand.u32 4294901760, %v9458_v55  ;;  %v9548_v53 = vld [vmem:[%s11603_s3 + $0x20] sm:$0xff] }
  0x44   :  { %6862 = vmatprep.mubr.f32.mxu1 %v517_v43  ;;  %7015 = vmatprep.mubr.f32.mxu0 %v535_v28 }
  0x45   :  { %v9469_v49 = vpack.c.bf16 %v2005_v14, %v2002_v46 }
  0x47   :  { %6863 = vmatmul.mubr.f32.gmra.mrb[28].mxu1 %v527_v35  ;;  %7016 = vmatmul.mubr.f32.gmra.mrb[30].mxu0 %v545_v44  ;;  %v2017_v44 = vand.u32 4294901760, %v9553_v50 }
  0x48   :  { %6865 = vmatprep.mubr.f32.mxu1 %v537_v63  ;;  %7020 = vmatprep.mubr.f32.mxu0 %v9100_v10  ;;  %v11982_v63 = vld [vmem:[#allocation4_spill] sm:$0xff] }
  0x4b   :  { %6866 = vmatmul.mubr.f32.gmra.mrb[30].mxu1 %v547_v16  ;;  %7021 = vmatmul.mubr.f32.vlgmr.msra.gmra.mrb[0].mxu0 %v9102_v11  ;;  %v11983_v16 = vld [vmem:[#allocation5_spill] sm:$0xff] }
  0x4c   :  { %6870 = vmatprep.mubr.f32.mxu1 %v9100_v10  ;;  %7023 = vmatprep.mubr.f32.mxu0 %v9111_v15 }
  0x4d   :  { %7069 = vmatpush3.msra.mxu0 %v9098_v9  ;;  %v9532_v9 = vld [vmem:[%s11603_s3 + $0x10] sm:$0xff] }
  0x4e   :  { %v2008_v38 = vand.u32 4294901760, %v9532_v9 }
  0x4f   :  { %6871 = vmatmul.mubr.f32.vlgmr.msra.gmra.mrb[0].mxu1 %v9102_v11  ;;  %7024 = vmatmul.mubr.f32.gmra.mrb[2].mxu0 %v9127_v22 }
  0x50   :  { %6919 = vmatpush3.msra.mxu1 %v9125_v21  ;;  %6873 = vmatprep.mubr.f32.mxu1 %v9111_v15  ;;  %v9537_v21 = vld [vmem:[%s11603_s3 + $0x18] sm:$0xff] }
  0x51   :  { %7026 = vmatprep.mubr.f32.mxu0 %v9134_v24  ;;  %8079 = vmatprep.subr.bf16.mxu1 %v9469_v49  ;;  %v2011_v28 = vand.u32 4294901760, %v9537_v21 }
  0x53   :  { %6874 = vmatmul.mubr.f32.gmra.mrb[2].mxu1 %v9127_v22  ;;  %7027 = vmatmul.mubr.f32.gmra.mrb[4].mxu0 %v9136_v25 }
  0x54   :  { %6876 = vmatprep.mubr.f32.mxu1 %v9134_v24  ;;  %7029 = vmatprep.mubr.f32.mxu0 %v9152_v34 }
  0x57   :  { %6877 = vmatmul.mubr.f32.gmra.mrb[4].mxu1 %v9136_v25  ;;  %7030 = vmatmul.mubr.f32.gmra.mrb[6].mxu0 %v9187_v62 }
  0x58   :  { %6879 = vmatprep.mubr.f32.mxu1 %v9152_v34  ;;  %7032 = vmatprep.mubr.f32.mxu0 %v9196_v2 }
  0x5b   :  { %6880 = vmatmul.mubr.f32.gmra.mrb[6].mxu1 %v9187_v62  ;;  %7033 = vmatmul.mubr.f32.gmra.mrb[8].mxu0 %v9198_v3 }
  0x5c   :  { %6882 = vmatprep.mubr.f32.mxu1 %v9196_v2  ;;  %7035 = vmatprep.mubr.f32.mxu0 %v9205_v8 }
  0x5f   :  { %6883 = vmatmul.mubr.f32.gmra.mrb[8].mxu1 %v9198_v3  ;;  %7036 = vmatmul.mubr.f32.gmra.mrb[10].mxu0 %v9207_v12 }
  0x60   :  { %6885 = vmatprep.mubr.f32.mxu1 %v9205_v8  ;;  %7038 = vmatprep.mubr.f32.mxu0 %v9228_v29 }
  0x63   :  { %6886 = vmatmul.mubr.f32.gmra.mrb[10].mxu1 %v9207_v12  ;;  %7039 = vmatmul.mubr.f32.gmra.mrb[12].mxu0 %v9232_v36 }
  0x64   :  { %6888 = vmatprep.mubr.f32.mxu1 %v9228_v29  ;;  %7041 = vmatprep.mubr.f32.mxu0 %v9245_v45 }
  0x67   :  { %6889 = vmatmul.mubr.f32.gmra.mrb[12].mxu1 %v9232_v36  ;;  %7042 = vmatmul.mubr.f32.gmra.mrb[14].mxu0 %v9269_v60 }
  0x68   :  { %6891 = vmatprep.mubr.f32.mxu1 %v9245_v45  ;;  %7044 = vmatprep.mubr.f32.mxu0 %v9278_v4 }
  0x6b   :  { %6892 = vmatmul.mubr.f32.gmra.mrb[14].mxu1 %v9269_v60  ;;  %7045 = vmatmul.mubr.f32.gmra.mrb[16].mxu0 %v9286_v26 }
  0x6c   :  { %6894 = vmatprep.mubr.f32.mxu1 %v9278_v4  ;;  %7047 = vmatprep.mubr.f32.mxu0 %v9294_v37 }
  0x6f   :  { %6895 = vmatmul.mubr.f32.gmra.mrb[16].mxu1 %v9286_v26  ;;  %7048 = vmatmul.mubr.f32.gmra.mrb[18].mxu0 %v9307_v51 }
  0x70   :  { %6897 = vmatprep.mubr.f32.mxu1 %v9294_v37  ;;  %7050 = vmatprep.mubr.f32.mxu0 %v9314_v61 }
  0x73   :  { %6898 = vmatmul.mubr.f32.gmra.mrb[18].mxu1 %v9307_v51  ;;  %7051 = vmatmul.mubr.f32.gmra.mrb[20].mxu0 %v9320_v5 }
  0x74   :  { %6900 = vmatprep.mubr.f32.mxu1 %v9314_v61  ;;  %7053 = vmatprep.mubr.f32.mxu0 %v9327_v17 }
  0x77   :  { %6901 = vmatmul.mubr.f32.gmra.mrb[20].mxu1 %v9320_v5  ;;  %7054 = vmatmul.mubr.f32.gmra.mrb[22].mxu0 %v9347_v59 }
  0x78   :  { %6903 = vmatprep.mubr.f32.mxu1 %v9327_v17  ;;  %7056 = vmatprep.mubr.f32.mxu0 %v9355_v54 }
  0x7b   :  { %6904 = vmatmul.mubr.f32.gmra.mrb[22].mxu1 %v9347_v59  ;;  %7057 = vmatmul.mubr.f32.gmra.mrb[24].mxu0 %v9376_v57 }
  0x7c   :  { %6906 = vmatprep.mubr.f32.mxu1 %v9355_v54  ;;  %7059 = vmatprep.mubr.f32.mxu0 %v9379_v27 }
  0x7f   :  { %6907 = vmatmul.mubr.f32.gmra.mrb[24].mxu1 %v9376_v57  ;;  %7060 = vmatmul.mubr.f32.gmra.mrb[26].mxu0 %v9396_v58 }
  0x80   :  { %6909 = vmatprep.mubr.f32.mxu1 %v9379_v27  ;;  %7062 = vmatprep.mubr.f32.mxu0 %v9401_v18 }
  0x83   :  { %6910 = vmatmul.mubr.f32.gmra.mrb[26].mxu1 %v9396_v58  ;;  %7063 = vmatmul.mubr.f32.gmra.mrb[28].mxu0 %v9414_v47 }
  0x84   :  { %6912 = vmatprep.mubr.f32.mxu1 %v9401_v18  ;;  %7065 = vmatprep.mubr.f32.mxu0 %v9420_v40 }
  0x87   :  { %6913 = vmatmul.mubr.f32.gmra.mrb[28].mxu1 %v9414_v47  ;;  %7066 = vmatmul.mubr.f32.gmra.mrb[30].mxu0 %v9428_v48 }
  0x88   :  { %6915 = vmatprep.mubr.f32.mxu1 %v9420_v40  ;;  %7070 = vmatprep.mubr.f32.mxu0 %v9100_v10  ;;  %v9561_v10 = vpack.c.bf16 %v2011_v28, %v2008_v38 }
  0x8a   :  { %11975 = vst [vmem:[#allocation20_spill] sm:$0xff] %v9561_v10 }
  0x8b   :  { %6916 = vmatmul.mubr.f32.gmra.mrb[30].mxu1 %v9428_v48  ;;  %7071 = vmatmul.mubr.f32.vlgmr.msra.gmra.mrb[0].mxu0 %v9102_v11  ;;  %v2014_v11 = vand.u32 4294901760, %v9548_v53 }
  0x8c   :  { %6920 = vmatprep.mubr.f32.mxu1 %v9118_v19  ;;  %7073 = vmatprep.mubr.f32.mxu0 %v9111_v15  ;;  %v9570_v19 = vld [vmem:[%s11603_s3 + $0x30] sm:$0xff]  ;;  %v9575_v15 = vld [vmem:[%s11603_s3 + $0x38] sm:$0xff] }
  0x8d   :  { %v2023_v43 = vand.u32 4294901760, %v9575_v15 }
  0x8f   :  { %6921 = vmatmul.mubr.f32.vlgmr.msra.gmra.mrb[0].mxu1 %v9121_v20  ;;  %7074 = vmatmul.mubr.f32.gmra.mrb[2].mxu0 %v9127_v22  ;;  %v9585_v20 = vpack.c.bf16 %v2017_v44, %v2014_v11  ;;  %v2020_v22 = vand.u32 4294901760, %v9570_v19 }
  0x90   :  { %6923 = vmatprep.mubr.f32.mxu1 %v9132_v23  ;;  %7076 = vmatprep.mubr.f32.mxu0 %v9134_v24  ;;  %v9594_v23 = vld [vmem:[%s11603_s3 + $0x40] sm:$0xff]  ;;  %v9599_v24 = vld [vmem:[%s11603_s3 + $0x48] sm:$0xff] }
  0x91   :  { %8081 = vmatpush3.bf16.msra.mxu1 %v9469_v49  ;;  %11976 = vst [vmem:[#allocation21_spill] sm:$0xff] %v9585_v20  ;;  %v2029_v0 = vand.u32 4294901760, %v9599_v24 }
  0x92   :  { %8083 = vmatprep.subr.bf16.mxu1 %v9561_v10 }
  0x93   :  { %6924 = vmatmul.mubr.f32.gmra.mrb[2].mxu1 %v9143_v30  ;;  %7077 = vmatmul.mubr.f32.gmra.mrb[4].mxu0 %v9136_v25  ;;  %v9609_v25 = vpack.c.bf16 %v2023_v43, %v2020_v22  ;;  %v2026_v30 = vand.u32 4294901760, %v9594_v23 }
  0x94   :  { %6926 = vmatprep.mubr.f32.mxu1 %v9147_v32  ;;  %7079 = vmatprep.mubr.f32.mxu0 %v9152_v34  ;;  %v9618_v32 = vld [vmem:[%s11603_s3 + $0x50] sm:$0xff]  ;;  %v9623_v34 = vld [vmem:[%s11603_s3 + $0x58] sm:$0xff] }
  0x95   :  { %8085 = vmatpush3.bf16.msra.mxu1 %v9561_v10  ;;  %11977 = vst [vmem:[#allocation22_spill] sm:$0xff] %v9609_v25  ;;  %v2035_v35 = vand.u32 4294901760, %v9623_v34 }
  0x96   :  { %8087 = vmatprep.subr.bf16.mxu1 %v9585_v20 }
  0x97   :  { %6927 = vmatmul.mubr.f32.gmra.mrb[4].mxu1 %v9150_v33  ;;  %7080 = vmatmul.mubr.f32.gmra.mrb[6].mxu0 %v9187_v62  ;;  %v9633_v33 = vpack.c.bf16 %v2029_v0, %v2026_v30  ;;  %v2032_v62 = vand.u32 4294901760, %v9618_v32 }
  0x98   :  { %6929 = vmatprep.mubr.f32.mxu1 %v9162_v42  ;;  %7082 = vmatprep.mubr.f32.mxu0 %v9196_v2  ;;  %v11980_v42 = vld [vmem:[#allocation3_spill] sm:$0xff] }
  0x99   :  { %8089 = vmatpush3.bf16.msra.mxu1 %v9585_v20  ;;  %11978 = vst [vmem:[#allocation23_spill] sm:$0xff] %v9633_v33  ;;  %v9647_v2 = vpack.c.bf16 %v2035_v35, %v2032_v62 }
  0x9a   :  { %8091 = vmatprep.subr.bf16.mxu1 %v9609_v25 }
  0x9b   :  { %6930 = vmatmul.mubr.f32.gmra.mrb[6].mxu1 %v11979_v52  ;;  %7083 = vmatmul.mubr.f32.gmra.mrb[8].mxu0 %v9198_v3  ;;  %11981 = vst [vmem:[#allocation2_spill] sm:$0xff] %v9647_v2  ;;  %v11984_v3 = vld [vmem:[#allocation6_spill] sm:$0xff]  ;;  %v11986_v52 = vld [vmem:[#allocation8_spill] sm:$0xff] }
  0x9c   :  { %6932 = vmatprep.mubr.f32.mxu1 %v11980_v42  ;;  %7085 = vmatprep.mubr.f32.mxu0 %v9205_v8  ;;  %v11985_v8 = vld [vmem:[#allocation7_spill] sm:$0xff] }
  0x9d   :  { %8093 = vmatpush3.bf16.msra.mxu1 %v9609_v25  ;;  %v11989_v42 = vld [vmem:[#allocation11_spill] sm:$0xff] }
  0x9e   :  { %8095 = vmatprep.subr.bf16.mxu1 %v9633_v33 }
  0x9f   :  { %6933 = vmatmul.mubr.f32.gmra.mrb[8].mxu1 %v11982_v63  ;;  %7086 = vmatmul.mubr.f32.gmra.mrb[10].mxu0 %v9207_v12  ;;  %v11987_v12 = vld [vmem:[#allocation9_spill] sm:$0xff] }
  0xa0   :  { %6935 = vmatprep.mubr.f32.mxu1 %v11983_v16  ;;  %7088 = vmatprep.mubr.f32.mxu0 %v9228_v29  ;;  %v11988_v29 = vld [vmem:[#allocation10_spill] sm:$0xff] }
  0xa1   :  { %8097 = vmatpush3.bf16.msra.mxu1 %v9633_v33 }
  0xa2   :  { %8099 = vmatprep.subr.bf16.mxu1 %v9647_v2 }
  0xa3   :  { %6936 = vmatmul.mubr.f32.gmra.mrb[10].mxu1 %v11984_v3  ;;  %7089 = vmatmul.mubr.f32.gmra.mrb[12].mxu0 %v9232_v36  ;;  %v11990_v36 = vld [vmem:[#allocation12_spill] sm:$0xff] }
  0xa4   :  { %6938 = vmatprep.mubr.f32.mxu1 %v11985_v8  ;;  %7091 = vmatprep.mubr.f32.mxu0 %v9245_v45  ;;  %v11991_v45 = vld [vmem:[#allocation13_spill] sm:$0xff] }
  0xa5   :  { %8101 = vmatpush3.bf16.msra.mxu1 %v9647_v2 }
  0xa7   :  { %6939 = vmatmul.mubr.f32.gmra.mrb[12].mxu1 %v11986_v52  ;;  %7092 = vmatmul.mubr.f32.gmra.mrb[14].mxu0 %v9269_v60  ;;  %v11992_v60 = vld [vmem:[#allocation14_spill] sm:$0xff] }
  0xa8   :  { %6941 = vmatprep.mubr.f32.mxu1 %v11987_v12  ;;  %7094 = vmatprep.mubr.f32.mxu0 %v9278_v4  ;;  %v11993_v4 = vld [vmem:[#allocation15_spill] sm:$0xff] }
  0xab   :  { %6942 = vmatmul.mubr.f32.gmra.mrb[14].mxu1 %v11988_v29  ;;  %7095 = vmatmul.mubr.f32.gmra.mrb[16].mxu0 %v9286_v26  ;;  %v11994_v26 = vld [vmem:[#allocation16_spill] sm:$0xff] }
  0xac   :  { %6944 = vmatprep.mubr.f32.mxu1 %v11989_v42  ;;  %7097 = vmatprep.mubr.f32.mxu0 %v9294_v37  ;;  %v11995_v37 = vld [vmem:[#allocation17_spill] sm:$0xff] }
  0xaf   :  { %6945 = vmatmul.mubr.f32.gmra.mrb[16].mxu1 %v11990_v36  ;;  %7098 = vmatmul.mubr.f32.gmra.mrb[18].mxu0 %v9307_v51  ;;  %v11996_v51 = vld [vmem:[#allocation18_spill] sm:$0xff] }
  0xb0   :  { %6947 = vmatprep.mubr.f32.mxu1 %v11991_v45  ;;  %7100 = vmatprep.mubr.f32.mxu0 %v9314_v61  ;;  %v11997_v61 = vld [vmem:[#allocation19_spill] sm:$0xff]  ;;  %v9762_v45 = vsub.f32 %v9532_v9, %v2008_v38  ;;  %v9795_v38 = vsub.f32 %v9575_v15, %v2023_v43  ;;  %v9824_v15 = vsub.f32 %v9623_v34, %v2035_v35 }
  0xb2   :  { %12004 = vst [vmem:[#allocation9_spill] sm:$0xff] %v9762_v45  ;;  %12009 = vst [vmem:[#allocation14_spill] sm:$0xff] %v9795_v38 }
  0xb3   :  { %6948 = vmatmul.mubr.f32.gmra.mrb[18].mxu1 %v11992_v60  ;;  %7101 = vmatmul.mubr.f32.gmra.mrb[20].mxu0 %v9320_v5  ;;  %v9767_v60 = vsub.f32 %v9537_v21, %v2011_v28  ;;  %v9790_v21 = vsub.f32 %v9570_v19, %v2020_v22  ;;  %v9819_v19 = vsub.f32 %v9618_v32, %v2032_v62 }
  0xb4   :  { %6950 = vmatprep.mubr.f32.mxu1 %v11993_v4  ;;  %7103 = vmatprep.mubr.f32.mxu0 %v9327_v17  ;;  %v1992_v17 = vld [vmem:[%s11603_s3 + $0x70] sm:$0xff]  ;;  %12013 = vst [vmem:[#allocation18_spill] sm:$0xff] %v9824_v15 }
  0xb5   :  { %12005 = vst [vmem:[#allocation10_spill] sm:$0xff] %v9767_v60  ;;  %v9771_v4 = vpack.c.bf16 %v9767_v60, %v9762_v45  ;;  %12008 = vst [vmem:[#allocation13_spill] sm:$0xff] %v9790_v21  ;;  %v9799_v28 = vpack.c.bf16 %v9795_v38, %v9790_v21  ;;  %v11633_v22 = vand.u32 4294901760, %v9767_v60 }
  0xb6   :  { %12012 = vst [vmem:[#allocation17_spill] sm:$0xff] %v9819_v19 }
  0xb7   :  { %6951 = vmatmul.mubr.f32.gmra.mrb[20].mxu1 %v11994_v26  ;;  %7104 = vmatmul.mubr.f32.gmra.mrb[22].mxu0 %v9347_v59  ;;  %v2044_v59 = vand.u32 4294901760, %v1992_v17  ;;  %v9776_v26 = vsub.f32 %v9548_v53, %v2014_v11  ;;  %v9804_v53 = vsub.f32 %v9594_v23, %v2026_v30 }
  0xb8   :  { %6953 = vmatprep.mubr.f32.mxu1 %v11995_v37  ;;  %7106 = vmatprep.mubr.f32.mxu0 %v9355_v54  ;;  %v9781_v37 = vsub.f32 %v9553_v50, %v2017_v44  ;;  %v9809_v50 = vsub.f32 %v9599_v24, %v2029_v0  ;;  %v11634_v44 = vand.u32 4294901760, %v9762_v45  ;;  %v9831_v24 = vpack.c.bf16 %v9824_v15, %v9819_v19 }
  0xb9   :  { %v9746_v3 = vsub.f32 %v1992_v17, %v2044_v59  ;;  %12006 = vst [vmem:[#allocation11_spill] sm:$0xff] %v9776_v26  ;;  %12010 = vst [vmem:[#allocation15_spill] sm:$0xff] %v9804_v53  ;;  %v11632_v43 = vand.u32 4294901760, %v9776_v26  ;;  %v2427_v0 = vsub.f32 %v9767_v60, %v11633_v22 }
  0xba   :  { %12007 = vst [vmem:[#allocation12_spill] sm:$0xff] %v9781_v37  ;;  %v9785_v9 = vpack.c.bf16 %v9781_v37, %v9776_v26  ;;  %12011 = vst [vmem:[#allocation16_spill] sm:$0xff] %v9809_v50  ;;  %v9813_v11 = vpack.c.bf16 %v9809_v50, %v9804_v53  ;;  %v11629_v23 = vand.u32 4294901760, %v9781_v37  ;;  %v2420_v30 = vsub.f32 %v9762_v45, %v11634_v44 }
  0xbb   :  { %6954 = vmatmul.mubr.f32.gmra.mrb[22].mxu1 %v11996_v51  ;;  %7107 = vmatmul.mubr.f32.gmra.mrb[24].mxu0 %v9376_v57  ;;  %v2434_v32 = vsub.f32 %v9776_v26, %v11632_v43  ;;  %v11630_v51 = vand.u32 4294901760, %v9790_v21  ;;  %v2428_v17 = vand.u32 4294901760, %v2427_v0 }
  0xbc   :  { %6956 = vmatprep.mubr.f32.mxu1 %v11997_v61  ;;  %7109 = vmatprep.mubr.f32.mxu0 %v9379_v27  ;;  %v1990_v27 = vld [vmem:[%s11603_s3 + $0x60] sm:$0xff]  ;;  %v2441_v62 = vsub.f32 %v9781_v37, %v11629_v23  ;;  %v11631_v61 = vand.u32 4294901760, %v9795_v38 }
  0xbd   :  { %v2038_v57 = vand.u32 4294901760, %v1990_v27  ;;  %v2448_v0 = vsub.f32 %v9790_v21, %v11630_v51 }
  0xbf   :  { %6957 = vmatmul.mubr.f32.gmra.mrb[24].mxu1 %v9394_v56  ;;  %7110 = vmatmul.mubr.f32.gmra.mrb[26].mxu0 %v9396_v58  ;;  %v1993_v58 = vld [vmem:[%s11603_s3 + $0x78] sm:$0xff]  ;;  %v9719_v56 = vsub.f32 %v9453_v1, %v2002_v46 }
  0xc0   :  { %6959 = vmatprep.mubr.f32.mxu1 %v9399_v7  ;;  %7112 = vmatprep.mubr.f32.mxu0 %v9401_v18  ;;  %v1991_v18 = vld [vmem:[%s11603_s3 + $0x68] sm:$0xff]  ;;  %v2047_v54 = vand.u32 4294901760, %v1993_v58 }
  0xc1   :  { %v2041_v5 = vand.u32 4294901760, %v1991_v18  ;;  %12000 = vst [vmem:[#allocation5_spill] sm:$0xff] %v9719_v56 }
  0xc2   :  { %v9748_v8 = vsub.f32 %v1993_v58, %v2047_v54  ;;  %v2435_v58 = vand.u32 4294901760, %v2434_v32  ;;  %v2455_v32 = vsub.f32 %v9795_v38, %v11631_v61 }
  0xc3   :  { %6960 = vmatmul.mubr.f32.gmra.mrb[26].mxu1 %v9412_v31  ;;  %7113 = vmatmul.mubr.f32.gmra.mrb[28].mxu0 %v9414_v47  ;;  %v9702_v7 = vpack.c.bf16 %v2041_v5, %v2038_v57  ;;  %v9724_v31 = vsub.f32 %v9458_v55, %v2005_v14  ;;  %v11640_v47 = vand.u32 4294901760, %v9719_v56  ;;  %v9737_v55 = vsub.f32 %v1990_v27, %v2038_v57  ;;  %v9850_v27 = vld [vmem:[%s11604_s2] ss:$0 sm:$0xff] }
  0xc4   :  { %6962 = vmatprep.mubr.f32.mxu1 %v9418_v13  ;;  %7115 = vmatprep.mubr.f32.mxu0 %v9420_v40  ;;  %v9739_v46 = vsub.f32 %v1991_v18, %v2041_v5  ;;  %v2421_v18 = vand.u32 4294901760, %v2420_v30  ;;  %v11637_v57 = vand.u32 4294901760, %v9804_v53  ;;  %v11635_v5 = vand.u32 4294901760, %v9809_v50 }
  0xc5   :  { %11998 = vst [vmem:[#allocation3_spill] sm:$0xff] %v9702_v7  ;;  %8103 = vmatprep.subr.bf16.mxu1 %v9702_v7  ;;  %12001 = vst [vmem:[#allocation6_spill] sm:$0xff] %v9724_v31  ;;  %v11639_v13 = vand.u32 4294901760, %v9724_v31  ;;  %v2406_v40 = vsub.f32 %v9719_v56, %v11640_v47  ;;  %v11628_v14 = vand.u32 4294901760, %v9737_v55  ;;  %v9757_v36 = vpack.c.bf16 %v9724_v31, %v9719_v56 }
  0xc6   :  { %8105 = vmatpush3.bf16.msra.mxu1 %v9702_v7  ;;  %12002 = vst [vmem:[#allocation7_spill] sm:$0xff] %v9737_v55  ;;  %12003 = vst [vmem:[#allocation8_spill] sm:$0xff] %v9739_v46  ;;  %v11627_v63 = vand.u32 4294901760, %v9739_v46  ;;  %v9876_v23 = vpack.c.bf16 %v2428_v17, %v2421_v18 }
  0xc7   :  { %6963 = vmatmul.mubr.f32.gmra.mrb[28].mxu1 %v9426_v39  ;;  %7116 = vmatmul.mubr.f32.gmra.mrb[30].mxu0 %v9428_v48  ;;  %v9712_v39 = vpack.c.bf16 %v2047_v54, %v2044_v59  ;;  %v2413_v48 = vsub.f32 %v9724_v31, %v11639_v13  ;;  %v2490_v16 = vsub.f32 %v9737_v55, %v11628_v14  ;;  %v11636_v59 = vand.u32 4294901760, %v9819_v19 }
  0xc8   :  { %6965 = vmatprep.mubr.f32.mxu1 %v9433_v6  ;;  %v2407_v6 = vand.u32 4294901760, %v2406_v40  ;;  %v2497_v52 = vsub.f32 %v9739_v46, %v11627_v63  ;;  %v11638_v54 = vand.u32 4294901760, %v9824_v15  ;;  %v2462_v63 = vsub.f32 %v9804_v53, %v11637_v57 }
  0xc9   :  { %11999 = vst [vmem:[#allocation4_spill] sm:$0xff] %v9712_v39  ;;  %8107 = vmatprep.subr.bf16.mxu1 %v9712_v39  ;;  %v2491_v12 = vand.u32 4294901760, %v2490_v16  ;;  %v11644_v16 = vand.u32 4294901760, %v9748_v8  ;;  %v2476_v51 = vsub.f32 %v9819_v19, %v11636_v59  ;;  %v2449_v57 = vand.u32 4294901760, %v2448_v0 }
  0xca   :  { %8109 = vmatpush3.bf16.msra.mxu1 %v9712_v39  ;;  %v2498_v29 = vand.u32 4294901760, %v2497_v52  ;;  %v9860_v52 = vpack.c.bf16 %v9739_v46, %v9737_v55  ;;  %v2483_v61 = vsub.f32 %v9824_v15, %v11638_v54  ;;  %v2456_v54 = vand.u32 4294901760, %v2455_v32 }
  0xcb   :  { %6966 = vmatmul.mubr.f32.gmra.mrb[30].mxu1 %v9438_v41  ;;  %v2414_v41 = vand.u32 4294901760, %v2413_v48 }
  0xcc   :  { %v9753_v42 = vpack.c.bf16 %v2498_v29, %v2491_v12  ;;  %v2484_v46 = vand.u32 4294901760, %v2483_v61 }
  0xcd   :  { %v9734_v1 = vpack.c.bf16 %v2414_v41, %v2407_v6  ;;  %v2442_v6 = vand.u32 4294901760, %v2441_v62  ;;  %v11641_v41 = vand.u32 4294901760, %v9746_v3 }
  0xcf   :  { %8111 = vmatprep.subr.bf16.mxu1 %v9734_v1  ;;  %v9884_v44 = vpack.c.bf16 %v2442_v6, %v2435_v58  ;;  %v2463_v58 = vand.u32 4294901760, %v2462_v63 }
 0x15e   :  { %v7072_v34 = vpop.f32.mrb[0].mxu0 }
 0x15f   :  { %v1756_v35 = vpop.f32.mrb[1].mxu0 }
 0x162   :  { %v6922_v40 = vpop.f32.mrb[0].mxu1  ;;  %v7075_v48 = vpop.f32.mrb[2].mxu0 }
 0x163   :  { %v8462_v12 = vadd.f32 %v6922_v40, %v9850_v27  ;;  %v885_v29 = vpop.f32.mrb[1].mxu1  ;;  %v1768_v30 = vpop.f32.mrb[3].mxu0  ;;  %v2469_v40 = vsub.f32 %v9809_v50, %v11635_v5  ;;  %v2504_v5 = vsub.f32 %v9746_v3, %v11641_v41  ;;  %v2477_v41 = vand.u32 4294901760, %v2476_v51 }
 0x164   :  { %v8464_v62 = vadd.f32 %v9850_v27, %v885_v29 }
 0x165   :  { %v8463_v14 = vadd.f32 %v8462_v12, %v7072_v34  ;;  %v2511_v34 = vsub.f32 %v9748_v8, %v11644_v16  ;;  %v2470_v6 = vand.u32 4294901760, %v2469_v40 }
 0x166   :  { %v8465_v29 = vadd.f32 %v8464_v62, %v1756_v35  ;;  %v6925_v43 = vpop.f32.mrb[2].mxu1  ;;  %v7078_v22 = vpop.f32.mrb[4].mxu0 }
 0x167   :  { %v1947_v18 = vmax.f32 %v8463_v14, 0.0  ;;  %v8466_v17 = vadd.f32 %v6925_v43, %v9850_v27  ;;  %v899_v12 = vpop.f32.mrb[3].mxu1  ;;  %v1780_v59 = vpop.f32.mrb[5].mxu0  ;;  %v2505_v43 = vand.u32 4294901760, %v2504_v5  ;;  %v2512_v19 = vand.u32 4294901760, %v2511_v34 }
 0x168   :  { %v1946_v35 = vmax.f32 %v8465_v29, 0.0  ;;  %v8468_v62 = vadd.f32 %v9850_v27, %v899_v12  ;;  %v9902_v12 = vpack.c.bf16 %v2456_v54, %v2449_v57 }
 0x169   :  { %v9894_v13 = vand.u32 4294901760, %v1947_v18  ;;  %v8467_v47 = vadd.f32 %v8466_v17, %v7075_v48 }
 0x16a   :  { %v9896_v55 = vand.u32 4294901760, %v1946_v35  ;;  %v8469_v16 = vadd.f32 %v8468_v62, %v1768_v30  ;;  %v6928_v14 = vpop.f32.mrb[4].mxu1  ;;  %v7081_v15 = vpop.f32.mrb[6].mxu0  ;;  %v9908_v30 = vpack.c.bf16 %v2470_v6, %v2463_v58 }
 0x16b   :  { %v9899_v0 = vsub.f32 %v1947_v18, %v9894_v13  ;;  %v1949_v32 = vmax.f32 %v8467_v47, 0.0  ;;  %v8470_v29 = vadd.f32 %v6928_v14, %v9850_v27  ;;  %v913_v63 = vpop.f32.mrb[5].mxu1  ;;  %v1792_v40 = vpop.f32.mrb[7].mxu0  ;;  %v9913_v47 = vpack.c.bf16 %v2484_v46, %v2477_v41 }
 0x16c   :  { %v9905_v51 = vsub.f32 %v1946_v35, %v9896_v55  ;;  %v1948_v61 = vmax.f32 %v8469_v16, 0.0  ;;  %v8472_v48 = vadd.f32 %v9850_v27, %v913_v63  ;;  %v9918_v14 = vpack.c.bf16 %v2512_v19, %v2505_v43 }
 0x16d   :  { %12014 = vst [vmem:[#allocation19_spill] sm:$0xff] %v9899_v0  ;;  %v11647_v5 = vand.u32 4294901760, %v9899_v0  ;;  %v9911_v34 = vand.u32 4294901760, %v1949_v32  ;;  %v8471_v18 = vadd.f32 %v8470_v29, %v7078_v22 }
 0x16e   :  { %v9915_v17 = vand.u32 4294901760, %v1948_v61  ;;  %v8473_v62 = vadd.f32 %v8472_v48, %v1780_v59  ;;  %v6931_v57 = vpop.f32.mrb[6].mxu1  ;;  %v7084_v54 = vpop.f32.mrb[8].mxu0  ;;  %v11651_v35 = vand.u32 4294901760, %v9905_v51 }
 0x16f   :  { %v2095_v16 = vsub.f32 %v9899_v0, %v11647_v5  ;;  %v9924_v58 = vsub.f32 %v1949_v32, %v9911_v34  ;;  %v1951_v6 = vmax.f32 %v8471_v18, 0.0  ;;  %v8474_v46 = vadd.f32 %v6931_v57, %v9850_v27  ;;  %v927_v22 = vpop.f32.mrb[7].mxu1  ;;  %v1804_v41 = vpop.f32.mrb[9].mxu0 }
 0x170   :  { %v9928_v59 = vsub.f32 %v1948_v61, %v9915_v17  ;;  %v1950_v29 = vmax.f32 %v8473_v62, 0.0  ;;  %v8476_v63 = vadd.f32 %v9850_v27, %v927_v22  ;;  %v2085_v19 = vsub.f32 %v9905_v51, %v11651_v35 }
 0x171   :  { %12015 = vst [vmem:[#allocation24_spill] sm:$0xff] %v9924_v58  ;;  %v2096_v43 = vand.u32 4294901760, %v2095_v16  ;;  %v9934_v48 = vand.u32 4294901760, %v1951_v6  ;;  %v8475_v32 = vadd.f32 %v8474_v46, %v7081_v15  ;;  %v11655_v18 = vand.u32 4294901760, %v9924_v58 }
 0x172   :  { %12016 = vst [vmem:[#allocation25_spill] sm:$0xff] %v9928_v59  ;;  %v9937_v5 = vand.u32 4294901760, %v1950_v29  ;;  %v8477_v57 = vadd.f32 %v8476_v63, %v1792_v40  ;;  %v6934_v50 = vpop.f32.mrb[8].mxu1  ;;  %v7087_v53 = vpop.f32.mrb[10].mxu0  ;;  %v2086_v61 = vand.u32 4294901760, %v2085_v19  ;;  %v11657_v62 = vand.u32 4294901760, %v9928_v59 }
 0x173   :  { %v9941_v22 = vsub.f32 %v1951_v6, %v9934_v48  ;;  %v1953_v38 = vmax.f32 %v8475_v32, 0.0  ;;  %v8478_v35 = vadd.f32 %v6934_v50, %v9850_v27  ;;  %v941_v16 = vpop.f32.mrb[9].mxu1  ;;  %v1816_v21 = vpop.f32.mrb[11].mxu0  ;;  %v2115_v15 = vsub.f32 %v9924_v58, %v11655_v18 }
 0x174   :  { %v9948_v46 = vsub.f32 %v1950_v29, %v9937_v5  ;;  %v1952_v40 = vmax.f32 %v8477_v57, 0.0  ;;  %v8480_v63 = vadd.f32 %v9850_v27, %v941_v16  ;;  %7150 = vmatprep.mubr.f32.mxu1 %v2086_v61  ;;  %v2105_v6 = vsub.f32 %v9928_v59, %v11657_v62 }
 0x175   :  { %12017 = vst [vmem:[#allocation26_spill] sm:$0xff] %v9941_v22  ;;  %v9954_v19 = vand.u32 4294901760, %v1953_v38  ;;  %v8479_v50 = vadd.f32 %v8478_v35, %v7084_v54  ;;  %7151 = vmatmul.mubr.f32.vlgmr.msra.gmra.mrb[32].mxu1 %v2096_v43  ;;  %v2116_v32 = vand.u32 4294901760, %v2115_v15  ;;  %v11660_v37 = vand.u32 4294901760, %v9941_v22 }
 0x176   :  { %12018 = vst [vmem:[#allocation27_spill] sm:$0xff] %v9948_v46  ;;  %v9957_v26 = vand.u32 4294901760, %v1952_v40  ;;  %v8481_v18 = vadd.f32 %v8480_v63, %v1804_v41  ;;  %8113 = vmatpush3.bf16.msra.mxu1 %v9734_v1  ;;  %v6937_v29 = vpop.f32.mrb[10].mxu1  ;;  %v7090_v57 = vpop.f32.mrb[12].mxu0  ;;  %v2106_v16 = vand.u32 4294901760, %v2105_v6  ;;  %v11662_v61 = vand.u32 4294901760, %v9948_v46 }
 0x177   :  { %v9962_v60 = vsub.f32 %v1953_v38, %v9954_v19  ;;  %v1955_v62 = vmax.f32 %v8479_v50, 0.0  ;;  %v8482_v54 = vadd.f32 %v6937_v29, %v9850_v27  ;;  %v955_v35 = vpop.f32.mrb[11].mxu1  ;;  %v1828_v43 = vpop.f32.mrb[13].mxu0  ;;  %8115 = vmatprep.subr.bf16.mxu1 %v9876_v23  ;;  %v2135_v41 = vsub.f32 %v9941_v22, %v11660_v37 }
 0x178   :  { %v9970_v1 = vsub.f32 %v1952_v40, %v9957_v26  ;;  %v1954_v15 = vmax.f32 %v8481_v18, 0.0  ;;  %v8484_v63 = vadd.f32 %v9850_v27, %v955_v35  ;;  %7153 = vmatprep.mubr.f32.mxu1 %v2106_v16  ;;  %v2125_v38 = vsub.f32 %v9948_v46, %v11662_v61 }
 0x179   :  { %12019 = vst [vmem:[#allocation28_spill] sm:$0xff] %v9962_v60  ;;  %v9976_v6 = vand.u32 4294901760, %v1955_v62  ;;  %v8483_v50 = vadd.f32 %v8482_v54, %v7087_v53  ;;  %7154 = vmatmul.mubr.f32.gmra.mrb[34].mxu1 %v2116_v32  ;;  %v2136_v29 = vand.u32 4294901760, %v2135_v41  ;;  %v11663_v45 = vand.u32 4294901760, %v9962_v60 }
 0x17a   :  { %12020 = vst [vmem:[#allocation29_spill] sm:$0xff] %v9970_v1  ;;  %v9979_v31 = vand.u32 4294901760, %v1954_v15  ;;  %v8485_v37 = vadd.f32 %v8484_v63, %v1816_v21  ;;  %v6940_v40 = vpop.f32.mrb[12].mxu1  ;;  %v7093_v56 = vpop.f32.mrb[14].mxu0  ;;  %v2126_v18 = vand.u32 4294901760, %v2125_v38  ;;  %8117 = vmatpush3.bf16.msra.mxu1 %v9876_v23  ;;  %v11670_v16 = vand.u32 4294901760, %v9970_v1 }
 0x17b   :  { %v9984_v35 = vsub.f32 %v1955_v62, %v9976_v6  ;;  %v1957_v61 = vmax.f32 %v8483_v50, 0.0  ;;  %v8486_v53 = vadd.f32 %v6940_v40, %v9850_v27  ;;  %v969_v32 = vpop.f32.mrb[13].mxu1  ;;  %v1840_v54 = vpop.f32.mrb[15].mxu0  ;;  %v2155_v41 = vsub.f32 %v9962_v60, %v11663_v45  ;;  %8119 = vmatprep.subr.bf16.mxu1 %v9884_v44 }
 0x17c   :  { %v9992_v21 = vsub.f32 %v1954_v15, %v9979_v31  ;;  %v1956_v23 = vmax.f32 %v8485_v37, 0.0  ;;  %v8488_v63 = vadd.f32 %v9850_v27, %v969_v32  ;;  %7156 = vmatprep.mubr.f32.mxu1 %v2126_v18  ;;  %v2145_v62 = vsub.f32 %v9970_v1, %v11670_v16 }
 0x17d   :  { %12021 = vst [vmem:[#allocation30_spill] sm:$0xff] %v9984_v35  ;;  %v9998_v38 = vand.u32 4294901760, %v1957_v61  ;;  %v8487_v50 = vadd.f32 %v8486_v53, %v7090_v57  ;;  %7157 = vmatmul.mubr.f32.gmra.mrb[36].mxu1 %v2136_v29  ;;  %v2156_v40 = vand.u32 4294901760, %v2155_v41  ;;  %v11671_v45 = vand.u32 4294901760, %v9984_v35 }
 0x17e   :  { %12022 = vst [vmem:[#allocation31_spill] sm:$0xff] %v9992_v21  ;;  %v10001_v39 = vand.u32 4294901760, %v1956_v23  ;;  %v8489_v7 = vadd.f32 %v8488_v63, %v1828_v43  ;;  %v6943_v15 = vpop.f32.mrb[14].mxu1  ;;  %v7096_v2 = vpop.f32.mrb[16].mxu0  ;;  %v2146_v37 = vand.u32 4294901760, %v2145_v62  ;;  %v11678_v32 = vand.u32 4294901760, %v9992_v21  ;;  %8121 = vmatpush3.bf16.msra.mxu1 %v9884_v44 }
 0x17f   :  { %12023 = vst [vmem:[#allocation32_spill] sm:$0xff] %v9998_v38  ;;  %v10006_v18 = vsub.f32 %v1957_v61, %v9998_v38  ;;  %v1959_v16 = vmax.f32 %v8487_v50, 0.0  ;;  %v8490_v57 = vadd.f32 %v6943_v15, %v9850_v27  ;;  %v983_v29 = vpop.f32.mrb[15].mxu1  ;;  %v1852_v53 = vpop.f32.mrb[17].mxu0  ;;  %v2175_v41 = vsub.f32 %v9984_v35, %v11671_v45  ;;  %8123 = vmatprep.subr.bf16.mxu1 %v9902_v12 }
 0x180   :  { %v10014_v43 = vsub.f32 %v1956_v23, %v10001_v39  ;;  %v1958_v63 = vmax.f32 %v8489_v7, 0.0  ;;  %v8492_v44 = vadd.f32 %v9850_v27, %v983_v29  ;;  %7159 = vmatprep.mubr.f32.mxu1 %v2146_v37  ;;  %v2165_v61 = vsub.f32 %v9992_v21, %v11678_v32 }
 0x181   :  { %12024 = vst [vmem:[#allocation33_spill] sm:$0xff] %v10006_v18  ;;  %v10020_v62 = vand.u32 4294901760, %v1959_v16  ;;  %v8491_v50 = vadd.f32 %v8490_v57, %v7093_v56  ;;  %7160 = vmatmul.mubr.f32.gmra.mrb[38].mxu1 %v2156_v40  ;;  %v2176_v15 = vand.u32 4294901760, %v2175_v41  ;;  %v11679_v45 = vand.u32 4294901760, %v10006_v18 }
 0x182   :  { %12025 = vst [vmem:[#allocation34_spill] sm:$0xff] %v10014_v43  ;;  %v10023_v35 = vand.u32 4294901760, %v1958_v63  ;;  %v8493_v33 = vadd.f32 %v8492_v44, %v1840_v54  ;;  %v6946_v23 = vpop.f32.mrb[16].mxu1  ;;  %v7099_v60 = vpop.f32.mrb[18].mxu0  ;;  %v2166_v7 = vand.u32 4294901760, %v2165_v61  ;;  %v11686_v29 = vand.u32 4294901760, %v10014_v43  ;;  %8125 = vmatpush3.bf16.msra.mxu1 %v9902_v12 }
 0x183   :  { %12026 = vst [vmem:[#allocation35_spill] sm:$0xff] %v10020_v62  ;;  %v10028_v37 = vsub.f32 %v1959_v16, %v10020_v62  ;;  %v1961_v32 = vmax.f32 %v8491_v50, 0.0  ;;  %v8494_v56 = vadd.f32 %v6946_v23, %v9850_v27  ;;  %v997_v40 = vpop.f32.mrb[17].mxu1  ;;  %v1864_v57 = vpop.f32.mrb[19].mxu0  ;;  %v2195_v41 = vsub.f32 %v10006_v18, %v11679_v45  ;;  %8127 = vmatprep.subr.bf16.mxu1 %v9908_v30 }
 0x184   :  { %12027 = vst [vmem:[#allocation36_spill] sm:$0xff] %v10023_v35  ;;  %v10036_v54 = vsub.f32 %v1958_v63, %v10023_v35  ;;  %v1960_v44 = vmax.f32 %v8493_v33, 0.0  ;;  %v8496_v12 = vadd.f32 %v9850_v27, %v997_v40  ;;  %7162 = vmatprep.mubr.f32.mxu1 %v2166_v7  ;;  %v2185_v16 = vsub.f32 %v10014_v43, %v11686_v29 }
 0x185   :  { %12028 = vst [vmem:[#allocation37_spill] sm:$0xff] %v10028_v37  ;;  %v10042_v61 = vand.u32 4294901760, %v1961_v32  ;;  %v8495_v50 = vadd.f32 %v8494_v56, %v7096_v2  ;;  %7163 = vmatmul.mubr.f32.gmra.mrb[40].mxu1 %v2176_v15  ;;  %v2196_v23 = vand.u32 4294901760, %v2195_v41  ;;  %v11687_v45 = vand.u32 4294901760, %v10028_v37 }
 0x186   :  { %12029 = vst [vmem:[#allocation38_spill] sm:$0xff] %v10036_v54  ;;  %v10045_v18 = vand.u32 4294901760, %v1960_v44  ;;  %v8497_v21 = vadd.f32 %v8496_v12, %v1852_v53  ;;  %v6949_v63 = vpop.f32.mrb[18].mxu1  ;;  %v7102_v25 = vpop.f32.mrb[20].mxu0  ;;  %v2186_v33 = vand.u32 4294901760, %v2185_v16  ;;  %v11694_v40 = vand.u32 4294901760, %v10036_v54  ;;  %8129 = vmatpush3.bf16.msra.mxu1 %v9908_v30 }
 0x187   :  { %12030 = vst [vmem:[#allocation39_spill] sm:$0xff] %v10042_v61  ;;  %v10050_v7 = vsub.f32 %v1961_v32, %v10042_v61  ;;  %v1963_v29 = vmax.f32 %v8495_v50, 0.0  ;;  %v8498_v2 = vadd.f32 %v6949_v63, %v9850_v27  ;;  %v1011_v15 = vpop.f32.mrb[19].mxu1  ;;  %v1876_v56 = vpop.f32.mrb[21].mxu0  ;;  %v2215_v41 = vsub.f32 %v10028_v37, %v11687_v45  ;;  %8131 = vmatprep.subr.bf16.mxu1 %v9913_v47 }
 0x188   :  { %12031 = vst [vmem:[#allocation40_spill] sm:$0xff] %v10045_v18  ;;  %v10058_v53 = vsub.f32 %v1960_v44, %v10045_v18  ;;  %v1962_v12 = vmax.f32 %v8497_v21, 0.0  ;;  %v8500_v30 = vadd.f32 %v9850_v27, %v1011_v15  ;;  %7165 = vmatprep.mubr.f32.mxu1 %v2186_v33  ;;  %v2205_v32 = vsub.f32 %v10036_v54, %v11694_v40 }
 0x189   :  { %12032 = vst [vmem:[#allocation41_spill] sm:$0xff] %v10050_v7  ;;  %v10064_v16 = vand.u32 4294901760, %v1963_v29  ;;  %v8499_v50 = vadd.f32 %v8498_v2, %v7099_v60  ;;  %7166 = vmatmul.mubr.f32.gmra.mrb[42].mxu1 %v2196_v23  ;;  %v2216_v63 = vand.u32 4294901760, %v2215_v41  ;;  %v11695_v45 = vand.u32 4294901760, %v10050_v7 }
 0x18a   :  { %12033 = vst [vmem:[#allocation42_spill] sm:$0xff] %v10058_v53  ;;  %v10067_v37 = vand.u32 4294901760, %v1962_v12  ;;  %v8501_v43 = vadd.f32 %v8500_v30, %v1864_v57  ;;  %v6952_v44 = vpop.f32.mrb[20].mxu1  ;;  %v7105_v1 = vpop.f32.mrb[22].mxu0  ;;  %v2206_v21 = vand.u32 4294901760, %v2205_v32  ;;  %v11702_v15 = vand.u32 4294901760, %v10058_v53  ;;  %8133 = vmatpush3.bf16.msra.mxu1 %v9913_v47 }
 0x18b   :  { %12034 = vst [vmem:[#allocation43_spill] sm:$0xff] %v10064_v16  ;;  %v10072_v33 = vsub.f32 %v1963_v29, %v10064_v16  ;;  %v1965_v40 = vmax.f32 %v8499_v50, 0.0  ;;  %v8502_v60 = vadd.f32 %v6952_v44, %v9850_v27  ;;  %v1025_v23 = vpop.f32.mrb[21].mxu1  ;;  %v1888_v2 = vpop.f32.mrb[23].mxu0  ;;  %v2235_v41 = vsub.f32 %v10050_v7, %v11695_v45  ;;  %8135 = vmatprep.subr.bf16.mxu1 %v9753_v42 }
 0x18c   :  { %12035 = vst [vmem:[#allocation44_spill] sm:$0xff] %v10067_v37  ;;  %v10080_v57 = vsub.f32 %v1962_v12, %v10067_v37  ;;  %v1964_v30 = vmax.f32 %v8501_v43, 0.0  ;;  %v8504_v47 = vadd.f32 %v9850_v27, %v1025_v23  ;;  %7168 = vmatprep.mubr.f32.mxu1 %v2206_v21  ;;  %v2225_v29 = vsub.f32 %v10058_v53, %v11702_v15 }
 0x18d   :  { %12036 = vst [vmem:[#allocation45_spill] sm:$0xff] %v10072_v33  ;;  %v10086_v32 = vand.u32 4294901760, %v1965_v40  ;;  %v8503_v50 = vadd.f32 %v8502_v60, %v7102_v25  ;;  %7169 = vmatmul.mubr.f32.gmra.mrb[44].mxu1 %v2216_v63  ;;  %v2236_v44 = vand.u32 4294901760, %v2235_v41  ;;  %v11703_v45 = vand.u32 4294901760, %v10072_v33 }
 0x18e   :  { %12037 = vst [vmem:[#allocation46_spill] sm:$0xff] %v10080_v57  ;;  %v10089_v7 = vand.u32 4294901760, %v1964_v30  ;;  %v8505_v54 = vadd.f32 %v8504_v47, %v1876_v56  ;;  %v6955_v12 = vpop.f32.mrb[22].mxu1  ;;  %v7108_v22 = vpop.f32.mrb[24].mxu0  ;;  %v2226_v43 = vand.u32 4294901760, %v2225_v29  ;;  %v11710_v23 = vand.u32 4294901760, %v10080_v57  ;;  %8137 = vmatpush3.bf16.msra.mxu1 %v9753_v42 }
 0x18f   :  { %12038 = vst [vmem:[#allocation47_spill] sm:$0xff] %v10086_v32  ;;  %v10094_v21 = vsub.f32 %v1965_v40, %v10086_v32  ;;  %v1967_v15 = vmax.f32 %v8503_v50, 0.0  ;;  %v8506_v25 = vadd.f32 %v6955_v12, %v9850_v27  ;;  %v1039_v63 = vpop.f32.mrb[23].mxu1  ;;  %v1900_v60 = vpop.f32.mrb[25].mxu0  ;;  %v2255_v41 = vsub.f32 %v10072_v33, %v11703_v45  ;;  %8139 = vmatprep.subr.bf16.mxu1 %v9918_v14 }
 0x190   :  { %12039 = vst [vmem:[#allocation48_spill] sm:$0xff] %v10089_v7  ;;  %v10102_v56 = vsub.f32 %v1964_v30, %v10089_v7  ;;  %v1966_v47 = vmax.f32 %v8505_v54, 0.0  ;;  %v8508_v42 = vadd.f32 %v9850_v27, %v1039_v63  ;;  %7171 = vmatprep.mubr.f32.mxu1 %v2226_v43  ;;  %v2245_v40 = vsub.f32 %v10080_v57, %v11710_v23 }
 0x191   :  { %12040 = vst [vmem:[#allocation49_spill] sm:$0xff] %v10094_v21  ;;  %v10108_v29 = vand.u32 4294901760, %v1967_v15  ;;  %v8507_v50 = vadd.f32 %v8506_v25, %v7105_v1  ;;  %7172 = vmatmul.mubr.f32.gmra.mrb[46].mxu1 %v2236_v44  ;;  %v2256_v12 = vand.u32 4294901760, %v2255_v41  ;;  %v11711_v45 = vand.u32 4294901760, %v10094_v21 }
 0x192   :  { %12041 = vst [vmem:[#allocation50_spill] sm:$0xff] %v10102_v56  ;;  %v10111_v33 = vand.u32 4294901760, %v1966_v47  ;;  %v8509_v53 = vadd.f32 %v8508_v42, %v1888_v2  ;;  %v6958_v30 = vpop.f32.mrb[24].mxu1  ;;  %v7111_v20 = vpop.f32.mrb[26].mxu0  ;;  %v2246_v54 = vand.u32 4294901760, %v2245_v40  ;;  %v11720_v63 = vand.u32 4294901760, %v10102_v56  ;;  %8141 = vmatpush3.bf16.msra.mxu1 %v9918_v14 }
 0x193   :  { %12042 = vst [vmem:[#allocation51_spill] sm:$0xff] %v10108_v29  ;;  %v10116_v43 = vsub.f32 %v1967_v15, %v10108_v29  ;;  %v1969_v23 = vmax.f32 %v8507_v50, 0.0  ;;  %v8510_v1 = vadd.f32 %v6958_v30, %v9850_v27  ;;  %v1053_v44 = vpop.f32.mrb[25].mxu1  ;;  %v1912_v25 = vpop.f32.mrb[27].mxu0  ;;  %v2275_v41 = vsub.f32 %v10094_v21, %v11711_v45  ;;  %8143 = vmatprep.subr.bf16.mxu1 %v9757_v36 }
 0x194   :  { %12043 = vst [vmem:[#allocation52_spill] sm:$0xff] %v10111_v33  ;;  %v10124_v2 = vsub.f32 %v1966_v47, %v10111_v33  ;;  %v1968_v42 = vmax.f32 %v8509_v53, 0.0  ;;  %v8512_v14 = vadd.f32 %v9850_v27, %v1053_v44  ;;  %7174 = vmatprep.mubr.f32.mxu1 %v2246_v54  ;;  %v2265_v15 = vsub.f32 %v10102_v56, %v11720_v63 }
 0x195   :  { %12044 = vst [vmem:[#allocation53_spill] sm:$0xff] %v10116_v43  ;;  %v10130_v40 = vand.u32 4294901760, %v1969_v23  ;;  %v8511_v50 = vadd.f32 %v8510_v1, %v7108_v22  ;;  %7175 = vmatmul.mubr.f32.gmra.mrb[48].mxu1 %v2256_v12  ;;  %v2276_v30 = vand.u32 4294901760, %v2275_v41  ;;  %v11725_v45 = vand.u32 4294901760, %v10116_v43 }
 0x196   :  { %12045 = vst [vmem:[#allocation54_spill] sm:$0xff] %v10124_v2  ;;  %v10133_v21 = vand.u32 4294901760, %v1968_v42  ;;  %v8513_v57 = vadd.f32 %v8512_v14, %v1900_v60  ;;  %v6961_v47 = vpop.f32.mrb[26].mxu1  ;;  %v7114_v46 = vpop.f32.mrb[28].mxu0  ;;  %v2266_v53 = vand.u32 4294901760, %v2265_v15  ;;  %v11730_v44 = vand.u32 4294901760, %v10124_v2 }
 0x197   :  { %12046 = vst [vmem:[#allocation55_spill] sm:$0xff] %v10130_v40  ;;  %v10137_v54 = vsub.f32 %v1969_v23, %v10130_v40  ;;  %v1971_v58 = vmax.f32 %v8511_v50, 0.0  ;;  %v8514_v63 = vadd.f32 %v6961_v47, %v9850_v27  ;;  %v1067_v56 = vpop.f32.mrb[27].mxu1  ;;  %v1924_v22 = vpop.f32.mrb[29].mxu0  ;;  %v2295_v12 = vsub.f32 %v10116_v43, %v11725_v45 }
 0x198   :  { %12047 = vst [vmem:[#allocation56_spill] sm:$0xff] %v10133_v21  ;;  %v10144_v1 = vsub.f32 %v1968_v42, %v10133_v21  ;;  %v1970_v60 = vmax.f32 %v8513_v57, 0.0  ;;  %v8516_v41 = vadd.f32 %v9850_v27, %v1067_v56  ;;  %7177 = vmatprep.mubr.f32.mxu1 %v2266_v53  ;;  %v2285_v23 = vsub.f32 %v10124_v2, %v11730_v44 }
 0x199   :  { %12048 = vst [vmem:[#allocation57_spill] sm:$0xff] %v10137_v54  ;;  %v10150_v14 = vand.u32 4294901760, %v1971_v58  ;;  %v8515_v15 = vadd.f32 %v8514_v63, %v7111_v20  ;;  %7178 = vmatmul.mubr.f32.gmra.mrb[50].mxu1 %v2276_v30  ;;  %v2296_v50 = vand.u32 4294901760, %v2295_v12  ;;  %v11735_v47 = vand.u32 4294901760, %v10137_v54 }
 0x19a   :  { %12049 = vst [vmem:[#allocation58_spill] sm:$0xff] %v10144_v1  ;;  %v10153_v10 = vand.u32 4294901760, %v1970_v60  ;;  %v8517_v45 = vadd.f32 %v8516_v41, %v1912_v25  ;;  %v6964_v42 = vpop.f32.mrb[28].mxu1  ;;  %v7117_v43 = vpop.f32.mrb[30].mxu0  ;;  %v2286_v57 = vand.u32 4294901760, %v2285_v23  ;;  %v11738_v56 = vand.u32 4294901760, %v10144_v1 }
 0x19b   :  { %12050 = vst [vmem:[#allocation59_spill] sm:$0xff] %v10150_v14  ;;  %v10157_v53 = vsub.f32 %v1971_v58, %v10150_v14  ;;  %v1973_v59 = vmax.f32 %v8515_v15, 0.0  ;;  %v8518_v44 = vadd.f32 %v6964_v42, %v9850_v27  ;;  %v1081_v2 = vpop.f32.mrb[29].mxu1  ;;  %v1936_v20 = vpop.f32.mrb[31].mxu0  ;;  %v2315_v63 = vsub.f32 %v10137_v54, %v11735_v47 }
 0x19c   :  { %12051 = vst [vmem:[#allocation60_spill] sm:$0xff] %v10153_v10  ;;  %v10164_v30 = vsub.f32 %v1970_v60, %v10153_v10  ;;  %v1972_v25 = vmax.f32 %v8517_v45, 0.0  ;;  %v8520_v12 = vadd.f32 %v9850_v27, %v1081_v2  ;;  %7180 = vmatprep.mubr.f32.mxu1 %v2286_v57  ;;  %v2305_v58 = vsub.f32 %v10144_v1, %v11738_v56 }
 0x19d   :  { %v10170_v41 = vand.u32 4294901760, %v1973_v59  ;;  %v8519_v23 = vadd.f32 %v8518_v44, %v7114_v46  ;;  %7181 = vmatmul.mubr.f32.gmra.mrb[52].mxu1 %v2296_v50  ;;  %v2316_v15 = vand.u32 4294901760, %v2315_v63  ;;  %v11741_v42 = vand.u32 4294901760, %v10157_v53 }
 0x19e   :  { %v10173_v0 = vand.u32 4294901760, %v1972_v25  ;;  %v8521_v47 = vadd.f32 %v8520_v12, %v1924_v22  ;;  %v6967_v60 = vpop.f32.mrb[30].mxu1  ;;  %v2306_v54 = vand.u32 4294901760, %v2305_v58  ;;  %v11748_v45 = vand.u32 4294901760, %v10164_v30 }
 0x19f   :  { %12052 = vst [vmem:[#allocation61_spill] sm:$0xff] %v10170_v41  ;;  %v10177_v2 = vsub.f32 %v1973_v59, %v10170_v41  ;;  %v1975_v57 = vmax.f32 %v8519_v23, 0.0  ;;  %v8522_v56 = vadd.f32 %v6967_v60, %v9850_v27  ;;  %v1095_v1 = vpop.f32.mrb[31].mxu1  ;;  %v2335_v46 = vsub.f32 %v10157_v53, %v11741_v42 }
 0x1a0   :  { %12053 = vst [vmem:[#allocation62_spill] sm:$0xff] %v10173_v0  ;;  %v10184_v44 = vsub.f32 %v1972_v25, %v10173_v0  ;;  %v1974_v50 = vmax.f32 %v8521_v47, 0.0  ;;  %v8524_v22 = vadd.f32 %v9850_v27, %v1095_v1  ;;  %7183 = vmatprep.mubr.f32.mxu1 %v2306_v54  ;;  %v2325_v59 = vsub.f32 %v10164_v30, %v11748_v45  ;;  %v12077_v45 = vld [vmem:[#allocation42_spill] sm:$0xff] }
 0x1a1   :  { %v10190_v63 = vand.u32 4294901760, %v1975_v57  ;;  %v8523_v12 = vadd.f32 %v8522_v56, %v7117_v43  ;;  %7184 = vmatmul.mubr.f32.gmra.mrb[54].mxu1 %v2316_v15  ;;  %v11742_v58 = vand.u32 4294901760, %v10177_v2  ;;  %v2336_v54 = vand.u32 4294901760, %v2335_v46 }
 0x1a2   :  { %v10193_v23 = vand.u32 4294901760, %v1974_v50  ;;  %v8525_v60 = vadd.f32 %v8524_v22, %v1936_v20  ;;  %v2326_v42 = vand.u32 4294901760, %v2325_v59  ;;  %v11743_v25 = vand.u32 4294901760, %v10184_v44 }
 0x1a3   :  { %12054 = vst [vmem:[#allocation63_spill] sm:$0xff] %v10190_v63  ;;  %v10197_v47 = vsub.f32 %v1975_v57, %v10190_v63  ;;  %v1977_v27 = vmax.f32 %v8523_v12, 0.0  ;;  %v2355_v1 = vsub.f32 %v10177_v2, %v11742_v58 }
 0x1a4   :  { %12055 = vst [vmem:[#allocation64_spill] sm:$0xff] %v10193_v23  ;;  %v10203_v43 = vsub.f32 %v1974_v50, %v10193_v23  ;;  %v1976_v56 = vmax.f32 %v8525_v60, 0.0  ;;  %7186 = vmatprep.mubr.f32.mxu1 %v2326_v42  ;;  %v2345_v20 = vsub.f32 %v10184_v44, %v11743_v25 }
 0x1a5   :  { %v10208_v15 = vand.u32 4294901760, %v1977_v27  ;;  %7187 = vmatmul.mubr.f32.gmra.mrb[56].mxu1 %v2336_v54  ;;  %v11744_v57 = vand.u32 4294901760, %v10197_v47  ;;  %v2356_v50 = vand.u32 4294901760, %v2355_v1 }
 0x1a6   :  { %v10211_v22 = vand.u32 4294901760, %v1976_v56  ;;  %v2346_v46 = vand.u32 4294901760, %v2345_v20  ;;  %v11747_v59 = vand.u32 4294901760, %v10203_v43 }
 0x1a7   :  { %12056 = vst [vmem:[#allocation65_spill] sm:$0xff] %v10208_v15  ;;  %v10215_v12 = vsub.f32 %v1977_v27, %v10208_v15  ;;  %v2375_v42 = vsub.f32 %v10197_v47, %v11744_v57 }
 0x1a8   :  { %12057 = vst [vmem:[#allocation66_spill] sm:$0xff] %v10211_v22  ;;  %v10221_v60 = vsub.f32 %v1976_v56, %v10211_v22  ;;  %7189 = vmatprep.mubr.f32.mxu1 %v2346_v46  ;;  %v2365_v54 = vsub.f32 %v10203_v43, %v11747_v59  ;;  %v12076_v59 = vld [vmem:[#allocation37_spill] sm:$0xff] }
 0x1a9   :  { %7190 = vmatmul.mubr.f32.gmra.mrb[58].mxu1 %v2356_v50  ;;  %v11745_v20 = vand.u32 4294901760, %v10215_v12  ;;  %v2376_v25 = vand.u32 4294901760, %v2375_v42  ;;  %v12067_v50 = vld [vmem:[#allocation28_spill] sm:$0xff]  ;;  %v12068_v42 = vld [vmem:[#allocation31_spill] sm:$0xff] }
 0x1aa   :  { %v2366_v58 = vand.u32 4294901760, %v2365_v54  ;;  %v11746_v27 = vand.u32 4294901760, %v10221_v60  ;;  %v12069_v54 = vld [vmem:[#allocation23_spill] sm:$0xff] }
 0x1ab   :  { %v2395_v1 = vsub.f32 %v10215_v12, %v11745_v20  ;;  %v12074_v20 = vld [vmem:[#allocation38_spill] sm:$0xff] }
 0x1ac   :  { %7192 = vmatprep.mubr.f32.mxu1 %v2366_v58  ;;  %v2385_v56 = vsub.f32 %v10221_v60, %v11746_v27  ;;  %v12064_v58 = vld [vmem:[#allocation26_spill] sm:$0xff]  ;;  %v12075_v27 = vld [vmem:[#allocation3_spill] sm:$0xff] }
 0x1ad   :  { %7193 = vmatmul.mubr.f32.gmra.mrb[60].mxu1 %v2376_v25  ;;  %v2396_v57 = vand.u32 4294901760, %v2395_v1  ;;  %v12065_v25 = vld [vmem:[#allocation29_spill] sm:$0xff]  ;;  %v12070_v1 = vld [vmem:[#allocation30_spill] sm:$0xff] }
 0x1ae   :  { %v2386_v46 = vand.u32 4294901760, %v2385_v56  ;;  %v12071_v56 = vld [vmem:[#allocation34_spill] sm:$0xff] }
 0x1b0   :  { %7195 = vmatprep.mubr.f32.mxu1 %v2386_v46  ;;  %v12072_v46 = vld [vmem:[#allocation2_spill] sm:$0xff] }
 0x1b1   :  { %7196 = vmatmul.mubr.f32.gmra.mrb[62].mxu1 %v2396_v57  ;;  %v12066_v57 = vld [vmem:[#allocation22_spill] sm:$0xff] }
 0x1b2   :  { %7230 = vmatprep.mubr.f32.mxu1 %v9896_v55 }
 0x1b5   :  { %7231 = vmatmul.mubr.f32.vlgmr.msra.gmra.mrb[32].mxu1 %v9894_v13 }
 0x1b6   :  { %8145 = vmatpush3.bf16.msra.mxu1 %v9757_v36  ;;  %7233 = vmatprep.mubr.f32.mxu1 %v9915_v17  ;;  %v8170_v36 = vpack.c.bf16 %v9748_v8, %v9746_v3 }
 0x1b7   :  { %8147 = vmatprep.subr.bf16.mxu1 %v9771_v4 }
 0x1b9   :  { %7234 = vmatmul.mubr.f32.gmra.mrb[34].mxu1 %v9911_v34 }
 0x1ba   :  { %7236 = vmatprep.mubr.f32.mxu1 %v9937_v5  ;;  %8149 = vmatpush3.bf16.msra.mxu1 %v9771_v4  ;;  %v12058_v4 = vld [vmem:[#allocation19_spill] sm:$0xff] }
 0x1bb   :  { %8151 = vmatprep.subr.bf16.mxu1 %v9785_v9 }
 0x1bd   :  { %7237 = vmatmul.mubr.f32.gmra.mrb[36].mxu1 %v9934_v48 }
 0x1be   :  { %7239 = vmatprep.mubr.f32.mxu1 %v9957_v26  ;;  %8153 = vmatpush3.bf16.msra.mxu1 %v9785_v9  ;;  %v12059_v9 = vld [vmem:[#allocation25_spill] sm:$0xff] }
 0x1bf   :  { %8155 = vmatprep.subr.bf16.mxu1 %v9799_v28 }
 0x1c1   :  { %7240 = vmatmul.mubr.f32.gmra.mrb[38].mxu1 %v9954_v19 }
 0x1c2   :  { %7242 = vmatprep.mubr.f32.mxu1 %v9979_v31  ;;  %8157 = vmatpush3.bf16.msra.mxu1 %v9799_v28  ;;  %v12060_v28 = vld [vmem:[#allocation20_spill] sm:$0xff] }
 0x1c3   :  { %8159 = vmatprep.subr.bf16.mxu1 %v9813_v11 }
 0x1c5   :  { %7243 = vmatmul.mubr.f32.gmra.mrb[40].mxu1 %v9976_v6 }
 0x1c6   :  { %7245 = vmatprep.mubr.f32.mxu1 %v10001_v39  ;;  %8161 = vmatpush3.bf16.msra.mxu1 %v9813_v11  ;;  %v12061_v11 = vld [vmem:[#allocation24_spill] sm:$0xff] }
 0x1c7   :  { %8163 = vmatprep.subr.bf16.mxu1 %v9831_v24 }
 0x1c9   :  { %7246 = vmatmul.mubr.f32.gmra.mrb[42].mxu1 %v9998_v38 }
 0x1ca   :  { %7248 = vmatprep.mubr.f32.mxu1 %v10023_v35  ;;  %8165 = vmatpush3.bf16.msra.mxu1 %v9831_v24  ;;  %v12062_v24 = vld [vmem:[#allocation27_spill] sm:$0xff]  ;;  %v12101_v35 = vld [vmem:[#allocation12_spill] sm:$0xff] }
 0x1cb   :  { %8167 = vmatprep.subr.bf16.mxu1 %v9860_v52  ;;  %v12102_v38 = vand.u32 4294901760, %v12101_v35  ;;  %v12111_v35 = vld [vmem:[#allocation15_spill] sm:$0xff] }
 0x1cd   :  { %7249 = vmatmul.mubr.f32.gmra.mrb[44].mxu1 %v10020_v62  ;;  %v12099_v62 = vld [vmem:[#allocation11_spill] sm:$0xff] }
 0x1ce   :  { %7251 = vmatprep.mubr.f32.mxu1 %v10045_v18  ;;  %8169 = vmatpush3.bf16.msra.mxu1 %v9860_v52  ;;  %v12063_v52 = vld [vmem:[#allocation21_spill] sm:$0xff]  ;;  %v12098_v18 = vand.u32 4294901760, %v12059_v9 }
 0x1cf   :  { %8171 = vmatprep.subr.bf16.mxu1 %v8170_v36 }
 0x1d1   :  { %7252 = vmatmul.mubr.f32.gmra.mrb[46].mxu1 %v10042_v61 }
 0x1d2   :  { %7254 = vmatprep.mubr.f32.mxu1 %v10067_v37  ;;  %8173 = vmatpush3.bf16.msra.mxu1 %v8170_v36  ;;  %v12073_v36 = vld [vmem:[#allocation33_spill] sm:$0xff] }
 0x1d3   :  { %8175 = vmatprep.subr.bf16.mxu1 %v9469_v49 }
 0x1d5   :  { %7255 = vmatmul.mubr.f32.gmra.mrb[48].mxu1 %v10064_v16  ;;  %v12095_v16 = vld [vmem:[#allocation10_spill] sm:$0xff] }
 0x1d6   :  { %7257 = vmatprep.mubr.f32.mxu1 %v10089_v7  ;;  %v12096_v37 = vand.u32 4294901760, %v12095_v16 }
 0x1d9   :  { %7258 = vmatmul.mubr.f32.gmra.mrb[50].mxu1 %v10086_v32  ;;  %v12089_v32 = vld [vmem:[#allocation53_spill] sm:$0xff] }
 0x1da   :  { %7260 = vmatprep.mubr.f32.mxu1 %v10111_v33  ;;  %v12088_v33 = vld [vmem:[#allocation54_spill] sm:$0xff] }
 0x1dd   :  { %7261 = vmatmul.mubr.f32.gmra.mrb[52].mxu1 %v10108_v29  ;;  %v12087_v29 = vld [vmem:[#allocation49_spill] sm:$0xff] }
 0x1de   :  { %7263 = vmatprep.mubr.f32.mxu1 %v10133_v21  ;;  %v12086_v21 = vld [vmem:[#allocation50_spill] sm:$0xff] }
 0x1e1   :  { %7264 = vmatmul.mubr.f32.gmra.mrb[54].mxu1 %v10130_v40  ;;  %v12085_v40 = vld [vmem:[#allocation45_spill] sm:$0xff] }
 0x1e2   :  { %7266 = vmatprep.mubr.f32.mxu1 %v10153_v10  ;;  %v12084_v10 = vld [vmem:[#allocation46_spill] sm:$0xff] }
 0x1e5   :  { %7267 = vmatmul.mubr.f32.gmra.mrb[56].mxu1 %v10150_v14  ;;  %v12083_v14 = vld [vmem:[#allocation41_spill] sm:$0xff] }
 0x1e6   :  { %7269 = vmatprep.mubr.f32.mxu1 %v10173_v0 }
 0x1e9   :  { %7270 = vmatmul.mubr.f32.gmra.mrb[58].mxu1 %v10170_v41 }
 0x1ea   :  { %7272 = vmatprep.mubr.f32.mxu1 %v10193_v23  ;;  %v12081_v23 = vld [vmem:[#allocation6_spill] sm:$0xff] }
 0x1eb   :  { %v12082_v41 = vand.u32 4294901760, %v12081_v23  ;;  %v12093_v23 = vld [vmem:[#allocation9_spill] sm:$0xff] }
 0x1ec   :  { %v12094_v7 = vand.u32 4294901760, %v12093_v23  ;;  %v12119_v23 = vld [vmem:[#allocation18_spill] sm:$0xff] }
 0x1ed   :  { %7273 = vmatmul.mubr.f32.gmra.mrb[60].mxu1 %v10190_v63 }
 0x1ee   :  { %7275 = vmatprep.mubr.f32.mxu1 %v10211_v22  ;;  %v12079_v22 = vld [vmem:[#allocation5_spill] sm:$0xff]  ;;  %v8210_v61 = vpack.c.bf16 %v12096_v37, %v12094_v7 }
 0x1ef   :  { %v12080_v63 = vand.u32 4294901760, %v12079_v22  ;;  %v12090_v22 = vld [vmem:[#allocation58_spill] sm:$0xff]  ;;  %v12105_v37 = vld [vmem:[#allocation13_spill] sm:$0xff] }
 0x1f0   :  { %v12106_v7 = vand.u32 4294901760, %v12105_v37 }
 0x1f1   :  { %7276 = vmatmul.mubr.f32.gmra.mrb[62].mxu1 %v10208_v15  ;;  %v12078_v15 = vld [vmem:[#allocation4_spill] sm:$0xff]  ;;  %v8206_v0 = vpack.c.bf16 %v12082_v41, %v12080_v63  ;;  %v12091_v41 = vld [vmem:[#allocation57_spill] sm:$0xff]  ;;  %v12092_v63 = vand.u32 4294901760, %v9905_v51 }
 0x1f2   :  { %7310 = vmatprep.mubr.f32.mxu1 %v9905_v51  ;;  %v12103_v51 = vand.u32 4294901760, %v12061_v11 }
 0x1f5   :  { %7311 = vmatmul.mubr.f32.vlgmr.msra.gmra.mrb[32].mxu1 %v12058_v4 }
 0x1f6   :  { %8177 = vmatpush3.bf16.msra.mxu1 %v9469_v49  ;;  %7313 = vmatprep.mubr.f32.mxu1 %v12059_v9 }
 0x1f7   :  { %8179 = vmatprep.subr.bf16.mxu1 %v12060_v28 }
 0x1f9   :  { %7314 = vmatmul.mubr.f32.gmra.mrb[34].mxu1 %v12061_v11  ;;  %v12116_v11 = vand.u32 4294901760, %v12068_v42 }
 0x1fa   :  { %7316 = vmatprep.mubr.f32.mxu1 %v12062_v24  ;;  %8181 = vmatpush3.bf16.msra.mxu1 %v12060_v28 }
 0x1fb   :  { %8183 = vmatprep.subr.bf16.mxu1 %v12063_v52 }
 0x1fd   :  { %7317 = vmatmul.mubr.f32.gmra.mrb[36].mxu1 %v12064_v58 }
 0x1fe   :  { %7319 = vmatprep.mubr.f32.mxu1 %v12065_v25  ;;  %8185 = vmatpush3.bf16.msra.mxu1 %v12063_v52 }
 0x1ff   :  { %8187 = vmatprep.subr.bf16.mxu1 %v12066_v57 }
 0x201   :  { %7320 = vmatmul.mubr.f32.gmra.mrb[38].mxu1 %v12067_v50 }
 0x202   :  { %7322 = vmatprep.mubr.f32.mxu1 %v12068_v42  ;;  %8189 = vmatpush3.bf16.msra.mxu1 %v12066_v57 }
 0x203   :  { %8191 = vmatprep.subr.bf16.mxu1 %v12069_v54 }
 0x205   :  { %7323 = vmatmul.mubr.f32.gmra.mrb[40].mxu1 %v12070_v1 }
 0x206   :  { %7325 = vmatprep.mubr.f32.mxu1 %v12071_v56  ;;  %8193 = vmatpush3.bf16.msra.mxu1 %v12069_v54 }
 0x207   :  { %8195 = vmatprep.subr.bf16.mxu1 %v12072_v46 }
 0x209   :  { %7326 = vmatmul.mubr.f32.gmra.mrb[42].mxu1 %v12073_v36 }
 0x20a   :  { %7328 = vmatprep.mubr.f32.mxu1 %v12074_v20  ;;  %8197 = vmatpush3.bf16.msra.mxu1 %v12072_v46 }
 0x20b   :  { %8199 = vmatprep.subr.bf16.mxu1 %v12075_v27 }
 0x20d   :  { %7329 = vmatmul.mubr.f32.gmra.mrb[44].mxu1 %v12076_v59 }
 0x20e   :  { %7331 = vmatprep.mubr.f32.mxu1 %v12077_v45  ;;  %8201 = vmatpush3.bf16.msra.mxu1 %v12075_v27  ;;  %v12100_v27 = vand.u32 4294901760, %v12099_v62  ;;  %v12110_v62 = vand.u32 4294901760, %v12065_v25  ;;  %v12120_v25 = vand.u32 4294901760, %v12119_v23  ;;  %v10481_v23 = vld [vmem:[%s11605_s5 + $0x30] sm:$0xff] }
 0x20f   :  { %8203 = vmatprep.subr.bf16.mxu1 %v12078_v15 }
 0x210   :  { %v8214_v46 = vpack.c.bf16 %v12102_v38, %v12100_v27  ;;  %v12112_v38 = vand.u32 4294901760, %v12111_v35  ;;  %v12113_v27 = vld [vmem:[#allocation16_spill] sm:$0xff]  ;;  %v12132_v35 = vand.u32 4294901760, %v12077_v45  ;;  %v12137_v45 = vand.u32 4294901760, %v12087_v29 }
 0x211   :  { %7332 = vmatmul.mubr.f32.gmra.mrb[46].mxu1 %v12083_v14 }
 0x212   :  { %7334 = vmatprep.mubr.f32.mxu1 %v12084_v10  ;;  %8205 = vmatpush3.bf16.msra.mxu1 %v12078_v15  ;;  %v12097_v15 = vand.u32 4294901760, %v12058_v4  ;;  %v12114_v4 = vand.u32 4294901760, %v12113_v27  ;;  %v10453_v27 = vld [vmem:[%s11605_s5 + $0x20] sm:$0xff] }
 0x213   :  { %8207 = vmatprep.subr.bf16.mxu1 %v8206_v0 }
 0x214   :  { %v8222_v9 = vpack.c.bf16 %v12114_v4, %v12112_v38  ;;  %v12141_v38 = vand.u32 4294901760, %v12091_v41  ;;  %v10458_v4 = vld [vmem:[%s11605_s5 + $0x28] sm:$0xff] }
 0x215   :  { %7335 = vmatmul.mubr.f32.gmra.mrb[48].mxu1 %v12085_v40 }
 0x216   :  { %7337 = vmatprep.mubr.f32.mxu1 %v12086_v21 }
 0x219   :  { %7338 = vmatmul.mubr.f32.gmra.mrb[50].mxu1 %v12087_v29  ;;  %v12144_v29 = vand.u32 4294901760, %v10184_v44 }
 0x21a   :  { %7340 = vmatprep.mubr.f32.mxu1 %v12088_v33 }
 0x21d   :  { %7341 = vmatmul.mubr.f32.gmra.mrb[52].mxu1 %v12089_v32 }
 0x21e   :  { %7343 = vmatprep.mubr.f32.mxu1 %v12090_v22 }
 0x221   :  { %7344 = vmatmul.mubr.f32.gmra.mrb[54].mxu1 %v12091_v41  ;;  %v12148_v41 = vand.u32 4294901760, %v10221_v60 }
 0x222   :  { %7346 = vmatprep.mubr.f32.mxu1 %v10164_v30 }
 0x225   :  { %7347 = vmatmul.mubr.f32.gmra.mrb[56].mxu1 %v10157_v53 }
 0x226   :  { %7349 = vmatprep.mubr.f32.mxu1 %v10184_v44  ;;  %v10440_v44 = vld [vmem:[%s11605_s5 + $0x10] sm:$0xff] }
 0x229   :  { %7350 = vmatmul.mubr.f32.gmra.mrb[58].mxu1 %v10177_v2 }
 0x22a   :  { %7352 = vmatprep.mubr.f32.mxu1 %v10203_v43 }
 0x22d   :  { %7353 = vmatmul.mubr.f32.gmra.mrb[60].mxu1 %v10197_v47 }
 0x22e   :  { %7355 = vmatprep.mubr.f32.mxu1 %v10221_v60  ;;  %v4037_v60 = vand.u32 4294901760, %v10440_v44 }
 0x231   :  { %7356 = vmatmul.mubr.f32.gmra.mrb[62].mxu1 %v10215_v12 }
 0x232   :  { %7390 = vmatprep.mubr.f32.mxu1 %v12092_v63  ;;  %v12104_v63 = vand.u32 4294901760, %v12062_v24  ;;  %v12117_v24 = vld [vmem:[#allocation17_spill] sm:$0xff] }
 0x235   :  { %7391 = vmatmul.mubr.f32.vlgmr.msra.gmra.mrb[32].mxu1 %v12097_v15 }
 0x236   :  { %8209 = vmatpush3.bf16.msra.mxu1 %v8206_v0  ;;  %7393 = vmatprep.mubr.f32.mxu1 %v12098_v18  ;;  %v12107_v0 = vld [vmem:[#allocation14_spill] sm:$0xff]  ;;  %v12109_v18 = vand.u32 4294901760, %v12064_v58  ;;  %v12118_v58 = vand.u32 4294901760, %v12117_v24  ;;  %v4046_v24 = vand.u32 4294901760, %v10458_v4 }
 0x237   :  { %8211 = vmatprep.subr.bf16.mxu1 %v8210_v61  ;;  %v12108_v16 = vand.u32 4294901760, %v12107_v0 }
 0x239   :  { %7394 = vmatmul.mubr.f32.gmra.mrb[34].mxu1 %v12103_v51  ;;  %v8218_v15 = vpack.c.bf16 %v12108_v16, %v12106_v7  ;;  %v8226_v51 = vpack.c.bf16 %v12120_v25, %v12118_v58  ;;  %v12125_v7 = vld [vmem:[#allocation8_spill] sm:$0xff]  ;;  %v12127_v16 = vand.u32 4294901760, %v12073_v36  ;;  %v12133_v36 = vand.u32 4294901760, %v12083_v14  ;;  %v10486_v25 = vld [vmem:[%s11605_s5 + $0x38] sm:$0xff] }
 0x23a   :  { %7396 = vmatprep.mubr.f32.mxu1 %v12104_v63  ;;  %8213 = vmatpush3.bf16.msra.mxu1 %v8210_v61  ;;  %v12115_v61 = vand.u32 4294901760, %v12067_v50  ;;  %v12122_v63 = vand.u32 4294901760, %v12071_v56  ;;  %v12123_v50 = vld [vmem:[#allocation7_spill] sm:$0xff]  ;;  %v12126_v42 = vand.u32 4294901760, %v12125_v7  ;;  %v12130_v56 = vand.u32 4294901760, %v9748_v8 }
 0x23b   :  { %8215 = vmatprep.subr.bf16.mxu1 %v8214_v46  ;;  %v12124_v37 = vand.u32 4294901760, %v12123_v50  ;;  %v12136_v8 = vand.u32 4294901760, %v12086_v21  ;;  %v12139_v14 = vand.u32 4294901760, %v12089_v32  ;;  %v12143_v21 = vand.u32 4294901760, %v10157_v53  ;;  %v10430_v53 = vld [vmem:[%s11605_s5] sm:$0xff]  ;;  %v10511_v50 = vld [vmem:[%s11605_s5 + $0x48] sm:$0xff] }
 0x23c   :  { %v12146_v32 = vand.u32 4294901760, %v10203_v43  ;;  %v4058_v7 = vand.u32 4294901760, %v10511_v50 }
 0x23d   :  { %7397 = vmatmul.mubr.f32.gmra.mrb[36].mxu1 %v12109_v18  ;;  %v8230_v0 = vpack.c.bf16 %v12126_v42, %v12124_v37  ;;  %v10530_v42 = vld [vmem:[%s11605_s5 + $0x50] sm:$0xff] }
 0x23e   :  { %7399 = vmatprep.mubr.f32.mxu1 %v12110_v62  ;;  %8217 = vmatpush3.bf16.msra.mxu1 %v8214_v46  ;;  %v12121_v46 = vand.u32 4294901760, %v12070_v1  ;;  %v12129_v1 = vand.u32 4294901760, %v9746_v3  ;;  %v12131_v62 = vand.u32 4294901760, %v12076_v59  ;;  %v12135_v3 = vand.u32 4294901760, %v12085_v40 }
 0x23f   :  { %8219 = vmatprep.subr.bf16.mxu1 %v8218_v15  ;;  %v12138_v59 = vand.u32 4294901760, %v12088_v33  ;;  %v12142_v40 = vand.u32 4294901760, %v10164_v30  ;;  %v12145_v33 = vand.u32 4294901760, %v10177_v2  ;;  %v12149_v30 = vand.u32 4294901760, %v10215_v12  ;;  %v10435_v2 = vld [vmem:[%s11605_s5 + $0x8] sm:$0xff]  ;;  %v10447_v12 = vld [vmem:[%s11605_s5 + $0x18] sm:$0xff] }
 0x240   :  { %v8234_v18 = vpack.c.bf16 %v12130_v56, %v12129_v1  ;;  %v4034_v43 = vand.u32 4294901760, %v10435_v2  ;;  %v12154_v56 = vld [vmem:[#allocation2_spill] sm:$0xff] }
 0x241   :  { %7400 = vmatmul.mubr.f32.gmra.mrb[38].mxu1 %v12115_v61 }
 0x242   :  { %7402 = vmatprep.mubr.f32.mxu1 %v12116_v11  ;;  %8221 = vmatpush3.bf16.msra.mxu1 %v8218_v15  ;;  %v12128_v15 = vand.u32 4294901760, %v12074_v20  ;;  %v12134_v20 = vand.u32 4294901760, %v12084_v10  ;;  %v12140_v10 = vand.u32 4294901760, %v12090_v22  ;;  %v12147_v22 = vand.u32 4294901760, %v10197_v47 }
 0x243   :  { %8223 = vmatprep.subr.bf16.mxu1 %v8222_v9  ;;  %v4031_v47 = vand.u32 4294901760, %v10430_v53  ;;  %v4043_v11 = vand.u32 4294901760, %v10453_v27 }
 0x245   :  { %7403 = vmatmul.mubr.f32.gmra.mrb[40].mxu1 %v12121_v46  ;;  %v10466_v61 = vpack.c.bf16 %v4034_v43, %v4031_v47  ;;  %v4052_v46 = vand.u32 4294901760, %v10486_v25 }
 0x246   :  { %7405 = vmatprep.mubr.f32.mxu1 %v12122_v63  ;;  %8225 = vmatpush3.bf16.msra.mxu1 %v8222_v9  ;;  %v4040_v9 = vand.u32 4294901760, %v10447_v12  ;;  %v10506_v63 = vld [vmem:[%s11605_s5 + $0x40] sm:$0xff] }
 0x247   :  { %8227 = vmatprep.subr.bf16.mxu1 %v8226_v51  ;;  %8271 = vmatprep.subr.bf16.mxu0 %v10466_v61  ;;  %v4055_v37 = vand.u32 4294901760, %v10506_v63 }
 0x248   :  { %v10476_v58 = vpack.c.bf16 %v4040_v9, %v4037_v60  ;;  %8273 = vmatpush3.bf16.msra.mxu0 %v10466_v61 }
 0x249   :  { %7406 = vmatmul.mubr.f32.gmra.mrb[42].mxu1 %v12127_v16  ;;  %v4061_v16 = vand.u32 4294901760, %v10530_v42 }
 0x24a   :  { %7408 = vmatprep.mubr.f32.mxu1 %v12128_v15  ;;  %8229 = vmatpush3.bf16.msra.mxu1 %v8226_v51  ;;  %v4049_v51 = vand.u32 4294901760, %v10481_v23 }
 0x24b   :  { %8231 = vmatprep.subr.bf16.mxu1 %v8230_v0  ;;  %8275 = vmatprep.subr.bf16.mxu0 %v10476_v58 }
 0x24c   :  { %8277 = vmatpush3.bf16.msra.mxu0 %v10476_v58 }
 0x24d   :  { %7409 = vmatmul.mubr.f32.gmra.mrb[44].mxu1 %v12131_v62  ;;  %v12157_v62 = vld [vmem:[#allocation3_spill] sm:$0xff] }
 0x24e   :  { %7411 = vmatprep.mubr.f32.mxu1 %v12132_v35  ;;  %8233 = vmatpush3.bf16.msra.mxu1 %v8230_v0  ;;  %v10535_v0 = vld [vmem:[%s11605_s5 + $0x58] sm:$0xff]  ;;  %v12158_v35 = vld [vmem:[#allocation35_spill] sm:$0xff] }
 0x24f   :  { %8235 = vmatprep.subr.bf16.mxu1 %v8234_v18  ;;  %v4064_v15 = vand.u32 4294901760, %v10535_v0 }
 0x251   :  { %7412 = vmatmul.mubr.f32.gmra.mrb[46].mxu1 %v12133_v36  ;;  %v10559_v1 = vpack.c.bf16 %v4064_v15, %v4061_v16  ;;  %v12159_v36 = vld [vmem:[#allocation40_spill] sm:$0xff] }
 0x252   :  { %7414 = vmatprep.mubr.f32.mxu1 %v12134_v20  ;;  %8237 = vmatpush3.bf16.msra.mxu1 %v8234_v18  ;;  %v12156_v18 = vld [vmem:[#allocation36_spill] sm:$0xff]  ;;  %v12161_v20 = vld [vmem:[#allocation39_spill] sm:$0xff] }
 0x253   :  { %8239 = vmatprep.subr.bf16.mxu1 %v9469_v49  ;;  %12153 = vst [vmem:[#allocation24_spill] sm:$0xff] %v10559_v1 }
 0x255   :  { %7415 = vmatmul.mubr.f32.gmra.mrb[48].mxu1 %v12135_v3  ;;  %v12162_v3 = vld [vmem:[#allocation44_spill] sm:$0xff] }
 0x256   :  { %7417 = vmatprep.mubr.f32.mxu1 %v12136_v8  ;;  %v12163_v8 = vld [vmem:[#allocation43_spill] sm:$0xff] }
 0x259   :  { %7418 = vmatmul.mubr.f32.gmra.mrb[50].mxu1 %v12137_v45  ;;  %v12164_v45 = vld [vmem:[#allocation48_spill] sm:$0xff] }
 0x25a   :  { %7420 = vmatprep.mubr.f32.mxu1 %v12138_v59  ;;  %v12165_v59 = vld [vmem:[#allocation47_spill] sm:$0xff] }
 0x25d   :  { %7421 = vmatmul.mubr.f32.gmra.mrb[52].mxu1 %v12139_v14  ;;  %v12166_v14 = vld [vmem:[#allocation52_spill] sm:$0xff] }
 0x25e   :  { %7423 = vmatprep.mubr.f32.mxu1 %v12140_v10  ;;  %v12167_v10 = vld [vmem:[#allocation51_spill] sm:$0xff] }
 0x261   :  { %7424 = vmatmul.mubr.f32.gmra.mrb[54].mxu1 %v12141_v38  ;;  %v12168_v38 = vld [vmem:[#allocation56_spill] sm:$0xff] }
 0x262   :  { %7426 = vmatprep.mubr.f32.mxu1 %v12142_v40  ;;  %v12169_v40 = vld [vmem:[#allocation55_spill] sm:$0xff] }
 0x265   :  { %7427 = vmatmul.mubr.f32.gmra.mrb[56].mxu1 %v12143_v21  ;;  %v12170_v21 = vld [vmem:[#allocation60_spill] sm:$0xff] }
 0x266   :  { %7429 = vmatprep.mubr.f32.mxu1 %v12144_v29  ;;  %v12171_v29 = vld [vmem:[#allocation59_spill] sm:$0xff] }
 0x269   :  { %7430 = vmatmul.mubr.f32.gmra.mrb[58].mxu1 %v12145_v33  ;;  %v12172_v33 = vld [vmem:[#allocation62_spill] sm:$0xff] }
 0x26a   :  { %7432 = vmatprep.mubr.f32.mxu1 %v12146_v32  ;;  %v12173_v32 = vld [vmem:[#allocation61_spill] sm:$0xff] }
 0x26d   :  { %7433 = vmatmul.mubr.f32.gmra.mrb[60].mxu1 %v12147_v22  ;;  %v12174_v22 = vld [vmem:[#allocation64_spill] sm:$0xff] }
 0x26e   :  { %7435 = vmatprep.mubr.f32.mxu1 %v12148_v41  ;;  %v12175_v41 = vld [vmem:[#allocation63_spill] sm:$0xff] }
 0x271   :  { %7436 = vmatmul.mubr.f32.gmra.mrb[62].mxu1 %v12149_v30  ;;  %v12176_v30 = vld [vmem:[#allocation66_spill] sm:$0xff] }
 0x272   :  { %7470 = vmatprep.mubr.f32.mxu1 %v9896_v55 }
 0x275   :  { %7471 = vmatmul.mubr.f32.vlgmr.msra.gmra.mrb[32].mxu1 %v9894_v13 }
 0x276   :  { %8241 = vmatpush3.bf16.msra.mxu1 %v9469_v49  ;;  %7473 = vmatprep.mubr.f32.mxu1 %v9915_v17  ;;  %v10497_v49 = vpack.c.bf16 %v4046_v24, %v4043_v11 }
 0x277   :  { %8243 = vmatprep.subr.bf16.mxu1 %v12060_v28 }
 0x278   :  { %12150 = vst [vmem:[#allocation19_spill] sm:$0xff] %v10497_v49  ;;  %8279 = vmatprep.subr.bf16.mxu0 %v10497_v49 }
 0x279   :  { %7474 = vmatmul.mubr.f32.gmra.mrb[34].mxu1 %v9911_v34  ;;  %8281 = vmatpush3.bf16.msra.mxu0 %v10497_v49 }
 0x27a   :  { %7476 = vmatprep.mubr.f32.mxu1 %v9937_v5  ;;  %8245 = vmatpush3.bf16.msra.mxu1 %v12060_v28  ;;  %v10521_v28 = vpack.c.bf16 %v4052_v46, %v4049_v51 }
 0x27b   :  { %8247 = vmatprep.subr.bf16.mxu1 %v12063_v52 }
 0x27c   :  { %12151 = vst [vmem:[#allocation25_spill] sm:$0xff] %v10521_v28  ;;  %8283 = vmatprep.subr.bf16.mxu0 %v10521_v28 }
 0x27d   :  { %7477 = vmatmul.mubr.f32.gmra.mrb[36].mxu1 %v9934_v48  ;;  %8285 = vmatpush3.bf16.msra.mxu0 %v10521_v28 }
 0x27e   :  { %7479 = vmatprep.mubr.f32.mxu1 %v9957_v26  ;;  %8249 = vmatpush3.bf16.msra.mxu1 %v12063_v52  ;;  %v10545_v52 = vpack.c.bf16 %v4058_v7, %v4055_v37 }
 0x27f   :  { %8251 = vmatprep.subr.bf16.mxu1 %v12066_v57 }
 0x280   :  { %12152 = vst [vmem:[#allocation20_spill] sm:$0xff] %v10545_v52  ;;  %8287 = vmatprep.subr.bf16.mxu0 %v10545_v52 }
 0x281   :  { %7480 = vmatmul.mubr.f32.gmra.mrb[38].mxu1 %v9954_v19  ;;  %8289 = vmatpush3.bf16.msra.mxu0 %v10545_v52 }
 0x282   :  { %7482 = vmatprep.mubr.f32.mxu1 %v9979_v31  ;;  %8253 = vmatpush3.bf16.msra.mxu1 %v12066_v57  ;;  %v12155_v57 = vld [vmem:[#allocation32_spill] sm:$0xff] }
 0x283   :  { %8255 = vmatprep.subr.bf16.mxu1 %v12069_v54  ;;  %8291 = vmatprep.subr.bf16.mxu0 %v10559_v1 }
 0x285   :  { %7483 = vmatmul.mubr.f32.gmra.mrb[40].mxu1 %v9976_v6  ;;  %8293 = vmatpush3.bf16.msra.mxu0 %v10559_v1 }
 0x286   :  { %7485 = vmatprep.mubr.f32.mxu1 %v10001_v39  ;;  %8257 = vmatpush3.bf16.msra.mxu1 %v12069_v54  ;;  %v12160_v54 = vld [vmem:[#allocation4_spill] sm:$0xff] }
 0x287   :  { %8259 = vmatprep.subr.bf16.mxu1 %v12154_v56 }
 0x289   :  { %7486 = vmatmul.mubr.f32.gmra.mrb[42].mxu1 %v12155_v57 }
 0x28a   :  { %7488 = vmatprep.mubr.f32.mxu1 %v12156_v18  ;;  %8261 = vmatpush3.bf16.msra.mxu1 %v12154_v56  ;;  %v12177_v56 = vld [vmem:[#allocation65_spill] sm:$0xff] }
 0x28b   :  { %8263 = vmatprep.subr.bf16.mxu1 %v12157_v62 }
 0x28d   :  { %7489 = vmatmul.mubr.f32.gmra.mrb[44].mxu1 %v12158_v35 }
 0x28e   :  { %7491 = vmatprep.mubr.f32.mxu1 %v12159_v36  ;;  %8265 = vmatpush3.bf16.msra.mxu1 %v12157_v62 }
 0x28f   :  { %8267 = vmatprep.subr.bf16.mxu1 %v12160_v54 }
 0x291   :  { %7492 = vmatmul.mubr.f32.gmra.mrb[46].mxu1 %v12161_v20 }
 0x292   :  { %7494 = vmatprep.mubr.f32.mxu1 %v12162_v3  ;;  %8269 = vmatpush3.bf16.msra.mxu1 %v12160_v54 }
 0x295   :  { %7495 = vmatmul.mubr.f32.gmra.mrb[48].mxu1 %v12163_v8 }
 0x296   :  { %7497 = vmatprep.mubr.f32.mxu1 %v12164_v45 }
 0x299   :  { %7498 = vmatmul.mubr.f32.gmra.mrb[50].mxu1 %v12165_v59 }
 0x29a   :  { %7500 = vmatprep.mubr.f32.mxu1 %v12166_v14 }
 0x29d   :  { %7501 = vmatmul.mubr.f32.gmra.mrb[52].mxu1 %v12167_v10 }
 0x29e   :  { %7503 = vmatprep.mubr.f32.mxu1 %v12168_v38 }
 0x2a1   :  { %7504 = vmatmul.mubr.f32.gmra.mrb[54].mxu1 %v12169_v40 }
 0x2a2   :  { %7506 = vmatprep.mubr.f32.mxu1 %v12170_v21 }
 0x2a5   :  { %7507 = vmatmul.mubr.f32.gmra.mrb[56].mxu1 %v12171_v29 }
 0x2a6   :  { %7509 = vmatprep.mubr.f32.mxu1 %v12172_v33 }
 0x2a9   :  { %7510 = vmatmul.mubr.f32.gmra.mrb[58].mxu1 %v12173_v32 }
 0x2aa   :  { %7512 = vmatprep.mubr.f32.mxu1 %v12174_v22 }
 0x2ad   :  { %7513 = vmatmul.mubr.f32.gmra.mrb[60].mxu1 %v12175_v41 }
 0x2ae   :  { %7515 = vmatprep.mubr.f32.mxu1 %v12176_v30 }
 0x2b1   :  { %7516 = vmatmul.mubr.f32.gmra.mrb[62].mxu1 %v12177_v56 }
 0x2b2   :  { %7550 = vmatprep.mubr.f32.mxu1 %v9896_v55 }
 0x2b5   :  { %7551 = vmatmul.mubr.f32.vlgmr.msra.gmra.mrb[32].mxu1 %v9894_v13 }
 0x2b6   :  { %7553 = vmatprep.mubr.f32.mxu1 %v9915_v17 }
 0x2b9   :  { %7554 = vmatmul.mubr.f32.gmra.mrb[34].mxu1 %v9911_v34  ;;  %v4022_v34 = vld [vmem:[%s11605_s5 + $0x78] sm:$0xff] }
 0x2ba   :  { %7556 = vmatprep.mubr.f32.mxu1 %v9937_v5  ;;  %v4021_v5 = vld [vmem:[%s11605_s5 + $0x70] sm:$0xff] }
 0x2bb   :  { %v4073_v17 = vand.u32 4294901760, %v4021_v5 }
 0x2bd   :  { %7557 = vmatmul.mubr.f32.gmra.mrb[36].mxu1 %v9934_v48  ;;  %v4076_v48 = vand.u32 4294901760, %v4022_v34 }
 0x2be   :  { %7559 = vmatprep.mubr.f32.mxu1 %v9957_v26 }
 0x2c1   :  { %7560 = vmatmul.mubr.f32.gmra.mrb[38].mxu1 %v9954_v19  ;;  %v10641_v19 = vpack.c.bf16 %v4076_v48, %v4073_v17 }
 0x2c2   :  { %7562 = vmatprep.mubr.f32.mxu1 %v9979_v31  ;;  %v4020_v31 = vld [vmem:[%s11605_s5 + $0x68] sm:$0xff] }
 0x2c3   :  { %v4070_v55 = vand.u32 4294901760, %v4020_v31  ;;  %12179 = vst [vmem:[#allocation21_spill] sm:$0xff] %v10641_v19 }
 0x2c5   :  { %7563 = vmatmul.mubr.f32.gmra.mrb[40].mxu1 %v9976_v6  ;;  %v10648_v6 = vsub.f32 %v10430_v53, %v4031_v47 }
 0x2c6   :  { %7565 = vmatprep.mubr.f32.mxu1 %v10001_v39  ;;  %v4019_v39 = vld [vmem:[%s11605_s5 + $0x60] sm:$0xff] }
 0x2c7   :  { %v4067_v13 = vand.u32 4294901760, %v4019_v39  ;;  %12180 = vst [vmem:[#allocation26_spill] sm:$0xff] %v10648_v6 }
 0x2c9   :  { %7566 = vmatmul.mubr.f32.gmra.mrb[42].mxu1 %v12155_v57  ;;  %v10631_v26 = vpack.c.bf16 %v4070_v55, %v4067_v13  ;;  %v10653_v57 = vsub.f32 %v10435_v2, %v4034_v43  ;;  %v10666_v2 = vsub.f32 %v4019_v39, %v4067_v13  ;;  %v10668_v43 = vsub.f32 %v4020_v31, %v4070_v55 }
 0x2ca   :  { %7568 = vmatprep.mubr.f32.mxu1 %v12156_v18  ;;  %v11807_v18 = vand.u32 4294901760, %v10648_v6 }
 0x2cb   :  { %12178 = vst [vmem:[#allocation27_spill] sm:$0xff] %v10631_v26  ;;  %8295 = vmatprep.subr.bf16.mxu0 %v10631_v26  ;;  %12181 = vst [vmem:[#allocation29_spill] sm:$0xff] %v10653_v57  ;;  %v11805_v62 = vand.u32 4294901760, %v10653_v57 }
 0x2cc   :  { %8297 = vmatpush3.bf16.msra.mxu0 %v10631_v26  ;;  %12182 = vst [vmem:[#allocation22_spill] sm:$0xff] %v10666_v2  ;;  %12183 = vst [vmem:[#allocation28_spill] sm:$0xff] %v10668_v43 }
 0x2cd   :  { %7569 = vmatmul.mubr.f32.gmra.mrb[44].mxu1 %v12158_v35  ;;  %8299 = vmatprep.subr.bf16.mxu0 %v10641_v19  ;;  %v4435_v35 = vsub.f32 %v10648_v6, %v11807_v18 }
 0x2ce   :  { %7571 = vmatprep.mubr.f32.mxu1 %v12159_v36  ;;  %v4442_v36 = vsub.f32 %v10653_v57, %v11805_v62 }
 0x2cf   :  { %v4436_v54 = vand.u32 4294901760, %v4435_v35 }
 0x2d0   :  { %8301 = vmatpush3.bf16.msra.mxu0 %v10641_v19  ;;  %v4443_v53 = vand.u32 4294901760, %v4442_v36 }
 0x2d1   :  { %7572 = vmatmul.mubr.f32.gmra.mrb[46].mxu1 %v12161_v20  ;;  %v11795_v20 = vand.u32 4294901760, %v10666_v2 }
 0x2d2   :  { %7574 = vmatprep.mubr.f32.mxu1 %v12162_v3  ;;  %v10663_v47 = vpack.c.bf16 %v4443_v53, %v4436_v54  ;;  %v11794_v3 = vand.u32 4294901760, %v10668_v43 }
 0x2d4   :  { %8303 = vmatprep.subr.bf16.mxu0 %v10663_v47 }
 0x2d5   :  { %7575 = vmatmul.mubr.f32.gmra.mrb[48].mxu1 %v12163_v8  ;;  %v4519_v8 = vsub.f32 %v10666_v2, %v11795_v20 }
 0x2d6   :  { %7577 = vmatprep.mubr.f32.mxu1 %v12164_v45  ;;  %v10675_v45 = vsub.f32 %v4021_v5, %v4073_v17 }
 0x2d9   :  { %7578 = vmatmul.mubr.f32.gmra.mrb[50].mxu1 %v12165_v59  ;;  %v10677_v59 = vsub.f32 %v4022_v34, %v4076_v48 }
 0x2da   :  { %7580 = vmatprep.mubr.f32.mxu1 %v12166_v14  ;;  %v4526_v14 = vsub.f32 %v10668_v43, %v11794_v3 }
 0x2dd   :  { %7581 = vmatmul.mubr.f32.gmra.mrb[52].mxu1 %v12167_v10  ;;  %v4520_v10 = vand.u32 4294901760, %v4519_v8 }
 0x2de   :  { %7583 = vmatprep.mubr.f32.mxu1 %v12168_v38  ;;  %v4527_v38 = vand.u32 4294901760, %v4526_v14 }
 0x2e1   :  { %7584 = vmatmul.mubr.f32.gmra.mrb[54].mxu1 %v12169_v40  ;;  %v10682_v40 = vpack.c.bf16 %v4527_v38, %v4520_v10 }
 0x2e2   :  { %7586 = vmatprep.mubr.f32.mxu1 %v12170_v21  ;;  %v10686_v21 = vpack.c.bf16 %v10653_v57, %v10648_v6 }
 0x2e5   :  { %7587 = vmatmul.mubr.f32.gmra.mrb[56].mxu1 %v12171_v29  ;;  %v10691_v29 = vsub.f32 %v10440_v44, %v4037_v60  ;;  %v10724_v60 = vsub.f32 %v10486_v25, %v4052_v46 }
 0x2e6   :  { %7589 = vmatprep.mubr.f32.mxu1 %v12172_v33  ;;  %v10696_v33 = vsub.f32 %v10447_v12, %v4040_v9  ;;  %v10719_v12 = vsub.f32 %v10481_v23, %v4049_v51  ;;  %v10738_v9 = vsub.f32 %v10511_v50, %v4058_v7  ;;  %v10752_v23 = vsub.f32 %v10535_v0, %v4064_v15 }
 0x2e7   :  { %12184 = vst [vmem:[#allocation31_spill] sm:$0xff] %v10691_v29  ;;  %12189 = vst [vmem:[#allocation38_spill] sm:$0xff] %v10724_v60  ;;  %v11803_v51 = vand.u32 4294901760, %v10691_v29  ;;  %v11796_v7 = vand.u32 4294901760, %v10724_v60  ;;  %v10777_v15 = vpack.c.bf16 %v10668_v43, %v10666_v2 }
 0x2e8   :  { %12185 = vst [vmem:[#allocation23_spill] sm:$0xff] %v10696_v33  ;;  %12188 = vst [vmem:[#allocation33_spill] sm:$0xff] %v10719_v12  ;;  %v11802_v46 = vand.u32 4294901760, %v10696_v33  ;;  %v11798_v8 = vand.u32 4294901760, %v10738_v9 }
 0x2e9   :  { %7590 = vmatmul.mubr.f32.gmra.mrb[58].mxu1 %v12173_v32  ;;  %v10700_v32 = vpack.c.bf16 %v10696_v33, %v10691_v29  ;;  %12191 = vst [vmem:[#allocation42_spill] sm:$0xff] %v10738_v9  ;;  %12193 = vst [vmem:[#allocation6_spill] sm:$0xff] %v10752_v23  ;;  %v4449_v0 = vsub.f32 %v10691_v29, %v11803_v51  ;;  %v4484_v13 = vsub.f32 %v10724_v60, %v11796_v7 }
 0x2ea   :  { %7592 = vmatprep.mubr.f32.mxu1 %v12174_v22  ;;  %v10705_v22 = vsub.f32 %v10453_v27, %v4043_v11  ;;  %v10728_v27 = vpack.c.bf16 %v10724_v60, %v10719_v12 }
 0x2eb   :  { %v4450_v17 = vand.u32 4294901760, %v4449_v0  ;;  %v4485_v3 = vand.u32 4294901760, %v4484_v13 }
 0x2ec   :  { %12186 = vst [vmem:[#allocation30_spill] sm:$0xff] %v10705_v22 }
 0x2ed   :  { %7593 = vmatmul.mubr.f32.gmra.mrb[60].mxu1 %v12175_v41  ;;  %v10710_v41 = vsub.f32 %v10458_v4, %v4046_v24  ;;  %v10733_v4 = vsub.f32 %v10506_v63, %v4055_v37  ;;  %v10747_v24 = vsub.f32 %v10530_v42, %v4061_v16  ;;  %v11801_v63 = vand.u32 4294901760, %v10705_v22  ;;  %v10767_v42 = vld [vmem:[%s11606_s4] ss:$0 sm:$0xff] }
 0x2ee   :  { %7595 = vmatprep.mubr.f32.mxu1 %v12176_v30  ;;  %v11797_v37 = vand.u32 4294901760, %v10719_v12  ;;  %v4456_v16 = vsub.f32 %v10696_v33, %v11802_v46 }
 0x2ef   :  { %12187 = vst [vmem:[#allocation34_spill] sm:$0xff] %v10710_v41  ;;  %v10714_v44 = vpack.c.bf16 %v10710_v41, %v10705_v22  ;;  %12190 = vst [vmem:[#allocation37_spill] sm:$0xff] %v10733_v4  ;;  %v10742_v11 = vpack.c.bf16 %v10738_v9, %v10733_v4  ;;  %v10756_v25 = vpack.c.bf16 %v10752_v23, %v10747_v24  ;;  %v11800_v50 = vand.u32 4294901760, %v10710_v41 }
 0x2f0   :  { %12192 = vst [vmem:[#allocation5_spill] sm:$0xff] %v10747_v24  ;;  %v4463_v30 = vsub.f32 %v10705_v22, %v11801_v63  ;;  %v4477_v31 = vsub.f32 %v10719_v12, %v11797_v37  ;;  %v4457_v48 = vand.u32 4294901760, %v4456_v16  ;;  %v11799_v35 = vand.u32 4294901760, %v10733_v4 }
 0x2f1   :  { %7596 = vmatmul.mubr.f32.gmra.mrb[62].mxu1 %v12177_v56  ;;  %v4470_v56 = vsub.f32 %v10710_v41, %v11800_v50 }
 0x2f2   :  { %v4464_v54 = vand.u32 4294901760, %v4463_v30  ;;  %v4478_v38 = vand.u32 4294901760, %v4477_v31  ;;  %v10801_v16 = vpack.c.bf16 %v4457_v48, %v4450_v17  ;;  %v10806_v30 = vsub.f32 %v10733_v4, %v11799_v35 }
 0x2f3   :  { %v4471_v53 = vand.u32 4294901760, %v4470_v56  ;;  %v11809_v48 = vand.u32 4294901760, %v10747_v24 }
 0x2f4   :  { %v10821_v17 = vpack.c.bf16 %v4485_v3, %v4478_v38  ;;  %v4492_v3 = vand.u32 4294901760, %v10806_v30 }
 0x2f5   :  { %v10811_v13 = vpack.c.bf16 %v4471_v53, %v4464_v54  ;;  %v4505_v30 = vsub.f32 %v10747_v24, %v11809_v48 }
 0x388   :  { %v7552_v39 = vpop.f32.mrb[32].mxu1 }
 0x389   :  { %v8526_v55 = vadd.f32 %v7552_v39, %v10767_v42  ;;  %v3785_v5 = vpop.f32.mrb[33].mxu1 }
 0x38a   :  { %v8527_v34 = vadd.f32 %v10767_v42, %v3785_v5 }
 0x38b   :  { %v3976_v36 = vmax.f32 %v8526_v55, 0.0  ;;  %v10816_v55 = vsub.f32 %v10738_v9, %v11798_v8 }
 0x38c   :  { %v3975_v14 = vmax.f32 %v8527_v34, 0.0  ;;  %v7555_v10 = vpop.f32.mrb[34].mxu1 }
 0x38d   :  { %v10795_v20 = vand.u32 4294901760, %v3976_v36  ;;  %v8528_v39 = vadd.f32 %v7555_v10, %v10767_v42  ;;  %v3797_v7 = vpop.f32.mrb[35].mxu1 }
 0x38e   :  { %v10798_v37 = vand.u32 4294901760, %v3975_v14  ;;  %v8529_v0 = vadd.f32 %v10767_v42, %v3797_v7 }
 0x38f   :  { %v10809_v56 = vsub.f32 %v3976_v36, %v10795_v20  ;;  %v3978_v31 = vmax.f32 %v8528_v39, 0.0  ;;  %v11812_v39 = vand.u32 4294901760, %v10752_v23 }
 0x390   :  { %v10819_v7 = vsub.f32 %v3975_v14, %v10798_v37  ;;  %v3977_v5 = vmax.f32 %v8529_v0, 0.0  ;;  %v7558_v34 = vpop.f32.mrb[36].mxu1 }
 0x391   :  { %v11804_v36 = vand.u32 4294901760, %v10809_v56  ;;  %v10825_v10 = vand.u32 4294901760, %v3978_v31  ;;  %v8530_v54 = vadd.f32 %v7558_v34, %v10767_v42  ;;  %v3809_v53 = vpop.f32.mrb[37].mxu1  ;;  %v4499_v34 = vand.u32 4294901760, %v10816_v55 }
 0x392   :  { %v10829_v8 = vand.u32 4294901760, %v3977_v5  ;;  %v8531_v14 = vadd.f32 %v10767_v42, %v3809_v53  ;;  %v11806_v0 = vand.u32 4294901760, %v10819_v7 }
 0x393   :  { %v4124_v38 = vsub.f32 %v10809_v56, %v11804_v36  ;;  %v10838_v35 = vsub.f32 %v3978_v31, %v10825_v10  ;;  %v3980_v50 = vmax.f32 %v8530_v54, 0.0 }
 0x394   :  { %v10842_v63 = vsub.f32 %v3977_v5, %v10829_v8  ;;  %v3979_v46 = vmax.f32 %v8531_v14, 0.0  ;;  %v7561_v51 = vpop.f32.mrb[38].mxu1  ;;  %v4114_v53 = vsub.f32 %v10819_v7, %v11806_v0  ;;  %v4512_v5 = vsub.f32 %v10752_v23, %v11812_v39 }
 0x395   :  { %v10850_v36 = vand.u32 4294901760, %v3980_v50  ;;  %v8532_v31 = vadd.f32 %v7561_v51, %v10767_v42  ;;  %v3821_v54 = vpop.f32.mrb[39].mxu1  ;;  %v11815_v55 = vand.u32 4294901760, %v10838_v35  ;;  %v4125_v43 = vand.u32 4294901760, %v4124_v38 }
 0x396   :  { %v10857_v14 = vand.u32 4294901760, %v3979_v46  ;;  %v8533_v62 = vadd.f32 %v10767_v42, %v3821_v54  ;;  %v4115_v0 = vand.u32 4294901760, %v4114_v53  ;;  %v11817_v18 = vand.u32 4294901760, %v10842_v63 }
 0x397   :  { %v10862_v48 = vsub.f32 %v3980_v50, %v10850_v36  ;;  %v3982_v2 = vmax.f32 %v8532_v31, 0.0  ;;  %v4144_v51 = vsub.f32 %v10838_v35, %v11815_v55  ;;  %v4506_v54 = vand.u32 4294901760, %v4505_v30 }
 0x398   :  { %v10868_v24 = vsub.f32 %v3979_v46, %v10857_v14  ;;  %v3981_v39 = vmax.f32 %v8533_v62, 0.0  ;;  %v7564_v23 = vpop.f32.mrb[40].mxu1  ;;  %7630 = vmatprep.mubr.f32.mxu0 %v4115_v0  ;;  %v4134_v53 = vsub.f32 %v10842_v63, %v11817_v18  ;;  %v4513_v55 = vand.u32 4294901760, %v4512_v5 }
 0x399   :  { %12194 = vst [vmem:[#allocation41_spill] sm:$0xff] %v10862_v48  ;;  %v10873_v38 = vand.u32 4294901760, %v3982_v2  ;;  %v8534_v50 = vadd.f32 %v7564_v23, %v10767_v42  ;;  %v3833_v31 = vpop.f32.mrb[41].mxu1  ;;  %7631 = vmatmul.mubr.f32.vlgmr.msra.gmra.mrb[32].mxu0 %v4125_v43  ;;  %v11819_v9 = vand.u32 4294901760, %v10862_v48  ;;  %v4145_v60 = vand.u32 4294901760, %v4144_v51 }
 0x39a   :  { %12195 = vst [vmem:[#allocation46_spill] sm:$0xff] %v10868_v24  ;;  %v10877_v4 = vand.u32 4294901760, %v3981_v39  ;;  %v8535_v62 = vadd.f32 %v10767_v42, %v3833_v31  ;;  %8305 = vmatpush3.bf16.msra.mxu0 %v10663_v47  ;;  %v4135_v46 = vand.u32 4294901760, %v4134_v53  ;;  %v11821_v0 = vand.u32 4294901760, %v10868_v24 }
 0x39b   :  { %v10883_v30 = vsub.f32 %v3982_v2, %v10873_v38  ;;  %v3984_v18 = vmax.f32 %v8534_v50, 0.0  ;;  %8307 = vmatprep.subr.bf16.mxu0 %v10801_v16  ;;  %v4164_v43 = vsub.f32 %v10862_v48, %v11819_v9  ;;  %v10895_v2 = vpack.c.bf16 %v4499_v34, %v4492_v3 }
 0x39c   :  { %v10890_v23 = vsub.f32 %v3981_v39, %v10877_v4  ;;  %v3983_v5 = vmax.f32 %v8535_v62, 0.0  ;;  %v7567_v31 = vpop.f32.mrb[42].mxu1  ;;  %7633 = vmatprep.mubr.f32.mxu0 %v4135_v46  ;;  %v4154_v47 = vsub.f32 %v10868_v24, %v11821_v0  ;;  %v10901_v12 = vpack.c.bf16 %v4513_v55, %v4506_v54 }
 0x39d   :  { %12196 = vst [vmem:[#allocation45_spill] sm:$0xff] %v10883_v30  ;;  %v10897_v53 = vand.u32 4294901760, %v3984_v18  ;;  %v8536_v51 = vadd.f32 %v7567_v31, %v10767_v42  ;;  %v3845_v50 = vpop.f32.mrb[43].mxu1  ;;  %7634 = vmatmul.mubr.f32.gmra.mrb[34].mxu0 %v4145_v60  ;;  %v11822_v9 = vand.u32 4294901760, %v10883_v30  ;;  %v4165_v31 = vand.u32 4294901760, %v4164_v43 }
 0x39e   :  { %12197 = vst [vmem:[#allocation50_spill] sm:$0xff] %v10890_v23  ;;  %v10903_v39 = vand.u32 4294901760, %v3983_v5  ;;  %v8537_v62 = vadd.f32 %v10767_v42, %v3845_v50  ;;  %v4155_v46 = vand.u32 4294901760, %v4154_v47  ;;  %8309 = vmatpush3.bf16.msra.mxu0 %v10801_v16  ;;  %v11825_v3 = vand.u32 4294901760, %v10890_v23 }
 0x39f   :  { %v10909_v34 = vsub.f32 %v3984_v18, %v10897_v53  ;;  %v3986_v0 = vmax.f32 %v8536_v51, 0.0  ;;  %v4184_v60 = vsub.f32 %v10883_v30, %v11822_v9  ;;  %8311 = vmatprep.subr.bf16.mxu0 %v10811_v13 }
 0x3a0   :  { %v10916_v55 = vsub.f32 %v3983_v5, %v10903_v39  ;;  %v3985_v54 = vmax.f32 %v8537_v62, 0.0  ;;  %v7570_v47 = vpop.f32.mrb[44].mxu1  ;;  %7636 = vmatprep.mubr.f32.mxu0 %v4155_v46  ;;  %v4174_v16 = vsub.f32 %v10890_v23, %v11825_v3 }
 0x3a1   :  { %12198 = vst [vmem:[#allocation49_spill] sm:$0xff] %v10909_v34  ;;  %v10922_v51 = vand.u32 4294901760, %v3986_v0  ;;  %v8538_v43 = vadd.f32 %v7570_v47, %v10767_v42  ;;  %v3857_v50 = vpop.f32.mrb[45].mxu1  ;;  %7637 = vmatmul.mubr.f32.gmra.mrb[36].mxu0 %v4165_v31  ;;  %v11826_v9 = vand.u32 4294901760, %v10909_v34  ;;  %v4185_v47 = vand.u32 4294901760, %v4184_v60 }
 0x3a2   :  { %12199 = vst [vmem:[#allocation54_spill] sm:$0xff] %v10916_v55  ;;  %v10927_v41 = vand.u32 4294901760, %v3985_v54  ;;  %v8539_v62 = vadd.f32 %v10767_v42, %v3857_v50  ;;  %v4175_v46 = vand.u32 4294901760, %v4174_v16  ;;  %v11829_v22 = vand.u32 4294901760, %v10916_v55  ;;  %8313 = vmatpush3.bf16.msra.mxu0 %v10811_v13 }
 0x3a3   :  { %12200 = vst [vmem:[#allocation53_spill] sm:$0xff] %v10922_v51  ;;  %v10933_v3 = vsub.f32 %v3986_v0, %v10922_v51  ;;  %v3988_v18 = vmax.f32 %v8538_v43, 0.0  ;;  %v4204_v31 = vsub.f32 %v10909_v34, %v11826_v9  ;;  %8315 = vmatprep.subr.bf16.mxu0 %v10821_v17  ;;  %v12203_v0 = vand.u32 4294901760, %v10675_v45 }
 0x3a4   :  { %v10940_v5 = vsub.f32 %v3985_v54, %v10927_v41  ;;  %v3987_v50 = vmax.f32 %v8539_v62, 0.0  ;;  %v7573_v16 = vpop.f32.mrb[46].mxu1  ;;  %7639 = vmatprep.mubr.f32.mxu0 %v4175_v46  ;;  %v4194_v13 = vsub.f32 %v10916_v55, %v11829_v22  ;;  %v12205_v62 = vand.u32 4294901760, %v10677_v59 }
 0x3a5   :  { %12201 = vst [vmem:[#allocation58_spill] sm:$0xff] %v10933_v3  ;;  %v4533_v60 = vsub.f32 %v10675_v45, %v12203_v0  ;;  %v10948_v43 = vand.u32 4294901760, %v3988_v18  ;;  %v8540_v9 = vadd.f32 %v7573_v16, %v10767_v42  ;;  %v3869_v33 = vpop.f32.mrb[47].mxu1  ;;  %7640 = vmatmul.mubr.f32.gmra.mrb[38].mxu0 %v4185_v47  ;;  %v11836_v54 = vand.u32 4294901760, %v10933_v3 }
 0x3a6   :  { %12202 = vst [vmem:[#allocation57_spill] sm:$0xff] %v10940_v5  ;;  %v4540_v46 = vsub.f32 %v10677_v59, %v12205_v62  ;;  %v10955_v29 = vand.u32 4294901760, %v3987_v50  ;;  %v8541_v22 = vadd.f32 %v10767_v42, %v3869_v33  ;;  %v4195_v57 = vand.u32 4294901760, %v4194_v13  ;;  %8317 = vmatpush3.bf16.msra.mxu0 %v10821_v17 }
 0x3a7   :  { %12204 = vst [vmem:[#allocation9_spill] sm:$0xff] %v10948_v43  ;;  %v11841_v6 = vand.u32 4294901760, %v10940_v5  ;;  %v10961_v0 = vsub.f32 %v3988_v18, %v10948_v43  ;;  %v3990_v16 = vmax.f32 %v8540_v9, 0.0  ;;  %v4205_v47 = vand.u32 4294901760, %v4204_v31  ;;  %8319 = vmatprep.subr.bf16.mxu0 %v10895_v2 }
 0x3a8   :  { %12206 = vst [vmem:[#allocation10_spill] sm:$0xff] %v10955_v29  ;;  %v4224_v19 = vsub.f32 %v10933_v3, %v11836_v54  ;;  %v10968_v62 = vsub.f32 %v3987_v50, %v10955_v29  ;;  %v3989_v33 = vmax.f32 %v8541_v22, 0.0  ;;  %v7576_v13 = vpop.f32.mrb[48].mxu1  ;;  %7642 = vmatprep.mubr.f32.mxu0 %v4195_v57  ;;  %v4534_v18 = vand.u32 4294901760, %v4533_v60 }
 0x3a9   :  { %12207 = vst [vmem:[#allocation11_spill] sm:$0xff] %v10961_v0  ;;  %v4214_v17 = vsub.f32 %v10940_v5, %v11841_v6  ;;  %v10973_v26 = vand.u32 4294901760, %v3990_v16  ;;  %v8542_v9 = vadd.f32 %v7576_v13, %v10767_v42  ;;  %v3881_v31 = vpop.f32.mrb[49].mxu1  ;;  %7643 = vmatmul.mubr.f32.gmra.mrb[40].mxu0 %v4205_v47  ;;  %v11844_v54 = vand.u32 4294901760, %v10961_v0 }
 0x3aa   :  { %12208 = vst [vmem:[#allocation12_spill] sm:$0xff] %v10968_v62  ;;  %v4541_v3 = vand.u32 4294901760, %v4540_v46  ;;  %v10977_v1 = vand.u32 4294901760, %v3989_v33  ;;  %v8543_v22 = vadd.f32 %v10767_v42, %v3881_v31  ;;  %v11847_v57 = vand.u32 4294901760, %v10968_v62  ;;  %8321 = vmatpush3.bf16.msra.mxu0 %v10895_v2 }
 0x3ab   :  { %12209 = vst [vmem:[#allocation13_spill] sm:$0xff] %v10973_v26  ;;  %v4215_v50 = vand.u32 4294901760, %v4214_v17  ;;  %v10983_v60 = vsub.f32 %v3990_v16, %v10973_v26  ;;  %v3992_v6 = vmax.f32 %v8542_v9, 0.0  ;;  %v4225_v5 = vand.u32 4294901760, %v4224_v19  ;;  %8323 = vmatprep.subr.bf16.mxu0 %v10901_v12 }
 0x3ac   :  { %12210 = vst [vmem:[#allocation14_spill] sm:$0xff] %v10977_v1  ;;  %v4244_v47 = vsub.f32 %v10961_v0, %v11844_v54  ;;  %v10990_v46 = vsub.f32 %v3989_v33, %v10977_v1  ;;  %v3991_v13 = vmax.f32 %v8543_v22, 0.0  ;;  %v7579_v17 = vpop.f32.mrb[50].mxu1  ;;  %v4234_v2 = vsub.f32 %v10968_v62, %v11847_v57 }
 0x3ad   :  { %12211 = vst [vmem:[#allocation15_spill] sm:$0xff] %v10983_v60  ;;  %7645 = vmatprep.mubr.f32.mxu0 %v4215_v50  ;;  %v10995_v16 = vand.u32 4294901760, %v3992_v6  ;;  %v8544_v19 = vadd.f32 %v7579_v17, %v10767_v42  ;;  %v3893_v9 = vpop.f32.mrb[51].mxu1  ;;  %v11852_v31 = vand.u32 4294901760, %v10983_v60  ;;  %v8330_v54 = vpack.c.bf16 %v4541_v3, %v4534_v18 }
 0x3ae   :  { %12212 = vst [vmem:[#allocation16_spill] sm:$0xff] %v10990_v46  ;;  %7646 = vmatmul.mubr.f32.gmra.mrb[42].mxu0 %v4225_v5  ;;  %v10999_v0 = vand.u32 4294901760, %v3991_v13  ;;  %v8545_v33 = vadd.f32 %v10767_v42, %v3893_v9  ;;  %v4235_v22 = vand.u32 4294901760, %v4234_v2  ;;  %v11853_v50 = vand.u32 4294901760, %v10990_v46 }
 0x3af   :  { %12213 = vst [vmem:[#allocation17_spill] sm:$0xff] %v10995_v16  ;;  %8325 = vmatpush3.bf16.msra.mxu0 %v10901_v12  ;;  %v11005_v57 = vsub.f32 %v3992_v6, %v10995_v16  ;;  %v3994_v62 = vmax.f32 %v8544_v19, 0.0  ;;  %v4245_v34 = vand.u32 4294901760, %v4244_v47  ;;  %v4264_v5 = vsub.f32 %v10983_v60, %v11852_v31 }
 0x3b0   :  { %12214 = vst [vmem:[#allocation18_spill] sm:$0xff] %v10999_v0  ;;  %8327 = vmatprep.subr.bf16.mxu0 %v10682_v40  ;;  %v11012_v3 = vsub.f32 %v3991_v13, %v10999_v0  ;;  %v3993_v18 = vmax.f32 %v8545_v33, 0.0  ;;  %v7582_v17 = vpop.f32.mrb[52].mxu1  ;;  %7648 = vmatprep.mubr.f32.mxu0 %v4235_v22  ;;  %v4254_v12 = vsub.f32 %v10990_v46, %v11853_v50 }
 0x3b1   :  { %12215 = vst [vmem:[#allocation7_spill] sm:$0xff] %v11005_v57  ;;  %v11017_v6 = vand.u32 4294901760, %v3994_v62  ;;  %v8546_v47 = vadd.f32 %v7582_v17, %v10767_v42  ;;  %v3905_v2 = vpop.f32.mrb[53].mxu1  ;;  %v11858_v19 = vand.u32 4294901760, %v11005_v57  ;;  %v4265_v60 = vand.u32 4294901760, %v4264_v5 }
 0x3b2   :  { %12216 = vst [vmem:[#allocation8_spill] sm:$0xff] %v11012_v3  ;;  %7649 = vmatmul.mubr.f32.gmra.mrb[44].mxu0 %v4245_v34  ;;  %v11021_v9 = vand.u32 4294901760, %v3993_v18  ;;  %v8547_v13 = vadd.f32 %v10767_v42, %v3905_v2  ;;  %v4255_v31 = vand.u32 4294901760, %v4254_v12  ;;  %v11861_v33 = vand.u32 4294901760, %v11012_v3 }
 0x3b3   :  { %12217 = vst [vmem:[#allocation2_spill] sm:$0xff] %v11017_v6  ;;  %8329 = vmatpush3.bf16.msra.mxu0 %v10682_v40  ;;  %v11027_v22 = vsub.f32 %v3994_v62, %v11017_v6  ;;  %v3996_v50 = vmax.f32 %v8546_v47, 0.0  ;;  %v4284_v34 = vsub.f32 %v11005_v57, %v11858_v19 }
 0x3b4   :  { %12218 = vst [vmem:[#allocation32_spill] sm:$0xff] %v11021_v9  ;;  %8331 = vmatprep.subr.bf16.mxu0 %v8330_v54  ;;  %v11033_v17 = vsub.f32 %v3993_v18, %v11021_v9  ;;  %v3995_v46 = vmax.f32 %v8547_v13, 0.0  ;;  %v7585_v2 = vpop.f32.mrb[54].mxu1  ;;  %7651 = vmatprep.mubr.f32.mxu0 %v4255_v31  ;;  %v4274_v40 = vsub.f32 %v11012_v3, %v11861_v33 }
 0x3b5   :  { %12219 = vst [vmem:[#allocation36_spill] sm:$0xff] %v11027_v22  ;;  %v11038_v12 = vand.u32 4294901760, %v3996_v50  ;;  %v8548_v62 = vadd.f32 %v7585_v2, %v10767_v42  ;;  %v3917_v5 = vpop.f32.mrb[55].mxu1  ;;  %v11866_v47 = vand.u32 4294901760, %v11027_v22  ;;  %v4285_v3 = vand.u32 4294901760, %v4284_v34 }
 0x3b6   :  { %12220 = vst [vmem:[#allocation3_spill] sm:$0xff] %v11033_v17  ;;  %7652 = vmatmul.mubr.f32.gmra.mrb[46].mxu0 %v4265_v60  ;;  %v11042_v19 = vand.u32 4294901760, %v3995_v46  ;;  %v8549_v18 = vadd.f32 %v10767_v42, %v3917_v5  ;;  %v4275_v57 = vand.u32 4294901760, %v4274_v40  ;;  %v11871_v13 = vand.u32 4294901760, %v11033_v17 }
 0x3b7   :  { %12221 = vst [vmem:[#allocation35_spill] sm:$0xff] %v11038_v12  ;;  %8333 = vmatpush3.bf16.msra.mxu0 %v8330_v54  ;;  %v11047_v31 = vsub.f32 %v3996_v50, %v11038_v12  ;;  %v3998_v33 = vmax.f32 %v8548_v62, 0.0  ;;  %v4304_v2 = vsub.f32 %v11027_v22, %v11866_v47 }
 0x3b8   :  { %12222 = vst [vmem:[#allocation40_spill] sm:$0xff] %v11042_v19  ;;  %8335 = vmatprep.subr.bf16.mxu0 %v10686_v21  ;;  %v11054_v60 = vsub.f32 %v3995_v46, %v11042_v19  ;;  %v3997_v52 = vmax.f32 %v8549_v18, 0.0  ;;  %v7588_v5 = vpop.f32.mrb[56].mxu1  ;;  %7654 = vmatprep.mubr.f32.mxu0 %v4275_v57  ;;  %v4294_v54 = vsub.f32 %v11033_v17, %v11871_v13 }
 0x3b9   :  { %12223 = vst [vmem:[#allocation4_spill] sm:$0xff] %v11047_v31  ;;  %v11059_v50 = vand.u32 4294901760, %v3998_v33  ;;  %v8550_v34 = vadd.f32 %v7588_v5, %v10767_v42  ;;  %v3929_v40 = vpop.f32.mrb[57].mxu1  ;;  %v11878_v62 = vand.u32 4294901760, %v11047_v31  ;;  %v4305_v13 = vand.u32 4294901760, %v4304_v2 }
 0x3ba   :  { %12224 = vst [vmem:[#allocation39_spill] sm:$0xff] %v11054_v60  ;;  %7655 = vmatmul.mubr.f32.gmra.mrb[48].mxu0 %v4285_v3  ;;  %v11063_v47 = vand.u32 4294901760, %v3997_v52  ;;  %v8551_v46 = vadd.f32 %v10767_v42, %v3929_v40  ;;  %v4295_v22 = vand.u32 4294901760, %v4294_v54  ;;  %v11881_v18 = vand.u32 4294901760, %v11054_v60 }
 0x3bb   :  { %12225 = vst [vmem:[#allocation44_spill] sm:$0xff] %v11059_v50  ;;  %v11068_v57 = vsub.f32 %v3998_v33, %v11059_v50  ;;  %v4000_v55 = vmax.f32 %v8550_v34, 0.0  ;;  %v4324_v5 = vsub.f32 %v11047_v31, %v11878_v62 }
 0x3bc   :  { %12226 = vst [vmem:[#allocation43_spill] sm:$0xff] %v11063_v47  ;;  %v11074_v3 = vsub.f32 %v3997_v52, %v11063_v47  ;;  %v3999_v17 = vmax.f32 %v8551_v46, 0.0  ;;  %v7591_v30 = vpop.f32.mrb[58].mxu1  ;;  %7657 = vmatprep.mubr.f32.mxu0 %v4295_v22  ;;  %v4314_v54 = vsub.f32 %v11054_v60, %v11881_v18 }
 0x3bd   :  { %12227 = vst [vmem:[#allocation48_spill] sm:$0xff] %v11068_v57  ;;  %v11079_v40 = vand.u32 4294901760, %v4000_v55  ;;  %v8552_v33 = vadd.f32 %v7591_v30, %v10767_v42  ;;  %v3941_v34 = vpop.f32.mrb[59].mxu1  ;;  %v11888_v2 = vand.u32 4294901760, %v11068_v57  ;;  %v4325_v18 = vand.u32 4294901760, %v4324_v5 }
 0x3be   :  { %12228 = vst [vmem:[#allocation47_spill] sm:$0xff] %v11074_v3  ;;  %7658 = vmatmul.mubr.f32.gmra.mrb[50].mxu0 %v4305_v13  ;;  %v11083_v28 = vand.u32 4294901760, %v3999_v17  ;;  %v8553_v52 = vadd.f32 %v10767_v42, %v3941_v34  ;;  %v4315_v62 = vand.u32 4294901760, %v4314_v54  ;;  %v11891_v46 = vand.u32 4294901760, %v11074_v3 }
 0x3bf   :  { %12229 = vst [vmem:[#allocation52_spill] sm:$0xff] %v11079_v40  ;;  %v11088_v22 = vsub.f32 %v4000_v55, %v11079_v40  ;;  %v4002_v31 = vmax.f32 %v8552_v33, 0.0  ;;  %v4344_v30 = vsub.f32 %v11068_v57, %v11888_v2 }
 0x3c0   :  { %12230 = vst [vmem:[#allocation51_spill] sm:$0xff] %v11083_v28  ;;  %v11094_v13 = vsub.f32 %v3999_v17, %v11083_v28  ;;  %v4001_v60 = vmax.f32 %v8553_v52, 0.0  ;;  %v7594_v23 = vpop.f32.mrb[60].mxu1  ;;  %7660 = vmatprep.mubr.f32.mxu0 %v4315_v62  ;;  %v4334_v54 = vsub.f32 %v11074_v3, %v11891_v46 }
 0x3c1   :  { %12231 = vst [vmem:[#allocation56_spill] sm:$0xff] %v11088_v22  ;;  %v11099_v34 = vand.u32 4294901760, %v4002_v31  ;;  %v8554_v55 = vadd.f32 %v7594_v23, %v10767_v42  ;;  %v3953_v33 = vpop.f32.mrb[61].mxu1  ;;  %v11898_v5 = vand.u32 4294901760, %v11088_v22  ;;  %v4345_v46 = vand.u32 4294901760, %v4344_v30 }
 0x3c2   :  { %12232 = vst [vmem:[#allocation55_spill] sm:$0xff] %v11094_v13  ;;  %7661 = vmatmul.mubr.f32.gmra.mrb[52].mxu0 %v4325_v18  ;;  %v11103_v48 = vand.u32 4294901760, %v4001_v60  ;;  %v8555_v17 = vadd.f32 %v10767_v42, %v3953_v33  ;;  %v4335_v2 = vand.u32 4294901760, %v4334_v54  ;;  %v11901_v52 = vand.u32 4294901760, %v11094_v13 }
 0x3c3   :  { %12233 = vst [vmem:[#allocation60_spill] sm:$0xff] %v11099_v34  ;;  %v11108_v62 = vsub.f32 %v4002_v31, %v11099_v34  ;;  %v4004_v57 = vmax.f32 %v8554_v55, 0.0  ;;  %v4364_v23 = vsub.f32 %v11088_v22, %v11898_v5 }
 0x3c4   :  { %12234 = vst [vmem:[#allocation59_spill] sm:$0xff] %v11103_v48  ;;  %v11114_v18 = vsub.f32 %v4001_v60, %v11103_v48  ;;  %v4003_v3 = vmax.f32 %v8555_v17, 0.0  ;;  %v7597_v49 = vpop.f32.mrb[62].mxu1  ;;  %7663 = vmatprep.mubr.f32.mxu0 %v4335_v2  ;;  %v4354_v54 = vsub.f32 %v11094_v13, %v11901_v52 }
 0x3c5   :  { %12235 = vst [vmem:[#allocation62_spill] sm:$0xff] %v11108_v62  ;;  %v11119_v33 = vand.u32 4294901760, %v4004_v57  ;;  %v8556_v31 = vadd.f32 %v7597_v49, %v10767_v42  ;;  %v3965_v55 = vpop.f32.mrb[63].mxu1  ;;  %v11904_v30 = vand.u32 4294901760, %v11108_v62  ;;  %v4365_v52 = vand.u32 4294901760, %v4364_v23 }
 0x3c6   :  { %7664 = vmatmul.mubr.f32.gmra.mrb[54].mxu0 %v4345_v46  ;;  %v11123_v24 = vand.u32 4294901760, %v4003_v3  ;;  %v8557_v60 = vadd.f32 %v10767_v42, %v3965_v55  ;;  %v4355_v5 = vand.u32 4294901760, %v4354_v54  ;;  %v11905_v17 = vand.u32 4294901760, %v11114_v18 }
 0x3c7   :  { %12236 = vst [vmem:[#allocation61_spill] sm:$0xff] %v11119_v33  ;;  %v11128_v2 = vsub.f32 %v4004_v57, %v11119_v33  ;;  %v4006_v22 = vmax.f32 %v8556_v31, 0.0  ;;  %v4384_v49 = vsub.f32 %v11108_v62, %v11904_v30 }
 0x3c8   :  { %12237 = vst [vmem:[#allocation64_spill] sm:$0xff] %v11123_v24  ;;  %v11134_v46 = vsub.f32 %v4003_v3, %v11123_v24  ;;  %v4005_v13 = vmax.f32 %v8557_v60, 0.0  ;;  %7666 = vmatprep.mubr.f32.mxu0 %v4355_v5  ;;  %v4374_v42 = vsub.f32 %v11114_v18, %v11905_v17 }
 0x3c9   :  { %v11139_v54 = vand.u32 4294901760, %v4006_v22  ;;  %v11908_v57 = vand.u32 4294901760, %v11128_v2  ;;  %v4385_v3 = vand.u32 4294901760, %v4384_v49 }
 0x3ca   :  { %7667 = vmatmul.mubr.f32.gmra.mrb[56].mxu0 %v4365_v52  ;;  %v11142_v31 = vand.u32 4294901760, %v4005_v13  ;;  %v4375_v23 = vand.u32 4294901760, %v4374_v42  ;;  %v11911_v55 = vand.u32 4294901760, %v11134_v46 }
 0x3cb   :  { %12238 = vst [vmem:[#allocation63_spill] sm:$0xff] %v11139_v54  ;;  %v11146_v30 = vsub.f32 %v4006_v22, %v11139_v54  ;;  %v4404_v5 = vsub.f32 %v11128_v2, %v11908_v57 }
 0x3cc   :  { %12239 = vst [vmem:[#allocation66_spill] sm:$0xff] %v11142_v31  ;;  %v11152_v60 = vsub.f32 %v4005_v13, %v11142_v31  ;;  %7669 = vmatprep.mubr.f32.mxu0 %v4375_v23  ;;  %v4394_v52 = vsub.f32 %v11134_v46, %v11911_v55 }
 0x3cd   :  { %v11909_v42 = vand.u32 4294901760, %v11146_v30  ;;  %v4405_v62 = vand.u32 4294901760, %v4404_v5  ;;  %v12250_v5 = vld [vmem:[#allocation24_spill] sm:$0xff] }
 0x3ce   :  { %7670 = vmatmul.mubr.f32.gmra.mrb[58].mxu0 %v4385_v3  ;;  %v4395_v17 = vand.u32 4294901760, %v4394_v52  ;;  %v11910_v22 = vand.u32 4294901760, %v11152_v60  ;;  %v12249_v3 = vld [vmem:[#allocation57_spill] sm:$0xff]  ;;  %v12251_v52 = vld [vmem:[#allocation58_spill] sm:$0xff] }
 0x3cf   :  { %v4424_v49 = vsub.f32 %v11146_v30, %v11909_v42  ;;  %v12256_v42 = vld [vmem:[#allocation21_spill] sm:$0xff] }
 0x3d0   :  { %7672 = vmatprep.mubr.f32.mxu0 %v4395_v17  ;;  %v4414_v13 = vsub.f32 %v11152_v60, %v11910_v22  ;;  %v12247_v17 = vld [vmem:[#allocation20_spill] sm:$0xff]  ;;  %v12257_v22 = vld [vmem:[#allocation26_spill] sm:$0xff] }
 0x3d1   :  { %v4425_v57 = vand.u32 4294901760, %v4424_v49  ;;  %v12252_v49 = vld [vmem:[#allocation12_spill] sm:$0xff]  ;;  %v12258_v55 = vand.u32 4294901760, %v12257_v22  ;;  %v12268_v22 = vld [vmem:[#allocation47_spill] sm:$0xff] }
 0x3d2   :  { %7673 = vmatmul.mubr.f32.gmra.mrb[60].mxu0 %v4405_v62  ;;  %v4415_v23 = vand.u32 4294901760, %v4414_v13  ;;  %v12246_v62 = vld [vmem:[#allocation54_spill] sm:$0xff]  ;;  %v12253_v13 = vld [vmem:[#allocation27_spill] sm:$0xff] }
 0x3d4   :  { %7675 = vmatprep.mubr.f32.mxu0 %v4415_v23  ;;  %v12254_v23 = vld [vmem:[#allocation11_spill] sm:$0xff] }
 0x3d6   :  { %7676 = vmatmul.mubr.f32.gmra.mrb[62].mxu0 %v4425_v57  ;;  %v12248_v57 = vld [vmem:[#allocation49_spill] sm:$0xff] }
 0x3d7   :  { %7710 = vmatprep.mubr.f32.mxu0 %v10798_v37 }
 0x3da   :  { %7711 = vmatmul.mubr.f32.vlgmr.msra.gmra.mrb[32].mxu0 %v10795_v20 }
 0x3db   :  { %8337 = vmatpush3.bf16.msra.mxu0 %v10686_v21  ;;  %7713 = vmatprep.mubr.f32.mxu0 %v10829_v8  ;;  %v8362_v21 = vpack.c.bf16 %v10677_v59, %v10675_v45 }
 0x3dc   :  { %8339 = vmatprep.subr.bf16.mxu0 %v10700_v32 }
 0x3de   :  { %7714 = vmatmul.mubr.f32.gmra.mrb[34].mxu0 %v10825_v10 }
 0x3df   :  { %7716 = vmatprep.mubr.f32.mxu0 %v10857_v14  ;;  %8341 = vmatpush3.bf16.msra.mxu0 %v10700_v32  ;;  %v12240_v32 = vld [vmem:[#allocation46_spill] sm:$0xff] }
 0x3e0   :  { %8343 = vmatprep.subr.bf16.mxu0 %v10714_v44 }
 0x3e2   :  { %7717 = vmatmul.mubr.f32.gmra.mrb[36].mxu0 %v10850_v36 }
 0x3e3   :  { %7719 = vmatprep.mubr.f32.mxu0 %v10877_v4  ;;  %8345 = vmatpush3.bf16.msra.mxu0 %v10714_v44  ;;  %v12241_v44 = vld [vmem:[#allocation19_spill] sm:$0xff] }
 0x3e4   :  { %8347 = vmatprep.subr.bf16.mxu0 %v10728_v27 }
 0x3e6   :  { %7720 = vmatmul.mubr.f32.gmra.mrb[38].mxu0 %v10873_v38 }
 0x3e7   :  { %7722 = vmatprep.mubr.f32.mxu0 %v10903_v39  ;;  %8349 = vmatpush3.bf16.msra.mxu0 %v10728_v27  ;;  %v12242_v27 = vld [vmem:[#allocation41_spill] sm:$0xff] }
 0x3e8   :  { %8351 = vmatprep.subr.bf16.mxu0 %v10742_v11 }
 0x3ea   :  { %7723 = vmatmul.mubr.f32.gmra.mrb[40].mxu0 %v10897_v53 }
 0x3eb   :  { %7725 = vmatprep.mubr.f32.mxu0 %v10927_v41  ;;  %8353 = vmatpush3.bf16.msra.mxu0 %v10742_v11  ;;  %v12243_v11 = vld [vmem:[#allocation50_spill] sm:$0xff] }
 0x3ec   :  { %8355 = vmatprep.subr.bf16.mxu0 %v10756_v25 }
 0x3ee   :  { %7726 = vmatmul.mubr.f32.gmra.mrb[42].mxu0 %v10922_v51 }
 0x3ef   :  { %7728 = vmatprep.mubr.f32.mxu0 %v10955_v29  ;;  %8357 = vmatpush3.bf16.msra.mxu0 %v10756_v25  ;;  %v12244_v25 = vld [vmem:[#allocation25_spill] sm:$0xff]  ;;  %v12282_v29 = vld [vmem:[#allocation34_spill] sm:$0xff] }
 0x3f0   :  { %8359 = vmatprep.subr.bf16.mxu0 %v10777_v15  ;;  %v12283_v51 = vand.u32 4294901760, %v12282_v29  ;;  %v12292_v29 = vld [vmem:[#allocation37_spill] sm:$0xff] }
 0x3f2   :  { %7729 = vmatmul.mubr.f32.gmra.mrb[44].mxu0 %v10948_v43  ;;  %v12280_v43 = vld [vmem:[#allocation30_spill] sm:$0xff] }
 0x3f3   :  { %7731 = vmatprep.mubr.f32.mxu0 %v10977_v1  ;;  %8361 = vmatpush3.bf16.msra.mxu0 %v10777_v15  ;;  %v12245_v15 = vld [vmem:[#allocation45_spill] sm:$0xff]  ;;  %v12279_v1 = vand.u32 4294901760, %v10842_v63 }
 0x3f4   :  { %8363 = vmatprep.subr.bf16.mxu0 %v8362_v21 }
 0x3f6   :  { %7732 = vmatmul.mubr.f32.gmra.mrb[46].mxu0 %v10973_v26 }
 0x3f7   :  { %7734 = vmatprep.mubr.f32.mxu0 %v10999_v0  ;;  %8365 = vmatpush3.bf16.msra.mxu0 %v8362_v21  ;;  %v12255_v21 = vld [vmem:[#allocation16_spill] sm:$0xff] }
 0x3f8   :  { %8367 = vmatprep.subr.bf16.mxu0 %v10466_v61 }
 0x3fa   :  { %7735 = vmatmul.mubr.f32.gmra.mrb[48].mxu0 %v10995_v16  ;;  %v12276_v16 = vld [vmem:[#allocation23_spill] sm:$0xff] }
 0x3fb   :  { %7737 = vmatprep.mubr.f32.mxu0 %v11021_v9  ;;  %v12277_v0 = vand.u32 4294901760, %v12276_v16  ;;  %v12288_v16 = vld [vmem:[#allocation38_spill] sm:$0xff] }
 0x3fe   :  { %7738 = vmatmul.mubr.f32.gmra.mrb[50].mxu0 %v11017_v6  ;;  %v12274_v6 = vld [vmem:[#allocation31_spill] sm:$0xff] }
 0x3ff   :  { %7740 = vmatprep.mubr.f32.mxu0 %v11042_v19  ;;  %v12273_v19 = vand.u32 4294901760, %v10819_v7  ;;  %v12275_v9 = vand.u32 4294901760, %v12274_v6  ;;  %v12285_v6 = vand.u32 4294901760, %v12240_v32 }
 0x401   :  { %v8402_v26 = vpack.c.bf16 %v12277_v0, %v12275_v9 }
 0x402   :  { %7741 = vmatmul.mubr.f32.gmra.mrb[52].mxu0 %v11038_v12  ;;  %v12272_v12 = vld [vmem:[#allocation62_spill] sm:$0xff] }
 0x403   :  { %7743 = vmatprep.mubr.f32.mxu0 %v11063_v47  ;;  %v12267_v47 = vld [vmem:[#allocation4_spill] sm:$0xff] }
 0x406   :  { %7744 = vmatmul.mubr.f32.gmra.mrb[54].mxu0 %v11059_v50  ;;  %v12266_v50 = vld [vmem:[#allocation39_spill] sm:$0xff] }
 0x407   :  { %7746 = vmatprep.mubr.f32.mxu0 %v11083_v28  ;;  %v12265_v28 = vld [vmem:[#allocation36_spill] sm:$0xff] }
 0x40a   :  { %7747 = vmatmul.mubr.f32.gmra.mrb[56].mxu0 %v11079_v40  ;;  %v12264_v40 = vld [vmem:[#allocation3_spill] sm:$0xff] }
 0x40b   :  { %7749 = vmatprep.mubr.f32.mxu0 %v11103_v48  ;;  %v12263_v48 = vld [vmem:[#allocation7_spill] sm:$0xff] }
 0x40e   :  { %7750 = vmatmul.mubr.f32.gmra.mrb[58].mxu0 %v11099_v34  ;;  %v12262_v34 = vld [vmem:[#allocation8_spill] sm:$0xff] }
 0x40f   :  { %7752 = vmatprep.mubr.f32.mxu0 %v11123_v24  ;;  %v12261_v24 = vld [vmem:[#allocation15_spill] sm:$0xff] }
 0x412   :  { %7753 = vmatmul.mubr.f32.gmra.mrb[60].mxu0 %v11119_v33 }
 0x413   :  { %7755 = vmatprep.mubr.f32.mxu0 %v11142_v31 }
 0x416   :  { %7756 = vmatmul.mubr.f32.gmra.mrb[62].mxu0 %v11139_v54  ;;  %v12259_v54 = vld [vmem:[#allocation29_spill] sm:$0xff] }
 0x417   :  { %7790 = vmatprep.mubr.f32.mxu0 %v10819_v7  ;;  %v12260_v31 = vand.u32 4294901760, %v12259_v54  ;;  %v12269_v54 = vld [vmem:[#allocation48_spill] sm:$0xff]  ;;  %v12284_v7 = vand.u32 4294901760, %v10838_v35 }
 0x419   :  { %v8398_v33 = vpack.c.bf16 %v12260_v31, %v12258_v55  ;;  %v12270_v31 = vld [vmem:[#allocation55_spill] sm:$0xff]  ;;  %v12271_v55 = vld [vmem:[#allocation56_spill] sm:$0xff] }
 0x41a   :  { %7791 = vmatmul.mubr.f32.vlgmr.msra.gmra.mrb[32].mxu0 %v10809_v56 }
 0x41b   :  { %8369 = vmatpush3.bf16.msra.mxu0 %v10466_v61  ;;  %7793 = vmatprep.mubr.f32.mxu0 %v10842_v63 }
 0x41c   :  { %8371 = vmatprep.subr.bf16.mxu0 %v10476_v58 }
 0x41e   :  { %7794 = vmatmul.mubr.f32.gmra.mrb[34].mxu0 %v10838_v35  ;;  %v12293_v35 = vand.u32 4294901760, %v12292_v29  ;;  %v12313_v29 = vand.u32 4294901760, %v12255_v21 }
 0x41f   :  { %7796 = vmatprep.mubr.f32.mxu0 %v12240_v32  ;;  %8373 = vmatpush3.bf16.msra.mxu0 %v10476_v58  ;;  %v12298_v32 = vld [vmem:[#allocation5_spill] sm:$0xff] }
 0x420   :  { %8375 = vmatprep.subr.bf16.mxu0 %v12241_v44 }
 0x422   :  { %7797 = vmatmul.mubr.f32.gmra.mrb[36].mxu0 %v12242_v27 }
 0x423   :  { %7799 = vmatprep.mubr.f32.mxu0 %v12243_v11  ;;  %8377 = vmatpush3.bf16.msra.mxu0 %v12241_v44 }
 0x424   :  { %8379 = vmatprep.subr.bf16.mxu0 %v12244_v25 }
 0x426   :  { %7800 = vmatmul.mubr.f32.gmra.mrb[38].mxu0 %v12245_v15 }
 0x427   :  { %7802 = vmatprep.mubr.f32.mxu0 %v12246_v62  ;;  %8381 = vmatpush3.bf16.msra.mxu0 %v12244_v25 }
 0x428   :  { %8383 = vmatprep.subr.bf16.mxu0 %v12247_v17 }
 0x42a   :  { %7803 = vmatmul.mubr.f32.gmra.mrb[40].mxu0 %v12248_v57 }
 0x42b   :  { %7805 = vmatprep.mubr.f32.mxu0 %v12249_v3  ;;  %8385 = vmatpush3.bf16.msra.mxu0 %v12247_v17 }
 0x42c   :  { %8387 = vmatprep.subr.bf16.mxu0 %v12250_v5 }
 0x42e   :  { %7806 = vmatmul.mubr.f32.gmra.mrb[42].mxu0 %v12251_v52 }
 0x42f   :  { %7808 = vmatprep.mubr.f32.mxu0 %v12252_v49  ;;  %8389 = vmatpush3.bf16.msra.mxu0 %v12250_v5 }
 0x430   :  { %8391 = vmatprep.subr.bf16.mxu0 %v12253_v13 }
 0x432   :  { %7809 = vmatmul.mubr.f32.gmra.mrb[44].mxu0 %v12254_v23 }
 0x433   :  { %7811 = vmatprep.mubr.f32.mxu0 %v12255_v21  ;;  %8393 = vmatpush3.bf16.msra.mxu0 %v12253_v13  ;;  %v12281_v13 = vand.u32 4294901760, %v12280_v43  ;;  %v12291_v43 = vand.u32 4294901760, %v12243_v11  ;;  %v12319_v21 = vand.u32 4294901760, %v12266_v50 }
 0x434   :  { %8395 = vmatprep.subr.bf16.mxu0 %v12256_v42 }
 0x435   :  { %v8406_v5 = vpack.c.bf16 %v12283_v51, %v12281_v13  ;;  %v12294_v51 = vld [vmem:[#allocation42_spill] sm:$0xff] }
 0x436   :  { %7812 = vmatmul.mubr.f32.gmra.mrb[46].mxu0 %v12261_v24  ;;  %v12295_v9 = vand.u32 4294901760, %v12294_v51  ;;  %v12300_v13 = vld [vmem:[#allocation6_spill] sm:$0xff]  ;;  %v12343_v51 = vld [vmem:[#allocation40_spill] sm:$0xff] }
 0x437   :  { %7814 = vmatprep.mubr.f32.mxu0 %v12262_v34  ;;  %8397 = vmatpush3.bf16.msra.mxu0 %v12256_v42  ;;  %v12278_v42 = vand.u32 4294901760, %v10809_v56  ;;  %v12286_v56 = vld [vmem:[#allocation33_spill] sm:$0xff]  ;;  %v12301_v11 = vand.u32 4294901760, %v12300_v13  ;;  %v12350_v13 = vld [vmem:[#allocation60_spill] sm:$0xff] }
 0x438   :  { %8399 = vmatprep.subr.bf16.mxu0 %v8398_v33  ;;  %v12287_v0 = vand.u32 4294901760, %v12286_v56 }
 0x43a   :  { %7815 = vmatmul.mubr.f32.gmra.mrb[48].mxu0 %v12263_v48 }
 0x43b   :  { %7817 = vmatprep.mubr.f32.mxu0 %v12264_v40 }
 0x43e   :  { %7818 = vmatmul.mubr.f32.gmra.mrb[50].mxu0 %v12265_v28 }
 0x43f   :  { %7820 = vmatprep.mubr.f32.mxu0 %v12266_v50  ;;  %v12326_v50 = vand.u32 4294901760, %v12272_v12 }
 0x442   :  { %7821 = vmatmul.mubr.f32.gmra.mrb[52].mxu0 %v12267_v47 }
 0x443   :  { %7823 = vmatprep.mubr.f32.mxu0 %v12268_v22 }
 0x446   :  { %7824 = vmatmul.mubr.f32.gmra.mrb[54].mxu0 %v12269_v54 }
 0x447   :  { %7826 = vmatprep.mubr.f32.mxu0 %v12270_v31 }
 0x44a   :  { %7827 = vmatmul.mubr.f32.gmra.mrb[56].mxu0 %v12271_v55 }
 0x44b   :  { %7829 = vmatprep.mubr.f32.mxu0 %v11114_v18 }
 0x44e   :  { %7830 = vmatmul.mubr.f32.gmra.mrb[58].mxu0 %v12272_v12  ;;  %v12333_v12 = vld [vmem:[#allocation10_spill] sm:$0xff] }
 0x44f   :  { %7832 = vmatprep.mubr.f32.mxu0 %v11134_v46 }
 0x452   :  { %7833 = vmatmul.mubr.f32.gmra.mrb[60].mxu0 %v11128_v2 }
 0x453   :  { %7835 = vmatprep.mubr.f32.mxu0 %v11152_v60 }
 0x456   :  { %7836 = vmatmul.mubr.f32.gmra.mrb[62].mxu0 %v11146_v30 }
 0x457   :  { %7870 = vmatprep.mubr.f32.mxu0 %v12273_v19  ;;  %v12289_v19 = vand.u32 4294901760, %v12288_v16 }
 0x459   :  { %v8410_v63 = vpack.c.bf16 %v12289_v19, %v12287_v0  ;;  %v12306_v0 = vld [vmem:[#allocation28_spill] sm:$0xff]  ;;  %v12308_v19 = vand.u32 4294901760, %v12251_v52  ;;  %v12314_v52 = vand.u32 4294901760, %v12261_v24  ;;  %v12320_v24 = vand.u32 4294901760, %v12267_v47 }
 0x45a   :  { %7871 = vmatmul.mubr.f32.vlgmr.msra.gmra.mrb[32].mxu0 %v12278_v42  ;;  %v12297_v42 = vand.u32 4294901760, %v12246_v62  ;;  %v12307_v62 = vand.u32 4294901760, %v12306_v0  ;;  %v12327_v47 = vand.u32 4294901760, %v11134_v46  ;;  %v12337_v46 = vld [vmem:[#allocation21_spill] sm:$0xff] }
 0x45b   :  { %8401 = vmatpush3.bf16.msra.mxu0 %v8398_v33  ;;  %7873 = vmatprep.mubr.f32.mxu0 %v12279_v1  ;;  %v12290_v1 = vand.u32 4294901760, %v12242_v27  ;;  %v8414_v33 = vpack.c.bf16 %v12295_v9, %v12293_v35  ;;  %v12299_v27 = vand.u32 4294901760, %v12298_v32  ;;  %v12322_v35 = vand.u32 4294901760, %v12269_v54  ;;  %v12344_v9 = vld [vmem:[#allocation35_spill] sm:$0xff]  ;;  %v12348_v32 = vld [vmem:[#allocation52_spill] sm:$0xff] }
 0x45c   :  { %8403 = vmatprep.subr.bf16.mxu0 %v8402_v26  ;;  %v12329_v54 = vand.u32 4294901760, %v11152_v60  ;;  %v12338_v60 = vld [vmem:[#allocation13_spill] sm:$0xff] }
 0x45e   :  { %7874 = vmatmul.mubr.f32.gmra.mrb[34].mxu0 %v12284_v7  ;;  %v8418_v7 = vpack.c.bf16 %v12301_v11, %v12299_v27  ;;  %v12349_v27 = vld [vmem:[#allocation59_spill] sm:$0xff]  ;;  %v12351_v11 = vld [vmem:[#allocation64_spill] sm:$0xff] }
 0x45f   :  { %7876 = vmatprep.mubr.f32.mxu0 %v12285_v6  ;;  %8405 = vmatpush3.bf16.msra.mxu0 %v8402_v26  ;;  %v12296_v26 = vand.u32 4294901760, %v12245_v15  ;;  %v12303_v6 = vand.u32 4294901760, %v12249_v3  ;;  %v12304_v15 = vld [vmem:[#allocation22_spill] sm:$0xff]  ;;  %v12311_v3 = vand.u32 4294901760, %v10677_v59  ;;  %v12317_v59 = vand.u32 4294901760, %v12264_v40 }
 0x460   :  { %8407 = vmatprep.subr.bf16.mxu0 %v8406_v5  ;;  %v12305_v56 = vand.u32 4294901760, %v12304_v15  ;;  %v12324_v40 = vand.u32 4294901760, %v12271_v55  ;;  %v12342_v55 = vld [vmem:[#allocation2_spill] sm:$0xff] }
 0x462   :  { %7877 = vmatmul.mubr.f32.gmra.mrb[36].mxu0 %v12290_v1  ;;  %v8422_v16 = vpack.c.bf16 %v12307_v62, %v12305_v56 }
 0x463   :  { %7879 = vmatprep.mubr.f32.mxu0 %v12291_v43  ;;  %8409 = vmatpush3.bf16.msra.mxu0 %v8406_v5  ;;  %v12302_v5 = vand.u32 4294901760, %v12248_v57  ;;  %v12310_v57 = vand.u32 4294901760, %v10675_v45  ;;  %v12312_v43 = vand.u32 4294901760, %v12254_v23  ;;  %v12316_v45 = vand.u32 4294901760, %v12263_v48 }
 0x464   :  { %8411 = vmatprep.subr.bf16.mxu0 %v8410_v63  ;;  %v12318_v23 = vand.u32 4294901760, %v12265_v28  ;;  %v12323_v48 = vand.u32 4294901760, %v12270_v31  ;;  %v12325_v28 = vand.u32 4294901760, %v11114_v18  ;;  %v12330_v31 = vand.u32 4294901760, %v11146_v30  ;;  %v12334_v18 = vld [vmem:[#allocation27_spill] sm:$0xff]  ;;  %v12335_v30 = vld [vmem:[#allocation9_spill] sm:$0xff] }
 0x465   :  { %v8426_v1 = vpack.c.bf16 %v12311_v3, %v12310_v57 }
 0x466   :  { %7880 = vmatmul.mubr.f32.gmra.mrb[38].mxu0 %v12296_v26  ;;  %v12346_v26 = vld [vmem:[#allocation44_spill] sm:$0xff] }
 0x467   :  { %7882 = vmatprep.mubr.f32.mxu0 %v12297_v42  ;;  %8413 = vmatpush3.bf16.msra.mxu0 %v8410_v63  ;;  %v12309_v63 = vand.u32 4294901760, %v12252_v49  ;;  %v12315_v49 = vand.u32 4294901760, %v12262_v34  ;;  %v12321_v34 = vand.u32 4294901760, %v12268_v22  ;;  %v12328_v22 = vand.u32 4294901760, %v11128_v2  ;;  %v12336_v2 = vld [vmem:[#allocation14_spill] sm:$0xff]  ;;  %v12347_v42 = vld [vmem:[#allocation51_spill] sm:$0xff] }
 0x468   :  { %8415 = vmatprep.subr.bf16.mxu0 %v8414_v33 }
 0x46a   :  { %7883 = vmatmul.mubr.f32.gmra.mrb[40].mxu0 %v12302_v5  ;;  %v12353_v5 = vld [vmem:[#allocation66_spill] sm:$0xff] }
 0x46b   :  { %7885 = vmatprep.mubr.f32.mxu0 %v12303_v6  ;;  %8417 = vmatpush3.bf16.msra.mxu0 %v8414_v33  ;;  %v12345_v33 = vld [vmem:[#allocation43_spill] sm:$0xff] }
 0x46c   :  { %8419 = vmatprep.subr.bf16.mxu0 %v8418_v7  ;;  %v12354_v6 = vld [vmem:[#allocation63_spill] sm:$0xff] }
 0x46e   :  { %7886 = vmatmul.mubr.f32.gmra.mrb[42].mxu0 %v12308_v19 }
 0x46f   :  { %7888 = vmatprep.mubr.f32.mxu0 %v12309_v63  ;;  %8421 = vmatpush3.bf16.msra.mxu0 %v8418_v7  ;;  %v12352_v7 = vld [vmem:[#allocation61_spill] sm:$0xff] }
 0x470   :  { %8423 = vmatprep.subr.bf16.mxu0 %v8422_v16 }
 0x472   :  { %7889 = vmatmul.mubr.f32.gmra.mrb[44].mxu0 %v12312_v43 }
 0x473   :  { %7891 = vmatprep.mubr.f32.mxu0 %v12313_v29  ;;  %8425 = vmatpush3.bf16.msra.mxu0 %v8422_v16 }
 0x474   :  { %8427 = vmatprep.subr.bf16.mxu0 %v8426_v1 }
 0x476   :  { %7892 = vmatmul.mubr.f32.gmra.mrb[46].mxu0 %v12314_v52 }
 0x477   :  { %7894 = vmatprep.mubr.f32.mxu0 %v12315_v49  ;;  %8429 = vmatpush3.bf16.msra.mxu0 %v8426_v1 }
 0x478   :  { %8431 = vmatprep.subr.bf16.mxu0 %v10466_v61 }
 0x47a   :  { %7895 = vmatmul.mubr.f32.gmra.mrb[48].mxu0 %v12316_v45 }
 0x47b   :  { %7897 = vmatprep.mubr.f32.mxu0 %v12317_v59 }
 0x47e   :  { %7898 = vmatmul.mubr.f32.gmra.mrb[50].mxu0 %v12318_v23 }
 0x47f   :  { %7900 = vmatprep.mubr.f32.mxu0 %v12319_v21 }
 0x482   :  { %7901 = vmatmul.mubr.f32.gmra.mrb[52].mxu0 %v12320_v24 }
 0x483   :  { %7903 = vmatprep.mubr.f32.mxu0 %v12321_v34 }
 0x486   :  { %7904 = vmatmul.mubr.f32.gmra.mrb[54].mxu0 %v12322_v35 }
 0x487   :  { %7906 = vmatprep.mubr.f32.mxu0 %v12323_v48 }
 0x48a   :  { %7907 = vmatmul.mubr.f32.gmra.mrb[56].mxu0 %v12324_v40 }
 0x48b   :  { %7909 = vmatprep.mubr.f32.mxu0 %v12325_v28 }
 0x48e   :  { %7910 = vmatmul.mubr.f32.gmra.mrb[58].mxu0 %v12326_v50 }
 0x48f   :  { %7912 = vmatprep.mubr.f32.mxu0 %v12327_v47 }
 0x492   :  { %7913 = vmatmul.mubr.f32.gmra.mrb[60].mxu0 %v12328_v22 }
 0x493   :  { %7915 = vmatprep.mubr.f32.mxu0 %v12329_v54 }
 0x496   :  { %7916 = vmatmul.mubr.f32.gmra.mrb[62].mxu0 %v12330_v31 }
 0x497   :  { %7950 = vmatprep.mubr.f32.mxu0 %v10798_v37 }
 0x49a   :  { %7951 = vmatmul.mubr.f32.vlgmr.msra.gmra.mrb[32].mxu0 %v10795_v20 }
 0x49b   :  { %8433 = vmatpush3.bf16.msra.mxu0 %v10466_v61  ;;  %7953 = vmatprep.mubr.f32.mxu0 %v10829_v8  ;;  %v12331_v61 = vld [vmem:[#allocation24_spill] sm:$0xff] }
 0x49c   :  { %8435 = vmatprep.subr.bf16.mxu0 %v10476_v58 }
 0x49e   :  { %7954 = vmatmul.mubr.f32.gmra.mrb[34].mxu0 %v10825_v10 }
 0x49f   :  { %7956 = vmatprep.mubr.f32.mxu0 %v10857_v14  ;;  %8437 = vmatpush3.bf16.msra.mxu0 %v10476_v58  ;;  %v12332_v58 = vld [vmem:[#allocation53_spill] sm:$0xff] }
 0x4a0   :  { %8439 = vmatprep.subr.bf16.mxu0 %v12241_v44 }
 0x4a2   :  { %7957 = vmatmul.mubr.f32.gmra.mrb[36].mxu0 %v10850_v36 }
 0x4a3   :  { %7959 = vmatprep.mubr.f32.mxu0 %v10877_v4  ;;  %8441 = vmatpush3.bf16.msra.mxu0 %v12241_v44  ;;  %v12339_v44 = vld [vmem:[#allocation18_spill] sm:$0xff] }
 0x4a4   :  { %8443 = vmatprep.subr.bf16.mxu0 %v12244_v25 }
 0x4a6   :  { %7960 = vmatmul.mubr.f32.gmra.mrb[38].mxu0 %v10873_v38 }
 0x4a7   :  { %7962 = vmatprep.mubr.f32.mxu0 %v10903_v39  ;;  %8445 = vmatpush3.bf16.msra.mxu0 %v12244_v25  ;;  %v12340_v25 = vld [vmem:[#allocation17_spill] sm:$0xff] }
 0x4a8   :  { %8447 = vmatprep.subr.bf16.mxu0 %v12247_v17 }
 0x4aa   :  { %7963 = vmatmul.mubr.f32.gmra.mrb[40].mxu0 %v10897_v53 }
 0x4ab   :  { %7965 = vmatprep.mubr.f32.mxu0 %v10927_v41  ;;  %8449 = vmatpush3.bf16.msra.mxu0 %v12247_v17  ;;  %v12341_v17 = vld [vmem:[#allocation32_spill] sm:$0xff] }
 0x4ac   :  { %8451 = vmatprep.subr.bf16.mxu0 %v12331_v61 }
 0x4ae   :  { %7966 = vmatmul.mubr.f32.gmra.mrb[42].mxu0 %v12332_v58 }
 0x4af   :  { %7968 = vmatprep.mubr.f32.mxu0 %v12333_v12  ;;  %8453 = vmatpush3.bf16.msra.mxu0 %v12331_v61 }
 0x4b0   :  { %8455 = vmatprep.subr.bf16.mxu0 %v12334_v18 }
 0x4b2   :  { %7969 = vmatmul.mubr.f32.gmra.mrb[44].mxu0 %v12335_v30 }
 0x4b3   :  { %7971 = vmatprep.mubr.f32.mxu0 %v12336_v2  ;;  %8457 = vmatpush3.bf16.msra.mxu0 %v12334_v18 }
 0x4b4   :  { %8459 = vmatprep.subr.bf16.mxu0 %v12337_v46 }
 0x4b6   :  { %7972 = vmatmul.mubr.f32.gmra.mrb[46].mxu0 %v12338_v60 }
 0x4b7   :  { %7974 = vmatprep.mubr.f32.mxu0 %v12339_v44  ;;  %8461 = vmatpush3.bf16.msra.mxu0 %v12337_v46 }
 0x4ba   :  { %7975 = vmatmul.mubr.f32.gmra.mrb[48].mxu0 %v12340_v25 }
 0x4bb   :  { %7977 = vmatprep.mubr.f32.mxu0 %v12341_v17 }
 0x4be   :  { %7978 = vmatmul.mubr.f32.gmra.mrb[50].mxu0 %v12342_v55 }
 0x4bf   :  { %7980 = vmatprep.mubr.f32.mxu0 %v12343_v51 }
 0x4c2   :  { %7981 = vmatmul.mubr.f32.gmra.mrb[52].mxu0 %v12344_v9 }
 0x4c3   :  { %7983 = vmatprep.mubr.f32.mxu0 %v12345_v33 }
 0x4c6   :  { %7984 = vmatmul.mubr.f32.gmra.mrb[54].mxu0 %v12346_v26 }
 0x4c7   :  { %7986 = vmatprep.mubr.f32.mxu0 %v12347_v42 }
 0x4ca   :  { %7987 = vmatmul.mubr.f32.gmra.mrb[56].mxu0 %v12348_v32 }
 0x4cb   :  { %7989 = vmatprep.mubr.f32.mxu0 %v12349_v27 }
 0x4ce   :  { %7990 = vmatmul.mubr.f32.gmra.mrb[58].mxu0 %v12350_v13 }
 0x4cf   :  { %7992 = vmatprep.mubr.f32.mxu0 %v12351_v11 }
 0x4d2   :  { %7993 = vmatmul.mubr.f32.gmra.mrb[60].mxu0 %v12352_v7 }
 0x4d3   :  { %7995 = vmatprep.mubr.f32.mxu0 %v12353_v5 }
 0x4d6   :  { %7996 = vmatmul.mubr.f32.gmra.mrb[62].mxu0 %v12354_v6 }
 0x4d7   :  { %8030 = vmatprep.mubr.f32.mxu0 %v10798_v37 }
 0x4da   :  { %8031 = vmatmul.mubr.f32.vlgmr.msra.gmra.mrb[32].mxu0 %v10795_v20  ;;  %v11439_v20 = vld [vmem:[%s11607_s6] ss:$0 sm:$0xff] }
 0x4db   :  { %8033 = vmatprep.mubr.f32.mxu0 %v10829_v8 }
 0x4de   :  { %8034 = vmatmul.mubr.f32.gmra.mrb[34].mxu0 %v10825_v10 }
 0x4df   :  { %8036 = vmatprep.mubr.f32.mxu0 %v10857_v14 }
 0x4e2   :  { %8037 = vmatmul.mubr.f32.gmra.mrb[36].mxu0 %v10850_v36 }
 0x4e3   :  { %8039 = vmatprep.mubr.f32.mxu0 %v10877_v4 }
 0x4e6   :  { %8040 = vmatmul.mubr.f32.gmra.mrb[38].mxu0 %v10873_v38 }
 0x4e7   :  { %8042 = vmatprep.mubr.f32.mxu0 %v10903_v39 }
 0x4ea   :  { %8043 = vmatmul.mubr.f32.gmra.mrb[40].mxu0 %v10897_v53 }
 0x4eb   :  { %8045 = vmatprep.mubr.f32.mxu0 %v10927_v41 }
 0x4ee   :  { %8046 = vmatmul.mubr.f32.gmra.mrb[42].mxu0 %v12332_v58 }
 0x4ef   :  { %8048 = vmatprep.mubr.f32.mxu0 %v12333_v12 }
 0x4f2   :  { %8049 = vmatmul.mubr.f32.gmra.mrb[44].mxu0 %v12335_v30 }
 0x4f3   :  { %8051 = vmatprep.mubr.f32.mxu0 %v12336_v2 }
 0x4f6   :  { %8052 = vmatmul.mubr.f32.gmra.mrb[46].mxu0 %v12338_v60 }
 0x4f7   :  { %8054 = vmatprep.mubr.f32.mxu0 %v12339_v44 }
 0x4fa   :  { %8055 = vmatmul.mubr.f32.gmra.mrb[48].mxu0 %v12340_v25 }
 0x4fb   :  { %8057 = vmatprep.mubr.f32.mxu0 %v12341_v17 }
 0x4fe   :  { %8058 = vmatmul.mubr.f32.gmra.mrb[50].mxu0 %v12342_v55 }
 0x4ff   :  { %8060 = vmatprep.mubr.f32.mxu0 %v12343_v51 }
 0x502   :  { %8061 = vmatmul.mubr.f32.gmra.mrb[52].mxu0 %v12344_v9 }
 0x503   :  { %8063 = vmatprep.mubr.f32.mxu0 %v12345_v33 }
 0x506   :  { %8064 = vmatmul.mubr.f32.gmra.mrb[54].mxu0 %v12346_v26 }
 0x507   :  { %8066 = vmatprep.mubr.f32.mxu0 %v12347_v42 }
 0x50a   :  { %8067 = vmatmul.mubr.f32.gmra.mrb[56].mxu0 %v12348_v32 }
 0x50b   :  { %8069 = vmatprep.mubr.f32.mxu0 %v12349_v27 }
 0x50e   :  { %8070 = vmatmul.mubr.f32.gmra.mrb[58].mxu0 %v12350_v13 }
 0x50f   :  { %8072 = vmatprep.mubr.f32.mxu0 %v12351_v11 }
 0x512   :  { %8073 = vmatmul.mubr.f32.gmra.mrb[60].mxu0 %v12352_v7 }
 0x513   :  { %8075 = vmatprep.mubr.f32.mxu0 %v12353_v5 }
 0x516   :  { %8076 = vmatmul.mubr.f32.gmra.mrb[62].mxu0 %v12354_v6 }
 0x5ad   :  { %v8032_v41 = vpop.f32.mrb[32].mxu0 }
 0x5ae   :  { %v8558_v4 = vadd.f32 %v8032_v41, %v11439_v20  ;;  %v5814_v37 = vpop.f32.mrb[33].mxu0 }
 0x5af   :  { %v8559_v8 = vadd.f32 %v11439_v20, %v5814_v37 }
 0x5b0   :  { %6006 = vst.msk [vmem:[%s11608_s7 + $0x8] sm:$0xff] %vm6004_vm2, %v8558_v4 }
 0x5b1   :  { %6005 = vst.msk [vmem:[%s11608_s7] sm:$0xff] %vm6004_vm2, %v8559_v8  ;;  %v8035_v36 = vpop.f32.mrb[34].mxu0 }
 0x5b2   :  { %v8560_v10 = vadd.f32 %v8035_v36, %v11439_v20  ;;  %v5826_v14 = vpop.f32.mrb[35].mxu0 }
 0x5b3   :  { %v8561_v38 = vadd.f32 %v11439_v20, %v5826_v14 }
 0x5b4   :  { %6008 = vst.msk [vmem:[%s11608_s7 + $0x18] sm:$0xff] %vm6004_vm2, %v8560_v10 }
 0x5b5   :  { %6007 = vst.msk [vmem:[%s11608_s7 + $0x10] sm:$0xff] %vm6004_vm2, %v8561_v38  ;;  %v8038_v53 = vpop.f32.mrb[36].mxu0 }
 0x5b6   :  { %v8562_v39 = vadd.f32 %v8038_v53, %v11439_v20  ;;  %v5838_v15 = vpop.f32.mrb[37].mxu0 }
 0x5b7   :  { %v8563_v56 = vadd.f32 %v11439_v20, %v5838_v15 }
 0x5b8   :  { %6010 = vst.msk [vmem:[%s11608_s7 + $0x28] sm:$0xff] %vm6004_vm2, %v8562_v39 }
 0x5b9   :  { %6009 = vst.msk [vmem:[%s11608_s7 + $0x20] sm:$0xff] %vm6004_vm2, %v8563_v56  ;;  %v8041_v0 = vpop.f32.mrb[38].mxu0 }
 0x5ba   :  { %v8564_v62 = vadd.f32 %v8041_v0, %v11439_v20  ;;  %v5850_v16 = vpop.f32.mrb[39].mxu0 }
 0x5bb   :  { %v8565_v19 = vadd.f32 %v11439_v20, %v5850_v16 }
 0x5bc   :  { %6012 = vst.msk [vmem:[%s11608_s7 + $0x38] sm:$0xff] %vm6004_vm2, %v8564_v62 }
 0x5bd   :  { %6011 = vst.msk [vmem:[%s11608_s7 + $0x30] sm:$0xff] %vm6004_vm2, %v8565_v19  ;;  %v8044_v63 = vpop.f32.mrb[40].mxu0 }
 0x5be   :  { %v8566_v57 = vadd.f32 %v8044_v63, %v11439_v20  ;;  %v5862_v3 = vpop.f32.mrb[41].mxu0 }
 0x5bf   :  { %v8567_v1 = vadd.f32 %v11439_v20, %v5862_v3 }
 0x5c0   :  { %6014 = vst.msk [vmem:[%s11608_s7 + $0x48] sm:$0xff] %vm6004_vm2, %v8566_v57 }
 0x5c1   :  { %6013 = vst.msk [vmem:[%s11608_s7 + $0x40] sm:$0xff] %vm6004_vm2, %v8567_v1  ;;  %v8047_v43 = vpop.f32.mrb[42].mxu0 }
 0x5c2   :  { %v8568_v29 = vadd.f32 %v8047_v43, %v11439_v20  ;;  %v5874_v52 = vpop.f32.mrb[43].mxu0 }
 0x5c3   :  { %v8569_v49 = vadd.f32 %v11439_v20, %v5874_v52 }
 0x5c4   :  { %6016 = vst.msk [vmem:[%s11608_s7 + $0x58] sm:$0xff] %vm6004_vm2, %v8568_v29 }
 0x5c5   :  { %6015 = vst.msk [vmem:[%s11608_s7 + $0x50] sm:$0xff] %vm6004_vm2, %v8569_v49  ;;  %v8050_v45 = vpop.f32.mrb[44].mxu0 }
 0x5c6   :  { %v8570_v59 = vadd.f32 %v8050_v45, %v11439_v20  ;;  %v5886_v23 = vpop.f32.mrb[45].mxu0 }
 0x5c7   :  { %v8571_v21 = vadd.f32 %v11439_v20, %v5886_v23 }
 0x5c8   :  { %6018 = vst.msk [vmem:[%s11608_s7 + $0x68] sm:$0xff] %vm6004_vm2, %v8570_v59 }
 0x5c9   :  { %6017 = vst.msk [vmem:[%s11608_s7 + $0x60] sm:$0xff] %vm6004_vm2, %v8571_v21  ;;  %v8053_v24 = vpop.f32.mrb[46].mxu0 }
 0x5ca   :  { %v8572_v34 = vadd.f32 %v8053_v24, %v11439_v20  ;;  %v5898_v35 = vpop.f32.mrb[47].mxu0 }
 0x5cb   :  { %v8573_v48 = vadd.f32 %v11439_v20, %v5898_v35 }
 0x5cc   :  { %6020 = vst.msk [vmem:[%s11608_s7 + $0x78] sm:$0xff] %vm6004_vm2, %v8572_v34 }
 0x5cd   :  { %6019 = vst.msk [vmem:[%s11608_s7 + $0x70] sm:$0xff] %vm6004_vm2, %v8573_v48  ;;  %v8056_v40 = vpop.f32.mrb[48].mxu0 }
 0x5ce   :  { %v8574_v28 = vadd.f32 %v8056_v40, %v11439_v20  ;;  %v5910_v50 = vpop.f32.mrb[49].mxu0 }
 0x5cf   :  { %v8575_v47 = vadd.f32 %v11439_v20, %v5910_v50 }
 0x5d0   :  { %6022 = vst.msk [vmem:[%s11608_s7 + $0x88] sm:$0xff] %vm6004_vm2, %v8574_v28 }
 0x5d1   :  { %6021 = vst.msk [vmem:[%s11608_s7 + $0x80] sm:$0xff] %vm6004_vm2, %v8575_v47  ;;  %v8059_v22 = vpop.f32.mrb[50].mxu0 }
 0x5d2   :  { %v8576_v54 = vadd.f32 %v8059_v22, %v11439_v20  ;;  %v5922_v31 = vpop.f32.mrb[51].mxu0 }
 0x5d3   :  { %v8577_v61 = vadd.f32 %v11439_v20, %v5922_v31 }
 0x5d4   :  { %6024 = vst.msk [vmem:[%s11608_s7 + $0x98] sm:$0xff] %vm6004_vm2, %v8576_v54 }
 0x5d5   :  { %6023 = vst.msk [vmem:[%s11608_s7 + $0x90] sm:$0xff] %vm6004_vm2, %v8577_v61  ;;  %v8062_v58 = vpop.f32.mrb[52].mxu0 }
 0x5d6   :  { %v8578_v12 = vadd.f32 %v8062_v58, %v11439_v20  ;;  %v5934_v18 = vpop.f32.mrb[53].mxu0 }
 0x5d7   :  { %v8579_v30 = vadd.f32 %v11439_v20, %v5934_v18 }
 0x5d8   :  { %6026 = vst.msk [vmem:[%s11608_s7 + $0xa8] sm:$0xff] %vm6004_vm2, %v8578_v12 }
 0x5d9   :  { %6025 = vst.msk [vmem:[%s11608_s7 + $0xa0] sm:$0xff] %vm6004_vm2, %v8579_v30  ;;  %v8065_v2 = vpop.f32.mrb[54].mxu0 }
 0x5da   :  { %v8580_v46 = vadd.f32 %v8065_v2, %v11439_v20  ;;  %v5946_v60 = vpop.f32.mrb[55].mxu0 }
 0x5db   :  { %v8581_v44 = vadd.f32 %v11439_v20, %v5946_v60 }
 0x5dc   :  { %6028 = vst.msk [vmem:[%s11608_s7 + $0xb8] sm:$0xff] %vm6004_vm2, %v8580_v46 }
 0x5dd   :  { %6027 = vst.msk [vmem:[%s11608_s7 + $0xb0] sm:$0xff] %vm6004_vm2, %v8581_v44  ;;  %v8068_v25 = vpop.f32.mrb[56].mxu0 }
 0x5de   :  { %v8582_v17 = vadd.f32 %v8068_v25, %v11439_v20  ;;  %v5958_v55 = vpop.f32.mrb[57].mxu0 }
 0x5df   :  { %v8583_v51 = vadd.f32 %v11439_v20, %v5958_v55 }
 0x5e0   :  { %6030 = vst.msk [vmem:[%s11608_s7 + $0xc8] sm:$0xff] %vm6004_vm2, %v8582_v17 }
 0x5e1   :  { %6029 = vst.msk [vmem:[%s11608_s7 + $0xc0] sm:$0xff] %vm6004_vm2, %v8583_v51  ;;  %v8071_v9 = vpop.f32.mrb[58].mxu0 }
 0x5e2   :  { %v8584_v33 = vadd.f32 %v8071_v9, %v11439_v20  ;;  %v5970_v26 = vpop.f32.mrb[59].mxu0 }
 0x5e3   :  { %v8585_v42 = vadd.f32 %v11439_v20, %v5970_v26 }
 0x5e4   :  { %6032 = vst.msk [vmem:[%s11608_s7 + $0xd8] sm:$0xff] %vm6004_vm2, %v8584_v33 }
 0x5e5   :  { %6031 = vst.msk [vmem:[%s11608_s7 + $0xd0] sm:$0xff] %vm6004_vm2, %v8585_v42  ;;  %v8074_v32 = vpop.f32.mrb[60].mxu0 }
 0x5e6   :  { %v8586_v27 = vadd.f32 %v8074_v32, %v11439_v20  ;;  %v5982_v13 = vpop.f32.mrb[61].mxu0 }
 0x5e7   :  { %v8587_v11 = vadd.f32 %v11439_v20, %v5982_v13 }
 0x5e8   :  { %6034 = vst.msk [vmem:[%s11608_s7 + $0xe8] sm:$0xff] %vm6004_vm2, %v8586_v27 }
 0x5e9   :  { %6033 = vst.msk [vmem:[%s11608_s7 + $0xe0] sm:$0xff] %vm6004_vm2, %v8587_v11  ;;  %v8077_v7 = vpop.f32.mrb[62].mxu0 }
 0x5ea   :  { %v8588_v5 = vadd.f32 %v8077_v7, %v11439_v20  ;;  %v5994_v6 = vpop.f32.mrb[63].mxu0 }
 0x5eb   :  { %v8589_v41 = vadd.f32 %v11439_v20, %v5994_v6 }
 0x5ec   :  { %6036 = vst.msk [vmem:[%s11608_s7 + $0xf8] sm:$0xff] %vm6004_vm2, %v8588_v5 }
 0x5ed   :  { %6035 = vst.msk [vmem:[%s11608_s7 + $0xf0] sm:$0xff] %vm6004_vm2, %v8589_v41 }

</bundles_post_ra>
